<compile_context>
chip_gen: v7x
topology: tpu7x:2x2x1
jax: 0.10.0
libtpu: 0.0.40
codegen_flags: <defaults>
</compile_context>

<pallas_src>
import functools

import jax
import jax.numpy as jnp
import numpy as np
from jax.experimental import pallas as pl
from jax.experimental.pallas import tpu as pltpu


def _painn_mixing_kernel(q_ref, mu_ref, dtm_ref,
                         w1_ref, w2q_ref, w2n_ref, b2_ref, w3_ref, b3_ref,
                         qo_ref, muo_ref, *, n_atom_basis, epsilon):
    F = n_atom_basis
    f32 = jnp.float32

    # ---- weights: loaded once per grid step (constant index_map -> DMA'd once); kept in
    # their native (possibly bf16) dtype so the MXU is fed non-f32 operands. ----
    w1 = w1_ref[...]                  # (F, 2F)   mu_channel_mix weight (no bias)
    w2q = w2q_ref[...]                # (F, F)    ctx-net dense1 weight, q rows
    w2n = w2n_ref[...]                # (F, F)    ctx-net dense1 weight, |mu_V| rows
    b2 = b2_ref[...].astype(f32)      # (1, F)
    w3 = w3_ref[...]                  # (F, 3F)
    b3 = b3_ref[...].astype(f32)      # (1, 3F)

    q = q_ref[...]                    # (TB, F) native dtype, fed straight to the MXU

    # mu_channel_mix: Dense(F -> 2F, bias=False) applied per Cartesian component with
    # three small dots (no block-diagonal zero-MAC waste).  Accumulate in f32.
    mu_V, mu_W = [], []
    for i in range(3):
        mm_i = jnp.dot(mu_ref[:, i * F:(i + 1) * F], w1,
                       preferred_element_type=f32)                 # (TB, 2F)
        mu_V.append(mm_i[:, :F])
        mu_W.append(mm_i[:, F:])

    # ||mu_V|| over the Cartesian axis (torch dim=-2, keepdim) with stability epsilon.
    mu_Vn = jnp.sqrt(mu_V[0] ** 2 + mu_V[1] ** 2 + mu_V[2] ** 2 + epsilon)   # (TB, F) f32

    # intraatomic_context_net: Dense(2F -> F, silu) ; Dense(F -> 3F).
    # cat([q, |mu_V|]) @ W2 computed without the lane concat: q @ W2[:F] + |mu_V| @ W2[F:].
    h = (jnp.dot(q, w2q, preferred_element_type=f32)
         + jnp.dot(mu_Vn.astype(w2n.dtype), w2n, preferred_element_type=f32)
         + b2)
    h = jax.nn.silu(h)
    x = jnp.dot(h.astype(w3.dtype), w3, preferred_element_type=f32) + b3     # (TB, 3F)

    dq_intra = x[:, 0 * F:1 * F]
    dmu_intra = x[:, 1 * F:2 * F]
    dqmu_intra = x[:, 2 * F:3 * F]

    # sum over Cartesian axis of mu_V * mu_W (torch dim=1, keepdim)
    vw = mu_V[0] * mu_W[0] + mu_V[1] * mu_W[1] + mu_V[2] * mu_W[2]           # (TB, F)

    # q = q + cat([dq_intra, dqmu_intra], dim=-1)
    # TODO(synk): PyTorch's broadcasting residual add only runs when n_atom_basis == 1;
    # here q is broadcast onto each n_atom_basis-wide chunk (identical to PyTorch at F == 1).
    qf = q.astype(f32)
    q1 = qf + dq_intra                                                        # (TB, F)
    q2 = qf + dqmu_intra * vw                                                 # (TB, F)
    qo_ref[:, 0:F] = q1.astype(qo_ref.dtype)
    qo_ref[:, F:2 * F] = q2.astype(qo_ref.dtype)

    # tensor_vector = einsum('bfij,bfj->bfi', dtm, q_new^T): j == 1 collapses it to an
    # elementwise product dtm[:, f, i] * q_new[:, f].  mu/dtm per-component slices are
    # read straight from the refs here (never materialized as full f32 slabs).
    # mu_out row (flattened (3, 3F)):
    #   [mu_i + dmu_intra*mu_W_i | mu_i + dtm_i[:, :F]*q1 | mu_i + dtm_i[:, F:]*q2]
    for i in range(3):
        mu_i = mu_ref[:, i * F:(i + 1) * F].astype(f32)
        dtm_lo = dtm_ref[:, i * 2 * F: i * 2 * F + F]
        dtm_hi = dtm_ref[:, i * 2 * F + F: (i + 1) * 2 * F]
        base = i * 3 * F
        muo_ref[:, base:base + F] = (mu_i + dmu_intra * mu_W[i]).astype(muo_ref.dtype)
        muo_ref[:, base + F:base + 2 * F] = (mu_i + dtm_lo * q1).astype(muo_ref.dtype)
        muo_ref[:, base + 2 * F:base + 3 * F] = (mu_i + dtm_hi * q2).astype(muo_ref.dtype)


def _pick_block_atoms(n_atoms, target, *, min_grid=2):
    """Largest multiple-of-8 divisor of n_atoms that is <= target and (when possible)
    leaves at least `min_grid` grid steps so the 'parallel' atoms axis can be sharded
    across TensorCores.  Falls back to n_atoms itself."""
    cap = target
    if n_atoms >= 8 * min_grid:
        cap = min(cap, max(8, ((n_atoms // min_grid) // 8) * 8))
    tb = min(cap, n_atoms)
    if tb >= n_atoms:
        return n_atoms
    tb = max(8, (tb // 8) * 8)
    while tb >= 8:
        if n_atoms % tb == 0:
            return tb
        tb -= 8
    return n_atoms


def _vmem_block_bytes(tb, F, itemsize=4):
    """Estimated VMEM footprint: double-buffered activation/output/weight tiles plus
    in-kernel f32 temporaries (mu_V/mu_W, mu_Vn, h, x, vw, q1/q2, products)."""
    lane = lambda n: -(-n // 128) * 128
    sub = lambda n: -(-n // 8) * 8
    act = 2 * itemsize * tb * (lane(F) + lane(3 * F) + lane(6 * F)
                               + lane(2 * F) + lane(9 * F))
    wts = 2 * itemsize * (sub(F) * lane(2 * F) + 2 * sub(F) * lane(F)
                          + sub(1) * lane(F) + sub(F) * lane(3 * F) + sub(1) * lane(3 * F))
    tmp = 4 * tb * lane(F) * 16
    return act + wts + tmp


def _vmem_budget():
    """(footprint_ceiling, vmem_limit_cap): conservative / v7x-safe unless get_tpu_info()
    confirms a 128 MiB-VMEM part (v5e / v6e)."""
    cap = None
    try:
        cap = pltpu.get_tpu_info().vmem_capacity_bytes
    except Exception:
        cap = None
    if cap is not None and cap >= (100 << 20):
        return (88 << 20), (100 << 20)
    return (40 << 20), (56 << 20)


def painn_mixing(q, mu, dtm, params, *, epsilon=1e-8, block_atoms=512):
    """q: (B,1,F), mu: (B,3,F), dtm: (B,2F,3,1) or (B,3,2F)
    -> q_out: (B,1,2F), mu_out: (B,3,3F)."""
    B, one, F = q.shape
    assert one == 1 and mu.shape == (B, 3, F)
    w1, w2, b2, w3, b3 = params

    # Free (row-major contiguous) reshapes to lane-dense slabs.
    q2 = q.reshape(B, F)
    mu_flat = mu.reshape(B, 3 * F)
    if dtm.ndim == 4:
        assert dtm.shape == (B, 2 * F, 3, 1)
        # TODO(synk): the producer should emit dtm component-major (B,3,2F); this transpose
        # costs one extra HBM read+write of the largest input tensor.
        dtm_flat = jnp.transpose(dtm[..., 0], (0, 2, 1)).reshape(B, 6 * F)
    else:
        assert dtm.shape == (B, 3, 2 * F)
        dtm_flat = dtm.reshape(B, 6 * F)

    # Split ctx-net dense1 so the kernel never concatenates along lanes.
    w2q, w2n = w2[:F], w2[F:]

    itemsize = int(np.dtype(q.dtype).itemsize)
    ceiling, limit_cap = _vmem_budget()

    TB = _pick_block_atoms(B, block_atoms)
    est = _vmem_block_bytes(TB, F, itemsize)
    while est > ceiling and TB > 8:
        new_tb = _pick_block_atoms(B, max(8, TB // 2))
        if new_tb >= TB:
            break
        TB = new_tb
        est = _vmem_block_bytes(TB, F, itemsize)
    vmem_limit = int(min(max(est + (8 << 20), 16 << 20), limit_cap))

    assert B % TB == 0
    grid = (B // TB,)

    kernel = functools.partial(_painn_mixing_kernel, n_atom_basis=F, epsilon=epsilon)

    q_out, mu_out = pl.pallas_call(
        kernel,
        out_shape=(jax.ShapeDtypeStruct((B, 2 * F), q.dtype),
                   jax.ShapeDtypeStruct((B, 9 * F), mu.dtype)),
        grid_spec=pltpu.PrefetchScalarGridSpec(
            num_scalar_prefetch=0,
            grid=grid,
            in_specs=[
                pl.BlockSpec((TB, F), lambda i: (i, 0)),          # q
                pl.BlockSpec((TB, 3 * F), lambda i: (i, 0)),      # mu (flattened)
                pl.BlockSpec((TB, 6 * F), lambda i: (i, 0)),      # dtm (component-major)
                pl.BlockSpec((F, 2 * F), lambda i: (0, 0)),       # mu_channel_mix weight
                pl.BlockSpec((F, F), lambda i: (0, 0)),           # ctx-net dense1 weight (q rows)
                pl.BlockSpec((F, F), lambda i: (0, 0)),           # ctx-net dense1 weight (|mu_V| rows)
                pl.BlockSpec((1, F), lambda i: (0, 0)),           # ctx-net dense1 bias
                pl.BlockSpec((F, 3 * F), lambda i: (0, 0)),       # ctx-net dense2 weight
                pl.BlockSpec((1, 3 * F), lambda i: (0, 0)),       # ctx-net dense2 bias
            ],
            out_specs=[
                pl.BlockSpec((TB, 2 * F), lambda i: (i, 0)),
                pl.BlockSpec((TB, 9 * F), lambda i: (i, 0)),
            ],
        ),
        compiler_params=pltpu.CompilerParams(
            dimension_semantics=("parallel",),      # atoms axis independent -> megacore shard
            vmem_limit_bytes=vmem_limit),
    )(q2, mu_flat, dtm_flat, w1, w2q, w2n, b2, w3, b3)

    return q_out.reshape(B, 1, 2 * F), mu_out.reshape(B, 3, 3 * F)


def painn_mixing_ref(q, mu, dtm, params, epsilon=1e-8):
    """Pure-JAX reference mirroring the (generalized) PyTorch forward."""
    w1, w2, b2, w3, b3 = params
    F = q.shape[-1]
    mu_mix = mu @ w1
    mu_V, mu_W = mu_mix[..., :F], mu_mix[..., F:]
    mu_Vn = jnp.sqrt(jnp.sum(mu_V ** 2, axis=-2, keepdims=True) + epsilon)
    ctx = jnp.concatenate([q, mu_Vn], axis=-1)
    h = jax.nn.silu(ctx @ w2 + b2)
    x = h @ w3 + b3
    dq, dmu, dqmu = x[..., :F], x[..., F:2 * F], x[..., 2 * F:]
    dmu = dmu * mu_W
    dqmu = dqmu * jnp.sum(mu_V * mu_W, axis=1, keepdims=True)
    q_new = jnp.concatenate([q + dq, q + dqmu], axis=-1)                     # (B,1,2F)
    tv = jnp.einsum('bfij,bfj->bfi', dtm, jnp.transpose(q_new, (0, 2, 1)))   # (B,2F,3)
    tv_t = jnp.transpose(tv, (0, 2, 1))                                      # (B,3,2F)
    mu_new = jnp.tile(mu, (1, 1, 3)) + jnp.concatenate([dmu, tv_t], axis=-1)
    return q_new, mu_new


if __name__ == "__main__":
    key = jax.random.PRNGKey(0)
    B, F = 256, 32                     # n_atoms = 256, n_atom_basis = 32
    ks = jax.random.split(key, 8)

    q = jax.random.normal(ks[0], (B, 1, F), jnp.float32)
    mu = jax.random.normal(ks[1], (B, 3, F), jnp.float32)
    dtm = jax.random.normal(ks[2], (B, 2 * F, 3, 1), jnp.float32)

    # Deterministic synthetic parameters (torch Dense is y = x @ W.T + b; stored here as (in, out)).
    w1 = jax.random.normal(ks[3], (F, 2 * F), jnp.float32) / jnp.sqrt(F)        # mu_channel_mix (no bias)
    w2 = jax.random.normal(ks[4], (2 * F, F), jnp.float32) / jnp.sqrt(2 * F)    # ctx-net dense1 (silu)
    b2 = 0.1 * jax.random.normal(ks[5], (1, F), jnp.float32)
    w3 = jax.random.normal(ks[6], (F, 3 * F), jnp.float32) / jnp.sqrt(F)        # ctx-net dense2
    b3 = 0.1 * jax.random.normal(ks[7], (1, 3 * F), jnp.float32)
    params = (w1, w2, b2, w3, b3)

    # block_atoms=128 -> grid=(2,) so the multi-block ("parallel") path is exercised.
    q_out, mu_out = painn_mixing(q, mu, dtm, params, block_atoms=128)
    jax.block_until_ready((q_out, mu_out))

    q_ref, mu_ref = painn_mixing_ref(q, mu, dtm, params)
    np.testing.assert_allclose(np.asarray(q_out), np.asarray(q_ref), rtol=5e-5, atol=5e-5)
    np.testing.assert_allclose(np.asarray(mu_out), np.asarray(mu_ref), rtol=5e-5, atol=5e-5)

    # bf16 smoke test: MXU fed bf16 operands with f32 accumulation (finiteness check only).
    bf = jnp.bfloat16
    params_bf = tuple(p.astype(bf) for p in params)
    q_bf, mu_bf = painn_mixing(q.astype(bf), mu.astype(bf), dtm.astype(bf),
                               params_bf, block_atoms=128)
    jax.block_until_ready((q_bf, mu_bf))
    assert bool(jnp.all(jnp.isfinite(q_bf.astype(jnp.float32))))
    assert bool(jnp.all(jnp.isfinite(mu_bf.astype(jnp.float32))))

    print("KERNEL_OK")
</pallas_src>

<mosaic_0001>
module attributes {stable_mosaic.version = 11 : i64} {
  func.func @_painn_mixing_kernel(%arg0: i32, %arg1: memref<128x32xf32, #tpu.memory_space<vmem>>, %arg2: memref<128x96xf32, #tpu.memory_space<vmem>>, %arg3: memref<128x192xf32, #tpu.memory_space<vmem>>, %arg4: memref<32x64xf32, #tpu.memory_space<vmem>>, %arg5: memref<32x32xf32, #tpu.memory_space<vmem>>, %arg6: memref<32x32xf32, #tpu.memory_space<vmem>>, %arg7: memref<1x32xf32, #tpu.memory_space<vmem>>, %arg8: memref<32x96xf32, #tpu.memory_space<vmem>>, %arg9: memref<1x96xf32, #tpu.memory_space<vmem>>, %arg10: memref<128x64xf32, #tpu.memory_space<vmem>>, %arg11: memref<128x288xf32, #tpu.memory_space<vmem>>) attributes {dimension_semantics = [#tpu.dimension_semantics<parallel>], iteration_bounds = array<i64: 2>, scalar_prefetch = 0 : i64, scratch_operands = 0 : i64, tpu.core_type = #tpu.core_type<tc>, window_params = [{transform_indices = @transform_0, window_bounds = array<i64: 128, 32>}, {transform_indices = @transform_1, window_bounds = array<i64: 128, 96>}, {transform_indices = @transform_2, window_bounds = array<i64: 128, 192>}, {pipeline_mode = #tpu.pipeline_mode<synchronous>, transform_indices = @transform_3, window_bounds = array<i64: 32, 64>}, {pipeline_mode = #tpu.pipeline_mode<synchronous>, transform_indices = @transform_4, window_bounds = array<i64: 32, 32>}, {pipeline_mode = #tpu.pipeline_mode<synchronous>, transform_indices = @transform_5, window_bounds = array<i64: 32, 32>}, {pipeline_mode = #tpu.pipeline_mode<synchronous>, transform_indices = @transform_6, window_bounds = array<i64: 1, 32>}, {pipeline_mode = #tpu.pipeline_mode<synchronous>, transform_indices = @transform_7, window_bounds = array<i64: 32, 96>}, {pipeline_mode = #tpu.pipeline_mode<synchronous>, transform_indices = @transform_8, window_bounds = array<i64: 1, 96>}, {transform_indices = @transform_9, window_bounds = array<i64: 128, 64>}, {transform_indices = @transform_10, window_bounds = array<i64: 128, 288>}]} {
    %c0 = arith.constant 0 : index
    %c0_0 = arith.constant 0 : index
    %0 = vector.load %arg4[%c0, %c0_0] : memref<32x64xf32, #tpu.memory_space<vmem>>, vector<32x64xf32>
    %c0_1 = arith.constant 0 : index
    %c0_2 = arith.constant 0 : index
    %1 = vector.load %arg5[%c0_1, %c0_2] : memref<32x32xf32, #tpu.memory_space<vmem>>, vector<32x32xf32>
    %c0_3 = arith.constant 0 : index
    %c0_4 = arith.constant 0 : index
    %2 = vector.load %arg6[%c0_3, %c0_4] : memref<32x32xf32, #tpu.memory_space<vmem>>, vector<32x32xf32>
    %c0_5 = arith.constant 0 : index
    %c0_6 = arith.constant 0 : index
    %3 = vector.load %arg7[%c0_5, %c0_6] : memref<1x32xf32, #tpu.memory_space<vmem>>, vector<1x32xf32>
    %c0_7 = arith.constant 0 : index
    %c0_8 = arith.constant 0 : index
    %4 = vector.load %arg8[%c0_7, %c0_8] : memref<32x96xf32, #tpu.memory_space<vmem>>, vector<32x96xf32>
    %c0_9 = arith.constant 0 : index
    %c0_10 = arith.constant 0 : index
    %5 = vector.load %arg9[%c0_9, %c0_10] : memref<1x96xf32, #tpu.memory_space<vmem>>, vector<1x96xf32>
    %c0_11 = arith.constant 0 : index
    %c0_12 = arith.constant 0 : index
    %6 = vector.load %arg1[%c0_11, %c0_12] : memref<128x32xf32, #tpu.memory_space<vmem>>, vector<128x32xf32>
    %c0_13 = arith.constant 0 : index
    %c0_14 = arith.constant 0 : index
    %7 = vector.load %arg2[%c0_13, %c0_14] : memref<128x96xf32, #tpu.memory_space<vmem>>, vector<128x32xf32>
    %cst = arith.constant dense<0.000000e+00> : vector<128x64xf32>
    %8 = tpu.matmul %7, %0, %cst {dimension_numbers = #tpu.dot_dimension_numbers<[1], [0], [0], [1], [0, 0, 1, 1], [], []>} : vector<128x32xf32>, vector<32x64xf32>, vector<128x64xf32> -> vector<128x64xf32>
    %9 = vector.extract_strided_slice %8 {offsets = [0, 0], sizes = [128, 32], strides = [1, 1]} : vector<128x64xf32> to vector<128x32xf32>
    %10 = vector.extract_strided_slice %8 {offsets = [0, 32], sizes = [128, 32], strides = [1, 1]} : vector<128x64xf32> to vector<128x32xf32>
    %c0_15 = arith.constant 0 : index
    %c32 = arith.constant 32 : index
    %11 = vector.load %arg2[%c0_15, %c32] : memref<128x96xf32, #tpu.memory_space<vmem>>, vector<128x32xf32>
    %cst_16 = arith.constant dense<0.000000e+00> : vector<128x64xf32>
    %12 = tpu.matmul %11, %0, %cst_16 {dimension_numbers = #tpu.dot_dimension_numbers<[1], [0], [0], [1], [0, 0, 1, 1], [], []>} : vector<128x32xf32>, vector<32x64xf32>, vector<128x64xf32> -> vector<128x64xf32>
    %13 = vector.extract_strided_slice %12 {offsets = [0, 0], sizes = [128, 32], strides = [1, 1]} : vector<128x64xf32> to vector<128x32xf32>
    %14 = vector.extract_strided_slice %12 {offsets = [0, 32], sizes = [128, 32], strides = [1, 1]} : vector<128x64xf32> to vector<128x32xf32>
    %c0_17 = arith.constant 0 : index
    %c64 = arith.constant 64 : index
    %15 = vector.load %arg2[%c0_17, %c64] : memref<128x96xf32, #tpu.memory_space<vmem>>, vector<128x32xf32>
    %cst_18 = arith.constant dense<0.000000e+00> : vector<128x64xf32>
    %16 = tpu.matmul %15, %0, %cst_18 {dimension_numbers = #tpu.dot_dimension_numbers<[1], [0], [0], [1], [0, 0, 1, 1], [], []>} : vector<128x32xf32>, vector<32x64xf32>, vector<128x64xf32> -> vector<128x64xf32>
    %17 = vector.extract_strided_slice %16 {offsets = [0, 0], sizes = [128, 32], strides = [1, 1]} : vector<128x64xf32> to vector<128x32xf32>
    %18 = vector.extract_strided_slice %16 {offsets = [0, 32], sizes = [128, 32], strides = [1, 1]} : vector<128x64xf32> to vector<128x32xf32>
    %19 = arith.mulf %9, %9 : vector<128x32xf32>
    %20 = arith.mulf %13, %13 : vector<128x32xf32>
    %21 = arith.addf %19, %20 : vector<128x32xf32>
    %22 = arith.mulf %17, %17 : vector<128x32xf32>
    %23 = arith.addf %21, %22 : vector<128x32xf32>
    %cst_19 = arith.constant 9.99999993E-9 : f32
    %24 = vector.broadcast %cst_19 : f32 to vector<128x32xf32>
    %25 = arith.addf %23, %24 : vector<128x32xf32>
    %26 = math.sqrt %25 : vector<128x32xf32>
    %cst_20 = arith.constant dense<0.000000e+00> : vector<128x32xf32>
    %27 = tpu.matmul %6, %1, %cst_20 {dimension_numbers = #tpu.dot_dimension_numbers<[1], [0], [0], [1], [0, 0, 1, 1], [], []>} : vector<128x32xf32>, vector<32x32xf32>, vector<128x32xf32> -> vector<128x32xf32>
    %cst_21 = arith.constant dense<0.000000e+00> : vector<128x32xf32>
    %28 = tpu.matmul %26, %2, %cst_21 {dimension_numbers = #tpu.dot_dimension_numbers<[1], [0], [0], [1], [0, 0, 1, 1], [], []>} : vector<128x32xf32>, vector<32x32xf32>, vector<128x32xf32> -> vector<128x32xf32>
    %29 = arith.addf %27, %28 : vector<128x32xf32>
    %30 = vector.broadcast %3 : vector<1x32xf32> to vector<128x32xf32>
    %31 = arith.addf %29, %30 : vector<128x32xf32>
    %32 = arith.negf %31 : vector<128x32xf32>
    %33 = math.exp %32 : vector<128x32xf32>
    %cst_22 = arith.constant 1.000000e+00 : f32
    %34 = vector.broadcast %cst_22 : f32 to vector<128x32xf32>
    %35 = arith.addf %34, %33 : vector<128x32xf32>
    %36 = arith.divf %34, %35 : vector<128x32xf32>
    %37 = arith.mulf %31, %36 : vector<128x32xf32>
    %cst_23 = arith.constant dense<0.000000e+00> : vector<128x96xf32>
    %38 = tpu.matmul %37, %4, %cst_23 {dimension_numbers = #tpu.dot_dimension_numbers<[1], [0], [0], [1], [0, 0, 1, 1], [], []>} : vector<128x32xf32>, vector<32x96xf32>, vector<128x96xf32> -> vector<128x96xf32>
    %39 = vector.broadcast %5 : vector<1x96xf32> to vector<128x96xf32>
    %40 = arith.addf %38, %39 : vector<128x96xf32>
    %41 = vector.extract_strided_slice %40 {offsets = [0, 0], sizes = [128, 32], strides = [1, 1]} : vector<128x96xf32> to vector<128x32xf32>
    %42 = vector.extract_strided_slice %40 {offsets = [0, 32], sizes = [128, 32], strides = [1, 1]} : vector<128x96xf32> to vector<128x32xf32>
    %43 = vector.extract_strided_slice %40 {offsets = [0, 64], sizes = [128, 32], strides = [1, 1]} : vector<128x96xf32> to vector<128x32xf32>
    %44 = arith.mulf %9, %10 : vector<128x32xf32>
    %45 = arith.mulf %13, %14 : vector<128x32xf32>
    %46 = arith.addf %44, %45 : vector<128x32xf32>
    %47 = arith.mulf %17, %18 : vector<128x32xf32>
    %48 = arith.addf %46, %47 : vector<128x32xf32>
    %49 = arith.addf %6, %41 : vector<128x32xf32>
    %50 = arith.mulf %43, %48 : vector<128x32xf32>
    %51 = arith.addf %6, %50 : vector<128x32xf32>
    %c0_24 = arith.constant 0 : index
    %c0_25 = arith.constant 0 : index
    %52 = vector.load %arg10[%c0_24, %c0_25] : memref<128x64xf32, #tpu.memory_space<vmem>>, vector<128x32xf32>
    tpu.vector_store %arg10[%c0_24, %c0_25], %49 {strides = array<i32>} : memref<128x64xf32, #tpu.memory_space<vmem>>, vector<128x32xf32>,
    %c0_26 = arith.constant 0 : index
    %c32_27 = arith.constant 32 : index
    %53 = vector.load %arg10[%c0_26, %c32_27] : memref<128x64xf32, #tpu.memory_space<vmem>>, vector<128x32xf32>
    tpu.vector_store %arg10[%c0_26, %c32_27], %51 {strides = array<i32>} : memref<128x64xf32, #tpu.memory_space<vmem>>, vector<128x32xf32>,
    %c0_28 = arith.constant 0 : index
    %c0_29 = arith.constant 0 : index
    %54 = vector.load %arg2[%c0_28, %c0_29] : memref<128x96xf32, #tpu.memory_space<vmem>>, vector<128x32xf32>
    %c0_30 = arith.constant 0 : index
    %c0_31 = arith.constant 0 : index
    %55 = vector.load %arg3[%c0_30, %c0_31] : memref<128x192xf32, #tpu.memory_space<vmem>>, vector<128x32xf32>
    %c0_32 = arith.constant 0 : index
    %c32_33 = arith.constant 32 : index
    %56 = vector.load %arg3[%c0_32, %c32_33] : memref<128x192xf32, #tpu.memory_space<vmem>>, vector<128x32xf32>
    %57 = arith.mulf %42, %10 : vector<128x32xf32>
    %58 = arith.addf %54, %57 : vector<128x32xf32>
    %c0_34 = arith.constant 0 : index
    %c0_35 = arith.constant 0 : index
    %59 = vector.load %arg11[%c0_34, %c0_35] : memref<128x288xf32, #tpu.memory_space<vmem>>, vector<128x32xf32>
    tpu.vector_store %arg11[%c0_34, %c0_35], %58 {strides = array<i32>} : memref<128x288xf32, #tpu.memory_space<vmem>>, vector<128x32xf32>,
    %60 = arith.mulf %55, %49 : vector<128x32xf32>
    %61 = arith.addf %54, %60 : vector<128x32xf32>
    %c0_36 = arith.constant 0 : index
    %c32_37 = arith.constant 32 : index
    %62 = vector.load %arg11[%c0_36, %c32_37] : memref<128x288xf32, #tpu.memory_space<vmem>>, vector<128x32xf32>
    tpu.vector_store %arg11[%c0_36, %c32_37], %61 {strides = array<i32>} : memref<128x288xf32, #tpu.memory_space<vmem>>, vector<128x32xf32>,
    %63 = arith.mulf %56, %51 : vector<128x32xf32>
    %64 = arith.addf %54, %63 : vector<128x32xf32>
    %c0_38 = arith.constant 0 : index
    %c64_39 = arith.constant 64 : index
    %65 = vector.load %arg11[%c0_38, %c64_39] : memref<128x288xf32, #tpu.memory_space<vmem>>, vector<128x32xf32>
    tpu.vector_store %arg11[%c0_38, %c64_39], %64 {strides = array<i32>} : memref<128x288xf32, #tpu.memory_space<vmem>>, vector<128x32xf32>,
    %c0_40 = arith.constant 0 : index
    %c32_41 = arith.constant 32 : index
    %66 = vector.load %arg2[%c0_40, %c32_41] : memref<128x96xf32, #tpu.memory_space<vmem>>, vector<128x32xf32>
    %c0_42 = arith.constant 0 : index
    %c64_43 = arith.constant 64 : index
    %67 = vector.load %arg3[%c0_42, %c64_43] : memref<128x192xf32, #tpu.memory_space<vmem>>, vector<128x32xf32>
    %c0_44 = arith.constant 0 : index
    %c96 = arith.constant 96 : index
    %68 = vector.load %arg3[%c0_44, %c96] : memref<128x192xf32, #tpu.memory_space<vmem>>, vector<128x32xf32>
    %69 = arith.mulf %42, %14 : vector<128x32xf32>
    %70 = arith.addf %66, %69 : vector<128x32xf32>
    %c0_45 = arith.constant 0 : index
    %c96_46 = arith.constant 96 : index
    %71 = vector.load %arg11[%c0_45, %c96_46] : memref<128x288xf32, #tpu.memory_space<vmem>>, vector<128x32xf32>
    tpu.vector_store %arg11[%c0_45, %c96_46], %70 {strides = array<i32>} : memref<128x288xf32, #tpu.memory_space<vmem>>, vector<128x32xf32>,
    %72 = arith.mulf %67, %49 : vector<128x32xf32>
    %73 = arith.addf %66, %72 : vector<128x32xf32>
    %c0_47 = arith.constant 0 : index
    %c128 = arith.constant 128 : index
    %74 = vector.load %arg11[%c0_47, %c128] : memref<128x288xf32, #tpu.memory_space<vmem>>, vector<128x32xf32>
    tpu.vector_store %arg11[%c0_47, %c128], %73 {strides = array<i32>} : memref<128x288xf32, #tpu.memory_space<vmem>>, vector<128x32xf32>,
    %75 = arith.mulf %68, %51 : vector<128x32xf32>
    %76 = arith.addf %66, %75 : vector<128x32xf32>
    %c0_48 = arith.constant 0 : index
    %c160 = arith.constant 160 : index
    %77 = vector.load %arg11[%c0_48, %c160] : memref<128x288xf32, #tpu.memory_space<vmem>>, vector<128x32xf32>
    tpu.vector_store %arg11[%c0_48, %c160], %76 {strides = array<i32>} : memref<128x288xf32, #tpu.memory_space<vmem>>, vector<128x32xf32>,
    %c0_49 = arith.constant 0 : index
    %c64_50 = arith.constant 64 : index
    %78 = vector.load %arg2[%c0_49, %c64_50] : memref<128x96xf32, #tpu.memory_space<vmem>>, vector<128x32xf32>
    %c0_51 = arith.constant 0 : index
    %c128_52 = arith.constant 128 : index
    %79 = vector.load %arg3[%c0_51, %c128_52] : memref<128x192xf32, #tpu.memory_space<vmem>>, vector<128x32xf32>
    %c0_53 = arith.constant 0 : index
    %c160_54 = arith.constant 160 : index
    %80 = vector.load %arg3[%c0_53, %c160_54] : memref<128x192xf32, #tpu.memory_space<vmem>>, vector<128x32xf32>
    %81 = arith.mulf %42, %18 : vector<128x32xf32>
    %82 = arith.addf %78, %81 : vector<128x32xf32>
    %c0_55 = arith.constant 0 : index
    %c192 = arith.constant 192 : index
    %83 = vector.load %arg11[%c0_55, %c192] : memref<128x288xf32, #tpu.memory_space<vmem>>, vector<128x32xf32>
    tpu.vector_store %arg11[%c0_55, %c192], %82 {strides = array<i32>} : memref<128x288xf32, #tpu.memory_space<vmem>>, vector<128x32xf32>,
    %84 = arith.mulf %79, %49 : vector<128x32xf32>
    %85 = arith.addf %78, %84 : vector<128x32xf32>
    %c0_56 = arith.constant 0 : index
    %c224 = arith.constant 224 : index
    %86 = vector.load %arg11[%c0_56, %c224] : memref<128x288xf32, #tpu.memory_space<vmem>>, vector<128x32xf32>
    tpu.vector_store %arg11[%c0_56, %c224], %85 {strides = array<i32>} : memref<128x288xf32, #tpu.memory_space<vmem>>, vector<128x32xf32>,
    %87 = arith.mulf %80, %51 : vector<128x32xf32>
    %88 = arith.addf %78, %87 : vector<128x32xf32>
    %c0_57 = arith.constant 0 : index
    %c256 = arith.constant 256 : index
    %89 = vector.load %arg11[%c0_57, %c256] : memref<128x288xf32, #tpu.memory_space<vmem>>, vector<128x32xf32>
    tpu.vector_store %arg11[%c0_57, %c256], %88 {strides = array<i32>} : memref<128x288xf32, #tpu.memory_space<vmem>>, vector<128x32xf32>,
    return
  }
  func.func @transform_0(%arg0: i32) -> (i32, i32) {
    %c0_i32 = arith.constant 0 : i32
    %c0_i32_0 = arith.constant 0 : i32
    return %arg0, %c0_i32 : i32, i32
  }
  func.func @transform_1(%arg0: i32) -> (i32, i32) {
    %c0_i32 = arith.constant 0 : i32
    %c0_i32_0 = arith.constant 0 : i32
    return %arg0, %c0_i32 : i32, i32
  }
  func.func @transform_2(%arg0: i32) -> (i32, i32) {
    %c0_i32 = arith.constant 0 : i32
    %c0_i32_0 = arith.constant 0 : i32
    return %arg0, %c0_i32 : i32, i32
  }
  func.func @transform_3(%arg0: i32) -> (i32, i32) {
    %c0_i32 = arith.constant 0 : i32
    %c0_i32_0 = arith.constant 0 : i32
    %c0_i32_1 = arith.constant 0 : i32
    return %c0_i32, %c0_i32_0 : i32, i32
  }
  func.func @transform_4(%arg0: i32) -> (i32, i32) {
    %c0_i32 = arith.constant 0 : i32
    %c0_i32_0 = arith.constant 0 : i32
    %c0_i32_1 = arith.constant 0 : i32
    return %c0_i32, %c0_i32_0 : i32, i32
  }
  func.func @transform_5(%arg0: i32) -> (i32, i32) {
    %c0_i32 = arith.constant 0 : i32
    %c0_i32_0 = arith.constant 0 : i32
    %c0_i32_1 = arith.constant 0 : i32
    return %c0_i32, %c0_i32_0 : i32, i32
  }
  func.func @transform_6(%arg0: i32) -> (i32, i32) {
    %c0_i32 = arith.constant 0 : i32
    %c0_i32_0 = arith.constant 0 : i32
    %c0_i32_1 = arith.constant 0 : i32
    return %c0_i32, %c0_i32_0 : i32, i32
  }
  func.func @transform_7(%arg0: i32) -> (i32, i32) {
    %c0_i32 = arith.constant 0 : i32
    %c0_i32_0 = arith.constant 0 : i32
    %c0_i32_1 = arith.constant 0 : i32
    return %c0_i32, %c0_i32_0 : i32, i32
  }
  func.func @transform_8(%arg0: i32) -> (i32, i32) {
    %c0_i32 = arith.constant 0 : i32
    %c0_i32_0 = arith.constant 0 : i32
    %c0_i32_1 = arith.constant 0 : i32
    return %c0_i32, %c0_i32_0 : i32, i32
  }
  func.func @transform_9(%arg0: i32) -> (i32, i32) {
    %c0_i32 = arith.constant 0 : i32
    %c0_i32_0 = arith.constant 0 : i32
    return %arg0, %c0_i32 : i32, i32
  }
  func.func @transform_10(%arg0: i32) -> (i32, i32) {
    %c0_i32 = arith.constant 0 : i32
    %c0_i32_0 = arith.constant 0 : i32
    return %arg0, %c0_i32 : i32, i32
  }
}

</mosaic_0001>

<bundles_post_ra>
// kernel: tpu_custom_call.1
= control target key start
LH: loop header
LB: loop body
LE: loop exit
PB: predicated region body
PF: predicated region fallthrough
CT: control target
= control target key end

     0   :  { %s4879_s13 = smov 0   ;;  %s7443_s0 = inlined_call_operand.vmem [shape: f32[256,32], index: 0, kind: input, shape index: {}]   ;;  %s7444_s1 = inlined_call_operand.vmem [shape: f32[256,96], index: 1, kind: input, shape index: {}]   ;;  %s7445_s2 = inlined_call_operand.vmem [shape: f32[256,192], index: 2, kind: input, shape index: {}]   ;;  %s7446_s3 = inlined_call_operand.vmem [shape: f32[32,64], index: 3, kind: input, shape index: {}]   ;;  %s7447_s4 = inlined_call_operand.vmem [shape: f32[32,32], index: 4, kind: input, shape index: {}]   ;;  %s7448_s5 = inlined_call_operand.vmem [shape: f32[32,32], index: 5, kind: input, shape index: {}]   ;;  %s7449_s6 = inlined_call_operand.vmem [shape: f32[1,32], index: 6, kind: input, shape index: {}]   ;;  %s7450_s7 = inlined_call_operand.vmem [shape: f32[32,96], index: 7, kind: input, shape index: {}]   ;;  %s7451_s8 = inlined_call_operand.vmem [shape: f32[1,96], index: 8, kind: input, shape index: {}]   ;;  %s7452_s9 = inlined_call_operand.vmem [shape: f32[256,64], index: 9, kind: output, shape index: {0}]   ;;  %s7453_s10 = inlined_call_operand.vmem [shape: f32[256,288], index: 10, kind: output, shape index: {1}]  }
   0x1 LB: > { %s4150_s14 = sadd.s32 4294967295, %s4819_s13   ;;  %p4154_p0 = scmp.ge.s32.totalorder %s4819_s13, 1  ;;  %s4819_s13 = sphi %s4879_s13, %s21_s13  }
   0x2   : > { %p339_p1 = scmp.lt.s32.totalorder %s4819_s13, 3 }
   0x4   : > { %p340_p2 = pnand %p4154_p0, %p339_p1 }
   0x6   : > { %343 = sbr.rel (%p340_p2) target bundleno = 1606 (0x646), region = 56 }
   0xd   : > { %v426_v0 = vld [vmem:[%s7446_s3] sm:$0xff]  ;;  %v427_v1 = vld [vmem:[%s7446_s3 + $0x8] sm:$0xff]  ;;  %v428_v2 = vld [vmem:[%s7446_s3 + $0x10] sm:$0xff]  ;;  %s4155_s21 = sshll.u32 %s4150_s14, 4  ;;  %vm476_vm0 = vcmask 261120   ;;  %s4821_s28 = smov 64  }
   0xe   : > { %v4595_v3 = vpack.c.bf16 %v427_v1, %v426_v0  ;;  %v429_v4 = vld [vmem:[%s7446_s3 + $0x18] sm:$0xff]  ;;  %p395_p3 = scmp.lt.s32.totalorder %s4155_s21, 31  ;;  %s4822_s29 = smov 96   ;;  %v434_v57 = vld [vmem:[%s7448_s5] sm:$0xff]  ;;  %v435_v58 = vld [vmem:[%s7448_s5 + $0x8] sm:$0xff] }
   0xf   : > { %v4599_v5 = vpack.c.bf16 %v429_v4, %v428_v2  ;;  %v4619_v60 = vpack.c.bf16 %v435_v58, %v434_v57  ;;  %v436_v62 = vld [vmem:[%s7448_s5 + $0x10] sm:$0xff]  ;;  %v437_v63 = vld [vmem:[%s7448_s5 + $0x18] sm:$0xff]  ;;  %s4823_s18 = smov 32  }
  0x10   : > { %4596 = vmatprep.subr.bf16.mxu0 %v4595_v3  ;;  %s7683_s21 = smov (!%p395_p3, %s4155_s21), 31  ;;  %4604 = vmatprep.subr.bf16.mxu1 %v4595_v3  ;;  %v4623_v1 = vpack.c.bf16 %v437_v63, %v436_v62 }
  0x11   : > { %4598 = vmatpush3.bf16.msra.mxu0 %v4595_v3  ;;  %4606 = vmatpush3.bf16.msra.mxu1 %v4595_v3  ;;  %s4902_s24 = sshll.u32 %s7683_s21, 3  ;;  %s4659_s23 = smul.u32 24, %s7683_s21 }
  0x12   : > { %4600 = vmatprep.subr.bf16.mxu0 %v4599_v5  ;;  %4608 = vmatprep.subr.bf16.mxu1 %v4599_v5  ;;  %s4908_s27 = scalar_lea.vmem %s7444_s1, %s4902_s24  ;;  %s5448_s15 = scalar_lea.vmem %s7443_s0, %s4902_s24 }
  0x13   : > { %v460_v6 = vld [vmem:[%s4908_s27] sm:$0xff]  ;;  %v461_v7 = vld [vmem:[%s4908_s27 + $0x8] sm:$0xff]  ;;  %v462_v8 = vld [vmem:[%s4908_s27 + $0x10] sm:$0xff]  ;;  %s5760_s17 = scalar_lea.vmem %s7452_s9, %s4902_s24  ;;  %s4282_s24 = sshll.u32 %s7683_s21, 4 }
  0x14   : > { %879 = vrot.lane.b32.xlu1 %v460_v6, %s4821_s28  ;;  %670 = vrot.lane.b32.xlu0 %v460_v6, %s4822_s29  ;;  %v463_v9 = vld [vmem:[%s4908_s27 + $0x18] sm:$0xff]  ;;  %v464_v10 = vld [vmem:[%s4908_s27 + $0x20] sm:$0xff]  ;;  %s5893_s22 = scalar_lea.vmem %s7445_s2, %s4282_s24  ;;  %s6302_s30 = scalar_lea.vmem %s7453_s10, %s4659_s23 }
  0x15   : > { %4602 = vmatpush3.bf16.msra.mxu0 %v4599_v5  ;;  %4411 = vmatprep.mubr.msk.f32.mxu0 %vm476_vm0, %v460_v6  ;;  %v465_v11 = vld [vmem:[%s4908_s27 + $0x28] sm:$0xff]  ;;  %v466_v12 = vld [vmem:[%s4908_s27 + $0x30] sm:$0xff]  ;;  %v467_v13 = vld [vmem:[%s4908_s27 + $0x38] sm:$0xff] }
  0x16   : > { %4612 = vmatprep.subr.bf16.mxu0 %v4595_v3  ;;  %4610 = vmatpush3.bf16.msra.mxu1 %v4599_v5  ;;  %v468_v14 = vld [vmem:[%s4908_s27 + $0x40] sm:$0xff]  ;;  %v469_v15 = vld [vmem:[%s4908_s27 + $0x48] sm:$0xff]  ;;  %v470_v16 = vld [vmem:[%s4908_s27 + $0x50] sm:$0xff] }
  0x17   : > { %v471_v17 = vld [vmem:[%s4908_s27 + $0x58] sm:$0xff]  ;;  %v472_v18 = vld [vmem:[%s4908_s27 + $0x60] sm:$0xff]  ;;  %v473_v19 = vld [vmem:[%s4908_s27 + $0x68] sm:$0xff]  ;;  %4620 = vmatprep.subr.bf16.mxu1 %v4619_v60 }
  0x18   : > { %4412 = vmatmul.mubr.msk.f32.vlgmr.msra.gmra.mrb[0].mxu0 %vm476_vm0, %v461_v7  ;;  %881 = vrot.lane.b32.xlu1 %v461_v7, %s4821_s28  ;;  %v474_v20 = vld [vmem:[%s4908_s27 + $0x70] sm:$0xff]  ;;  %v475_v21 = vld [vmem:[%s4908_s27 + $0x78] sm:$0xff] }
  0x19   : > { %4414 = vmatprep.mubr.msk.f32.mxu0 %vm476_vm0, %v462_v8  ;;  %672 = vrot.lane.b32.xlu0 %v461_v7, %s4822_s29 }
  0x1a   : > { %4614 = vmatpush3.bf16.msra.mxu0 %v4595_v3 }
  0x1b   : > { %4616 = vmatprep.subr.bf16.mxu0 %v4599_v5 }
  0x1c   : > { %4415 = vmatmul.mubr.msk.f32.gmra.mrb[2].mxu0 %vm476_vm0, %v463_v9  ;;  %676 = vrot.lane.b32.xlu1 %v463_v9, %s4822_s29 }
  0x1d   : > { %4417 = vmatprep.mubr.msk.f32.mxu0 %vm476_vm0, %v464_v10  ;;  %674 = vrot.lane.b32.xlu0 %v462_v8, %s4822_s29 }
  0x1e   : > { %4618 = vmatpush3.bf16.msra.mxu0 %v4599_v5 }
  0x20   : > { %4418 = vmatmul.mubr.msk.f32.gmra.mrb[4].mxu0 %vm476_vm0, %v465_v11  ;;  %885 = vrot.lane.b32.xlu1 %v463_v9, %s4821_s28 }
  0x21   : > { %4420 = vmatprep.mubr.msk.f32.mxu0 %vm476_vm0, %v466_v12  ;;  %883 = vrot.lane.b32.xlu0 %v462_v8, %s4821_s28 }
  0x24   : > { %4421 = vmatmul.mubr.msk.f32.gmra.mrb[6].mxu0 %vm476_vm0, %v467_v13  ;;  %680 = vrot.lane.b32.xlu1 %v465_v11, %s4822_s29 }
  0x25   : > { %4423 = vmatprep.mubr.msk.f32.mxu0 %vm476_vm0, %v468_v14  ;;  %678 = vrot.lane.b32.xlu0 %v464_v10, %s4822_s29 }
  0x28   : > { %4424 = vmatmul.mubr.msk.f32.gmra.mrb[8].mxu0 %vm476_vm0, %v469_v15  ;;  %889 = vrot.lane.b32.xlu1 %v465_v11, %s4821_s28 }
  0x29   : > { %4426 = vmatprep.mubr.msk.f32.mxu0 %vm476_vm0, %v470_v16  ;;  %887 = vrot.lane.b32.xlu0 %v464_v10, %s4821_s28 }
  0x2c   : > { %4427 = vmatmul.mubr.msk.f32.gmra.mrb[10].mxu0 %vm476_vm0, %v471_v17  ;;  %684 = vrot.lane.b32.xlu1 %v467_v13, %s4822_s29 }
  0x2d   : > { %4429 = vmatprep.mubr.msk.f32.mxu0 %vm476_vm0, %v472_v18  ;;  %682 = vrot.lane.b32.xlu0 %v466_v12, %s4822_s29 }
  0x30   : > { %4430 = vmatmul.mubr.msk.f32.gmra.mrb[12].mxu0 %vm476_vm0, %v473_v19  ;;  %893 = vrot.lane.b32.xlu1 %v467_v13, %s4821_s28  ;;  %v431_v13 = vld [vmem:[%s7447_s4 + $0x8] sm:$0xff] }
  0x31   : > { %4432 = vmatprep.mubr.msk.f32.mxu0 %vm476_vm0, %v474_v20  ;;  %891 = vrot.lane.b32.xlu0 %v466_v12, %s4821_s28  ;;  %v430_v12 = vld [vmem:[%s7447_s4] sm:$0xff] }
  0x34   : > { %4433 = vmatmul.mubr.msk.f32.gmra.mrb[14].mxu0 %vm476_vm0, %v475_v21  ;;  %688 = vrot.lane.b32.xlu1 %v469_v15, %s4822_s29 }
  0x35   : > { %686 = vrot.lane.b32.xlu0 %v468_v14, %s4822_s29 }
  0x38   : > { %897 = vrot.lane.b32.xlu1 %v469_v15, %s4821_s28 }
  0x39   : > { %895 = vrot.lane.b32.xlu0 %v468_v14, %s4821_s28  ;;  %v5088_v14 = vpack.c.bf16 %v431_v13, %v430_v12 }
  0x3c   : > { %692 = vrot.lane.b32.xlu1 %v471_v17, %s4822_s29 }
  0x3d   : > { %690 = vrot.lane.b32.xlu0 %v470_v16, %s4822_s29 }
  0x40   : > { %901 = vrot.lane.b32.xlu1 %v471_v17, %s4821_s28 }
  0x41   : > { %899 = vrot.lane.b32.xlu0 %v470_v16, %s4821_s28 }
  0x44   : > { %696 = vrot.lane.b32.xlu1 %v473_v19, %s4822_s29 }
  0x45   : > { %694 = vrot.lane.b32.xlu0 %v472_v18, %s4822_s29 }
  0x48   : > { %905 = vrot.lane.b32.xlu1 %v473_v19, %s4821_s28 }
  0x49   : > { %903 = vrot.lane.b32.xlu0 %v472_v18, %s4821_s28 }
  0x4c   : > { %700 = vrot.lane.b32.xlu1 %v475_v21, %s4822_s29 }
  0x4d   : > { %698 = vrot.lane.b32.xlu0 %v474_v20, %s4822_s29 }
  0x50   : > { %909 = vrot.lane.b32.xlu1 %v475_v21, %s4821_s28 }
  0x51   : > { %907 = vrot.lane.b32.xlu0 %v474_v20, %s4821_s28 }
  0x86   : > { %v880_v22 = vpop.permute.xlu1 %879  ;;  %v671_v23 = vpop.permute.xlu0 %670 }
  0x87   : > { %4475 = vmatprep.mubr.msk.f32.mxu0 %vm476_vm0, %v880_v22  ;;  %4443 = vmatprep.mubr.msk.f32.mxu1 %vm476_vm0, %v671_v23 }
  0x8a   : > { %v882_v24 = vpop.permute.xlu1 %881 }
  0x8b   : > { %v673_v25 = vpop.permute.xlu0 %672  ;;  %4476 = vmatmul.mubr.msk.f32.vlgmr.msra.gmra.mrb[16].mxu0 %vm476_vm0, %v882_v24 }
  0x8c   : > { %4444 = vmatmul.mubr.msk.f32.vlgmr.msra.gmra.mrb[0].mxu1 %vm476_vm0, %v673_v25 }
  0x8d   : > { %4622 = vmatpush3.bf16.msra.mxu1 %v4619_v60 }
  0x8e   : > { %v677_v26 = vpop.permute.xlu1 %676  ;;  %4624 = vmatprep.subr.bf16.mxu1 %v4623_v1 }
  0x8f   : > { %v675_v27 = vpop.permute.xlu0 %674 }
  0x90   : > { %4446 = vmatprep.mubr.msk.f32.mxu1 %vm476_vm0, %v675_v27 }
  0x91   : > { %4447 = vmatmul.mubr.msk.f32.gmra.mrb[2].mxu1 %vm476_vm0, %v677_v26 }
  0x92   : > { %v886_v28 = vpop.permute.xlu1 %885  ;;  %4626 = vmatpush3.bf16.msra.mxu1 %v4623_v1 }
  0x93   : > { %v884_v29 = vpop.permute.xlu0 %883  ;;  %4628 = vmatprep.subr.bf16.mxu1 %v5088_v14 }
  0x94   : > { %4478 = vmatprep.mubr.msk.f32.mxu0 %vm476_vm0, %v884_v29 }
  0x95   : > { %4479 = vmatmul.mubr.msk.f32.gmra.mrb[18].mxu0 %vm476_vm0, %v886_v28 }
  0x96   : > { %v681_v30 = vpop.permute.xlu1 %680 }
  0x97   : > { %v679_v31 = vpop.permute.xlu0 %678 }
  0x98   : > { %4449 = vmatprep.mubr.msk.f32.mxu1 %vm476_vm0, %v679_v31 }
  0x99   : > { %4450 = vmatmul.mubr.msk.f32.gmra.mrb[4].mxu1 %vm476_vm0, %v681_v30 }
  0x9a   : > { %v890_v32 = vpop.permute.xlu1 %889 }
  0x9b   : > { %v888_v33 = vpop.permute.xlu0 %887 }
  0x9c   : > { %4481 = vmatprep.mubr.msk.f32.mxu0 %vm476_vm0, %v888_v33 }
  0x9d   : > { %4482 = vmatmul.mubr.msk.f32.gmra.mrb[20].mxu0 %vm476_vm0, %v890_v32 }
  0x9e   : > { %v685_v34 = vpop.permute.xlu1 %684 }
  0x9f   : > { %v683_v35 = vpop.permute.xlu0 %682 }
  0xa0   : > { %4452 = vmatprep.mubr.msk.f32.mxu1 %vm476_vm0, %v683_v35 }
  0xa1   : > { %4453 = vmatmul.mubr.msk.f32.gmra.mrb[6].mxu1 %vm476_vm0, %v685_v34 }
  0xa2   : > { %v894_v36 = vpop.permute.xlu1 %893 }
  0xa3   : > { %v892_v37 = vpop.permute.xlu0 %891 }
  0xa4   : > { %4484 = vmatprep.mubr.msk.f32.mxu0 %vm476_vm0, %v892_v37 }
  0xa5   : > { %4485 = vmatmul.mubr.msk.f32.gmra.mrb[22].mxu0 %vm476_vm0, %v894_v36 }
  0xa6   : > { %v689_v38 = vpop.permute.xlu1 %688 }
  0xa7   : > { %v687_v39 = vpop.permute.xlu0 %686 }
  0xa8   : > { %4455 = vmatprep.mubr.msk.f32.mxu1 %vm476_vm0, %v687_v39 }
  0xa9   : > { %4456 = vmatmul.mubr.msk.f32.gmra.mrb[8].mxu1 %vm476_vm0, %v689_v38 }
  0xaa   : > { %v898_v40 = vpop.permute.xlu1 %897 }
  0xab   : > { %v896_v41 = vpop.permute.xlu0 %895 }
  0xac   : > { %4487 = vmatprep.mubr.msk.f32.mxu0 %vm476_vm0, %v896_v41 }
  0xad   : > { %4488 = vmatmul.mubr.msk.f32.gmra.mrb[24].mxu0 %vm476_vm0, %v898_v40 }
  0xae   : > { %v693_v42 = vpop.permute.xlu1 %692 }
  0xaf   : > { %v691_v43 = vpop.permute.xlu0 %690 }
  0xb0   : > { %4458 = vmatprep.mubr.msk.f32.mxu1 %vm476_vm0, %v691_v43 }
  0xb1   : > { %4459 = vmatmul.mubr.msk.f32.gmra.mrb[10].mxu1 %vm476_vm0, %v693_v42 }
  0xb2   : > { %v902_v44 = vpop.permute.xlu1 %901 }
  0xb3   : > { %v900_v45 = vpop.permute.xlu0 %899 }
  0xb4   : > { %4490 = vmatprep.mubr.msk.f32.mxu0 %vm476_vm0, %v900_v45 }
  0xb5   : > { %4491 = vmatmul.mubr.msk.f32.gmra.mrb[26].mxu0 %vm476_vm0, %v902_v44 }
  0xb6   : > { %v697_v46 = vpop.permute.xlu1 %696 }
  0xb7   : > { %v695_v47 = vpop.permute.xlu0 %694 }
  0xb8   : > { %4461 = vmatprep.mubr.msk.f32.mxu1 %vm476_vm0, %v695_v47 }
  0xb9   : > { %4462 = vmatmul.mubr.msk.f32.gmra.mrb[12].mxu1 %vm476_vm0, %v697_v46 }
  0xba   : > { %v906_v48 = vpop.permute.xlu1 %905 }
  0xbb   : > { %v904_v49 = vpop.permute.xlu0 %903 }
  0xbc   : > { %4493 = vmatprep.mubr.msk.f32.mxu0 %vm476_vm0, %v904_v49 }
  0xbd   : > { %4494 = vmatmul.mubr.msk.f32.gmra.mrb[28].mxu0 %vm476_vm0, %v906_v48 }
  0xbe   : > { %v701_v50 = vpop.permute.xlu1 %700 }
  0xbf   : > { %v699_v51 = vpop.permute.xlu0 %698 }
  0xc0   : > { %4464 = vmatprep.mubr.msk.f32.mxu1 %vm476_vm0, %v699_v51 }
  0xc1   : > { %4465 = vmatmul.mubr.msk.f32.gmra.mrb[14].mxu1 %vm476_vm0, %v701_v50 }
  0xc2   : > { %v910_v52 = vpop.permute.xlu1 %909 }
  0xc3   : > { %v908_v53 = vpop.permute.xlu0 %907 }
  0xc4   : > { %4496 = vmatprep.mubr.msk.f32.mxu0 %vm476_vm0, %v908_v53 }
  0xc5   : > { %4497 = vmatmul.mubr.msk.f32.gmra.mrb[30].mxu0 %vm476_vm0, %v910_v52 }
  0xeb   : > { %v5006_v54 = vpop.f32.mrb[0].mxu0 }
  0xec   : > { %2033 = vrot.lane.b32.xlu1 %v5006_v54, %s4822_s29  ;;  %v5010_v55 = vpop.f32.mrb[1].mxu0  ;;  %v1089_v18 = vmul.f32 %v5006_v54, %v5006_v54 }
  0xed   : > { %2031 = vrot.lane.b32.xlu0 %v5010_v55, %s4822_s29  ;;  %v1088_v22 = vmul.f32 %v5010_v55, %v5010_v55 }
  0xef   : > { %v5014_v56 = vpop.f32.mrb[2].mxu0 }
  0xf0   : > { %2037 = vrot.lane.b32.xlu1 %v5014_v56, %s4822_s29  ;;  %v5024_v59 = vpop.f32.mrb[3].mxu0  ;;  %v1091_v29 = vmul.f32 %v5014_v56, %v5014_v56 }
  0xf1   : > { %2035 = vrot.lane.b32.xlu0 %v5024_v59, %s4822_s29  ;;  %v1090_v33 = vmul.f32 %v5024_v59, %v5024_v59 }
  0xf3   : > { %v5028_v61 = vpop.f32.mrb[4].mxu0 }
  0xf4   : > { %2041 = vrot.lane.b32.xlu1 %v5028_v61, %s4822_s29  ;;  %v5038_v0 = vpop.f32.mrb[5].mxu0  ;;  %v1093_v46 = vmul.f32 %v5028_v61, %v5028_v61 }
  0xf5   : > { %2039 = vrot.lane.b32.xlu0 %v5038_v0, %s4822_s29  ;;  %v1092_v50 = vmul.f32 %v5038_v0, %v5038_v0 }
  0xf7   : > { %v5042_v2 = vpop.f32.mrb[6].mxu0 }
  0xf8   : > { %2045 = vrot.lane.b32.xlu1 %v5042_v2, %s4822_s29  ;;  %v5046_v3 = vpop.f32.mrb[7].mxu0  ;;  %v1095_v1 = vmul.f32 %v5042_v2, %v5042_v2 }
  0xf9   : > { %2043 = vrot.lane.b32.xlu0 %v5046_v3, %s4822_s29 }
  0xfb   : > { %v5050_v4 = vpop.f32.mrb[8].mxu0 }
  0xfc   : > { %2049 = vrot.lane.b32.xlu1 %v5050_v4, %s4822_s29  ;;  %v5054_v5 = vpop.f32.mrb[9].mxu0 }
  0xfd   : > { %2047 = vrot.lane.b32.xlu0 %v5054_v5, %s4822_s29 }
  0xff   : > { %v5058_v6 = vpop.f32.mrb[10].mxu0 }
 0x100   : > { %2053 = vrot.lane.b32.xlu1 %v5058_v6, %s4822_s29  ;;  %v5062_v7 = vpop.f32.mrb[11].mxu0 }
 0x101   : > { %2051 = vrot.lane.b32.xlu0 %v5062_v7, %s4822_s29 }
 0x103   : > { %v5066_v8 = vpop.f32.mrb[12].mxu0 }
 0x104   : > { %7512 = vst [vmem:[#allocation2_spill] sm:$0xff] %v5066_v8  ;;  %2057 = vrot.lane.b32.xlu1 %v5066_v8, %s4822_s29  ;;  %v5070_v9 = vpop.f32.mrb[13].mxu0 }
 0x105   : > { %7513 = vst [vmem:[#allocation3_spill] sm:$0xff] %v5070_v9  ;;  %2055 = vrot.lane.b32.xlu0 %v5070_v9, %s4822_s29 }
 0x107   : > { %v5074_v10 = vpop.f32.mrb[14].mxu0 }
 0x108   : > { %7514 = vst [vmem:[#allocation4_spill] sm:$0xff] %v5074_v10  ;;  %2061 = vrot.lane.b32.xlu1 %v5074_v10, %s4822_s29  ;;  %v5078_v11 = vpop.f32.mrb[15].mxu0 }
 0x109   : > { %7515 = vst [vmem:[#allocation5_spill] sm:$0xff] %v5078_v11  ;;  %2059 = vrot.lane.b32.xlu0 %v5078_v11, %s4822_s29 }
 0x15e   : > { %v5091_v15 = vpop.f32.mrb[16].mxu0 }
 0x15f   : > { %v5093_v16 = vpop.f32.mrb[0].mxu1  ;;  %v5095_v17 = vpop.f32.mrb[17].mxu0  ;;  %v1137_v20 = vmul.f32 %v5091_v15, %v5091_v15 }
 0x160   : > { %7516 = vst [vmem:[#allocation6_spill] sm:$0xff] %v5093_v16  ;;  %v1105_v19 = vmul.f32 %v5093_v16, %v5093_v16  ;;  %v5103_v21 = vpop.f32.mrb[1].mxu1  ;;  %2113 = vrot.lane.b32.xlu1 %v5093_v16, %s4822_s29  ;;  %v1136_v26 = vmul.f32 %v5095_v17, %v5095_v17 }
 0x161   : > { %v1104_v23 = vmul.f32 %v5103_v21, %v5103_v21  ;;  %2111 = vrot.lane.b32.xlu0 %v5103_v21, %s4822_s29 }
 0x162   : > { %v1121_v24 = vadd.f32 %v1105_v19, %v1089_v18  ;;  %v1094_v18 = vmul.f32 %v5046_v3, %v5046_v3 }
 0x163   : > { %v1120_v25 = vadd.f32 %v1104_v23, %v1088_v22 }
 0x164   : > { %v1153_v27 = vadd.f32 %v1137_v20, %v1121_v24  ;;  %v5115_v28 = vpop.f32.mrb[2].mxu1  ;;  %2209 = vrot.lane.b32.xlu1 %v5091_v15, %s4822_s29 }
 0x165   : > { %v1152_v30 = vadd.f32 %v1136_v26, %v1120_v25  ;;  %v1107_v31 = vmul.f32 %v5115_v28, %v5115_v28  ;;  %v5123_v32 = vpop.f32.mrb[3].mxu1  ;;  %2207 = vrot.lane.b32.xlu0 %v5095_v17, %s4822_s29  ;;  %v432_v25 = vld [vmem:[%s7447_s4 + $0x10] sm:$0xff]  ;;  %v433_v26 = vld [vmem:[%s7447_s4 + $0x18] sm:$0xff] }
 0x166   : > { %v5129_v34 = vadd.f32 1e-08, %v1153_v27  ;;  %v1106_v35 = vmul.f32 %v5123_v32, %v5123_v32 }
 0x167   : > { %v1168_v36 = vadd.f32 1e-08, %v1152_v30  ;;  %v1123_v37 = vadd.f32 %v1107_v31, %v1091_v29 }
 0x168   : > { %v1122_v38 = vadd.f32 %v1106_v35, %v1090_v33  ;;  %2117 = vrot.lane.b32.xlu1 %v5115_v28, %s4822_s29  ;;  %v5135_v39 = vpop.f32.mrb[18].mxu0  ;;  %4671 = vrsqrt.f32 %v5129_v34  ;;  %vm1193_vm1 = vcmp.eq.f32.partialorder %v5129_v34, inf  ;;  %vm1195_vm4 = vcmp.eq.f32.partialorder %v5129_v34, 0.0 }
 0x169   : > { %v1139_v40 = vmul.f32 %v5135_v39, %v5135_v39  ;;  %2115 = vrot.lane.b32.xlu0 %v5123_v32, %s4822_s29  ;;  %v5142_v41 = vpop.f32.mrb[19].mxu0  ;;  %4673 = vrsqrt.f32 %v1168_v36  ;;  %vm1186_vm2 = vcmp.eq.f32.partialorder %v1168_v36, inf  ;;  %vm1188_vm3 = vcmp.eq.f32.partialorder %v1168_v36, 0.0 }
 0x16a   : > { %v1138_v42 = vmul.f32 %v5142_v41, %v5142_v41  ;;  %v1189_v31 = vand.u32 2147483648, %v1168_v36 }
 0x16b   : > { %v1155_v43 = vadd.f32 %v1139_v40, %v1123_v37  ;;  %v1196_v40 = vand.u32 2147483648, %v5129_v34 }
 0x16c   : > { %v1154_v44 = vadd.f32 %v1138_v42, %v1122_v38  ;;  %v5146_v45 = vpop.f32.mrb[4].mxu1  ;;  %2213 = vrot.lane.b32.xlu1 %v5135_v39, %s4822_s29 }
 0x16d   : > { %v5152_v47 = vadd.f32 1e-08, %v1155_v43  ;;  %v1109_v48 = vmul.f32 %v5146_v45, %v5146_v45  ;;  %v5156_v49 = vpop.f32.mrb[5].mxu1  ;;  %2211 = vrot.lane.b32.xlu0 %v5142_v41, %s4822_s29 }
 0x16e   : > { %v5162_v51 = vadd.f32 1e-08, %v1154_v44  ;;  %v1108_v52 = vmul.f32 %v5156_v49, %v5156_v49  ;;  %v4631_v44 = vpack.c.bf16 %v433_v26, %v432_v25 }
 0x16f   : > { %v1125_v53 = vadd.f32 %v1109_v48, %v1093_v46  ;;  %4675 = vrsqrt.f32 %v5152_v47  ;;  %vm1207_vm6 = vcmp.eq.f32.partialorder %v5152_v47, inf  ;;  %vm1209_vm8 = vcmp.eq.f32.partialorder %v5152_v47, 0.0 }
 0x170   : > { %v1124_v57 = vadd.f32 %v1108_v52, %v1092_v50  ;;  %2121 = vrot.lane.b32.xlu1 %v5146_v45, %s4822_s29  ;;  %v5169_v58 = vpop.f32.mrb[20].mxu0  ;;  %4677 = vrsqrt.f32 %v5162_v51  ;;  %vm1200_vm5 = vcmp.eq.f32.partialorder %v5162_v51, inf  ;;  %vm1202_vm7 = vcmp.eq.f32.partialorder %v5162_v51, 0.0 }
 0x171   : > { %v1141_v60 = vmul.f32 %v5169_v58, %v5169_v58  ;;  %2119 = vrot.lane.b32.xlu0 %v5156_v49, %s4822_s29  ;;  %v5176_v62 = vpop.f32.mrb[21].mxu0 }
 0x172   : > { %v4672_v63 = vpop.eup %4671  ;;  %v1140_v12 = vmul.f32 %v5176_v62, %v5176_v62 }
 0x173   : > { %v4674_v13 = vpop.eup %4673  ;;  %v1157_v19 = vadd.f32 %v1141_v60, %v1125_v53  ;;  %v1192_v20 = vmul.f32 %v4672_v63, %v5129_v34  ;;  %v1096_v60 = vmul.f32 %v5054_v5, %v5054_v5 }
 0x174   : > { %v1156_v22 = vadd.f32 %v1140_v12, %v1124_v57  ;;  %v5186_v23 = vpop.f32.mrb[6].mxu1  ;;  %2217 = vrot.lane.b32.xlu1 %v5169_v58, %s4822_s29  ;;  %v1185_v24 = vmul.f32 %v4674_v13, %v1168_v36  ;;  %v1097_v57 = vmul.f32 %v5050_v4, %v5050_v4 }
 0x175   : > { %v5196_v27 = vadd.f32 1e-08, %v1157_v19  ;;  %v1111_v29 = vmul.f32 %v5186_v23, %v5186_v23  ;;  %v5200_v30 = vpop.f32.mrb[7].mxu1  ;;  %2215 = vrot.lane.b32.xlu0 %v5176_v62, %s4822_s29  ;;  %v1194_v33 = vsel %vm1193_vm1, %v5129_v34, %v1192_v20  ;;  %v1203_v20 = vand.u32 2147483648, %v5162_v51 }
 0x176   : > { %v5205_v35 = vadd.f32 1e-08, %v1156_v22  ;;  %v1110_v37 = vmul.f32 %v5200_v30, %v5200_v30  ;;  %v1187_v38 = vsel %vm1186_vm2, %v1168_v36, %v1185_v24  ;;  %v1197_v50 = vsel %vm1195_vm4, %v1196_v40, %v1194_v33 }
 0x177   : > { %v1127_v42 = vadd.f32 %v1111_v29, %v1095_v1  ;;  %v1190_v43 = vsel %vm1188_vm3, %v1189_v31, %v1187_v38  ;;  %v1210_v29 = vand.u32 2147483648, %v5152_v47  ;;  %vm1221_vm11 = vcmp.eq.f32.partialorder %v5196_v27, inf }
 0x178   : > { %v1126_v46 = vadd.f32 %v1110_v37, %v1094_v18  ;;  %4507 = vmatprep.mubr.msk.f32.mxu1 %vm476_vm0, %v1190_v43  ;;  %2125 = vrot.lane.b32.xlu1 %v5186_v23, %s4822_s29  ;;  %v5214_v48 = vpop.f32.mrb[22].mxu0  ;;  %4679 = vrsqrt.f32 %v5205_v35  ;;  %vm1214_vm9 = vcmp.eq.f32.partialorder %v5205_v35, inf  ;;  %vm1216_vm10 = vcmp.eq.f32.partialorder %v5205_v35, 0.0 }
 0x179   : > { %v4676_v52 = vpop.eup %4675  ;;  %v1143_v36 = vmul.f32 %v5214_v48, %v5214_v48  ;;  %4508 = vmatmul.mubr.msk.f32.vlgmr.msra.gmra.mrb[16].mxu1 %vm476_vm0, %v1197_v50  ;;  %2123 = vrot.lane.b32.xlu0 %v5200_v30, %s4822_s29  ;;  %v5222_v34 = vpop.f32.mrb[23].mxu0  ;;  %4681 = vrsqrt.f32 %v5196_v27  ;;  %v1098_v50 = vmul.f32 %v5062_v7, %v5062_v7  ;;  %vm1223_vm12 = vcmp.eq.f32.partialorder %v5196_v27, 0.0 }
 0x17a   : > { %v4678_v53 = vpop.eup %4677  ;;  %v1142_v63 = vmul.f32 %v5222_v34, %v5222_v34  ;;  %v1206_v1 = vmul.f32 %v4676_v52, %v5152_v47  ;;  %4630 = vmatpush3.bf16.msra.mxu1 %v5088_v14 }
 0x17b   : > { %v1159_v12 = vadd.f32 %v1143_v36, %v1127_v42  ;;  %v1199_v13 = vmul.f32 %v4678_v53, %v5162_v51  ;;  %4632 = vmatprep.subr.bf16.mxu1 %v4631_v44 }
 0x17c   : > { %v1158_v18 = vadd.f32 %v1142_v63, %v1126_v46  ;;  %v5236_v19 = vpop.f32.mrb[8].mxu1  ;;  %2221 = vrot.lane.b32.xlu1 %v5214_v48, %s4822_s29  ;;  %v1208_v14 = vsel %vm1207_vm6, %v5152_v47, %v1206_v1  ;;  %v1099_v46 = vmul.f32 %v5058_v6, %v5058_v6 }
 0x17d   : > { %v5243_v22 = vadd.f32 1e-08, %v1159_v12  ;;  %v1113_v24 = vmul.f32 %v5236_v19, %v5236_v19  ;;  %v5247_v25 = vpop.f32.mrb[9].mxu1  ;;  %2219 = vrot.lane.b32.xlu0 %v5222_v34, %s4822_s29  ;;  %v1201_v26 = vsel %vm1200_vm5, %v5162_v51, %v1199_v13  ;;  %v1211_v40 = vsel %vm1209_vm8, %v1210_v29, %v1208_v14 }
 0x17e   : > { %v5253_v31 = vadd.f32 1e-08, %v1158_v18  ;;  %v1112_v33 = vmul.f32 %v5247_v25, %v5247_v25  ;;  %v1204_v37 = vsel %vm1202_vm7, %v1203_v20, %v1201_v26  ;;  %4634 = vmatpush3.bf16.msra.mxu1 %v4631_v44 }
 0x17f   : > { %v1129_v38 = vadd.f32 %v1113_v24, %v1097_v57  ;;  %4510 = vmatprep.mubr.msk.f32.mxu1 %vm476_vm0, %v1204_v37  ;;  %4683 = vrsqrt.f32 %v5243_v22  ;;  %v1224_v24 = vand.u32 2147483648, %v5196_v27  ;;  %vm1235_vm14 = vcmp.eq.f32.partialorder %v5243_v22, inf }
 0x180   : > { %v1128_v42 = vadd.f32 %v1112_v33, %v1096_v60  ;;  %4511 = vmatmul.mubr.msk.f32.gmra.mrb[18].mxu1 %vm476_vm0, %v1211_v40  ;;  %2129 = vrot.lane.b32.xlu1 %v5236_v19, %s4822_s29  ;;  %v5263_v51 = vpop.f32.mrb[24].mxu0  ;;  %4685 = vrsqrt.f32 %v5253_v31  ;;  %v1217_v60 = vand.u32 2147483648, %v5205_v35  ;;  %vm1228_vm13 = vcmp.eq.f32.partialorder %v5253_v31, inf }
 0x181   : > { %v1145_v47 = vmul.f32 %v5263_v51, %v5263_v51  ;;  %2127 = vrot.lane.b32.xlu0 %v5247_v25, %s4822_s29  ;;  %v5270_v43 = vpop.f32.mrb[25].mxu0  ;;  %vm1230_vm15 = vcmp.eq.f32.partialorder %v5253_v31, 0.0  ;;  %vm1237_vm1 = vcmp.eq.f32.partialorder %v5243_v22, 0.0 }
 0x182   : > { %v4680_v44 = vpop.eup %4679  ;;  %v1144_v52 = vmul.f32 %v5270_v43, %v5270_v43 }
 0x183   : > { %v4682_v36 = vpop.eup %4681  ;;  %v1161_v53 = vadd.f32 %v1145_v47, %v1129_v38  ;;  %v1213_v57 = vmul.f32 %v4680_v44, %v5205_v35 }
 0x184   : > { %v1160_v63 = vadd.f32 %v1144_v52, %v1128_v42  ;;  %v5282_v1 = vpop.f32.mrb[10].mxu1  ;;  %2225 = vrot.lane.b32.xlu1 %v5263_v51, %s4822_s29  ;;  %v1220_v12 = vmul.f32 %v4682_v36, %v5196_v27  ;;  %v1100_v52 = vmul.f32 %v5070_v9, %v5070_v9 }
 0x185   : > { %7517 = vst [vmem:[#allocation7_spill] sm:$0xff] %v5282_v1  ;;  %v5289_v13 = vadd.f32 1e-08, %v1161_v53  ;;  %v1115_v18 = vmul.f32 %v5282_v1, %v5282_v1  ;;  %v5293_v20 = vpop.f32.mrb[11].mxu1  ;;  %2223 = vrot.lane.b32.xlu0 %v5270_v43, %s4822_s29  ;;  %v1215_v14 = vsel %vm1214_vm9, %v5205_v35, %v1213_v57 }
 0x186   : > { %7518 = vst [vmem:[#allocation8_spill] sm:$0xff] %v5293_v20  ;;  %v5301_v26 = vadd.f32 1e-08, %v1160_v63  ;;  %v1114_v29 = vmul.f32 %v5293_v20, %v5293_v20  ;;  %v1218_v33 = vsel %vm1216_vm10, %v1217_v60, %v1215_v14  ;;  %v1222_v37 = vsel %vm1221_vm11, %v5196_v27, %v1220_v12 }
 0x187   : > { %v1131_v38 = vadd.f32 %v1115_v18, %v1099_v46  ;;  %4513 = vmatprep.mubr.msk.f32.mxu1 %vm476_vm0, %v1218_v33  ;;  %v1225_v40 = vsel %vm1223_vm12, %v1224_v24, %v1222_v37  ;;  %4687 = vrsqrt.f32 %v5289_v13  ;;  %v1231_v18 = vand.u32 2147483648, %v5253_v31 }
 0x188   : > { %v1130_v42 = vadd.f32 %v1114_v29, %v1098_v50  ;;  %4514 = vmatmul.mubr.msk.f32.gmra.mrb[20].mxu1 %vm476_vm0, %v1225_v40  ;;  %2133 = vrot.lane.b32.xlu1 %v5282_v1, %s4822_s29  ;;  %v5313_v47 = vpop.f32.mrb[26].mxu0  ;;  %4689 = vrsqrt.f32 %v5301_v26  ;;  %v1101_v50 = vmul.f32 %v5066_v8, %v5066_v8  ;;  %vm1242_vm2 = vcmp.eq.f32.partialorder %v5301_v26, inf }
 0x189   : > { %v4684_v35 = vpop.eup %4683  ;;  %v1147_v27 = vmul.f32 %v5313_v47, %v5313_v47  ;;  %2131 = vrot.lane.b32.xlu0 %v5293_v20, %s4822_s29  ;;  %v5320_v44 = vpop.f32.mrb[27].mxu0  ;;  %vm1249_vm3 = vcmp.eq.f32.partialorder %v5289_v13, inf  ;;  %vm1244_vm4 = vcmp.eq.f32.partialorder %v5301_v26, 0.0  ;;  %vm1251_vm5 = vcmp.eq.f32.partialorder %v5289_v13, 0.0 }
 0x18a   : > { %7519 = vst [vmem:[#allocation9_spill] sm:$0xff] %v5320_v44  ;;  %v4686_v46 = vpop.eup %4685  ;;  %v1146_v36 = vmul.f32 %v5320_v44, %v5320_v44  ;;  %v1234_v53 = vmul.f32 %v4684_v35, %v5243_v22 }
 0x18b   : > { %v1163_v57 = vadd.f32 %v1147_v27, %v1131_v38  ;;  %v1227_v60 = vmul.f32 %v4686_v46, %v5253_v31  ;;  %v1238_v38 = vand.u32 2147483648, %v5243_v22 }
 0x18c   : > { %v1162_v63 = vadd.f32 %v1146_v36, %v1130_v42  ;;  %v5332_v12 = vpop.f32.mrb[12].mxu1  ;;  %2229 = vrot.lane.b32.xlu1 %v5313_v47, %s4822_s29  ;;  %v1236_v14 = vsel %vm1235_vm14, %v5243_v22, %v1234_v53 }
 0x18d   : > { %7520 = vst [vmem:[#allocation10_spill] sm:$0xff] %v5332_v12  ;;  %v5339_v24 = vadd.f32 1e-08, %v1163_v57  ;;  %v1117_v29 = vmul.f32 %v5332_v12, %v5332_v12  ;;  %v5343_v33 = vpop.f32.mrb[13].mxu1  ;;  %2227 = vrot.lane.b32.xlu0 %v5320_v44, %s4822_s29  ;;  %v1229_v37 = vsel %vm1228_vm13, %v5253_v31, %v1227_v60  ;;  %v1239_v46 = vsel %vm1237_vm1, %v1238_v38, %v1236_v14 }
 0x18e   : > { %7521 = vst [vmem:[#allocation11_spill] sm:$0xff] %v5343_v33  ;;  %v5349_v40 = vadd.f32 1e-08, %v1162_v63  ;;  %v1116_v42 = vmul.f32 %v5343_v33, %v5343_v33  ;;  %v1232_v35 = vsel %vm1230_vm15, %v1231_v18, %v1229_v37  ;;  %v1102_v60 = vmul.f32 %v5078_v11, %v5078_v11 }
 0x18f   : > { %v1133_v27 = vadd.f32 %v1117_v29, %v1101_v50  ;;  %4516 = vmatprep.mubr.msk.f32.mxu1 %vm476_vm0, %v1232_v35  ;;  %4691 = vrsqrt.f32 %v5339_v24  ;;  %vm1263_vm6 = vcmp.eq.f32.partialorder %v5339_v24, inf  ;;  %vm1265_vm9 = vcmp.eq.f32.partialorder %v5339_v24, 0.0 }
 0x190   : > { %v1132_v36 = vadd.f32 %v1116_v42, %v1100_v52  ;;  %4517 = vmatmul.mubr.msk.f32.gmra.mrb[22].mxu1 %vm476_vm0, %v1239_v46  ;;  %2137 = vrot.lane.b32.xlu1 %v5332_v12, %s4822_s29  ;;  %v5359_v31 = vpop.f32.mrb[28].mxu0  ;;  %4693 = vrsqrt.f32 %v5349_v40  ;;  %v1103_v52 = vmul.f32 %v5074_v10, %v5074_v10  ;;  %v1245_v42 = vand.u32 2147483648, %v5301_v26 }
 0x191   : > { %7522 = vst [vmem:[#allocation12_spill] sm:$0xff] %v5359_v31  ;;  %v4688_v53 = vpop.eup %4687  ;;  %v1149_v22 = vmul.f32 %v5359_v31, %v5359_v31  ;;  %2135 = vrot.lane.b32.xlu0 %v5343_v33, %s4822_s29  ;;  %v5366_v50 = vpop.f32.mrb[29].mxu0  ;;  %vm1256_vm7 = vcmp.eq.f32.partialorder %v5349_v40, inf  ;;  %vm1258_vm8 = vcmp.eq.f32.partialorder %v5349_v40, 0.0 }
 0x192   : > { %7523 = vst [vmem:[#allocation13_spill] sm:$0xff] %v5366_v50  ;;  %v4690_v57 = vpop.eup %4689  ;;  %v1148_v63 = vmul.f32 %v5366_v50, %v5366_v50  ;;  %v1248_v18 = vmul.f32 %v4688_v53, %v5289_v13 }
 0x193   : > { %v1165_v14 = vadd.f32 %v1149_v22, %v1133_v27  ;;  %v1241_v29 = vmul.f32 %v4690_v57, %v5301_v26  ;;  %v1252_v22 = vand.u32 2147483648, %v5289_v13 }
 0x194   : > { %v1164_v37 = vadd.f32 %v1148_v63, %v1132_v36  ;;  %v5378_v38 = vpop.f32.mrb[14].mxu1  ;;  %2233 = vrot.lane.b32.xlu1 %v5359_v31, %s4822_s29  ;;  %v1250_v35 = vsel %vm1249_vm3, %v5289_v13, %v1248_v18  ;;  %vm2543_vm3 = vcmask 523520  }
 0x195   : > { %7524 = vst [vmem:[#allocation14_spill] sm:$0xff] %v5378_v38  ;;  %v5385_v46 = vadd.f32 1e-08, %v1165_v14  ;;  %v1119_v27 = vmul.f32 %v5378_v38, %v5378_v38  ;;  %v5389_v53 = vpop.f32.mrb[15].mxu1  ;;  %2231 = vrot.lane.b32.xlu0 %v5366_v50, %s4822_s29  ;;  %v1243_v36 = vsel %vm1242_vm2, %v5301_v26, %v1241_v29  ;;  %v1253_v14 = vsel %vm1251_vm5, %v1252_v22, %v1250_v35 }
 0x196   : > { %7525 = vst [vmem:[#allocation15_spill] sm:$0xff] %v5389_v53  ;;  %v1180_v57 = vadd.f32 1e-08, %v1164_v37  ;;  %v1118_v63 = vmul.f32 %v5389_v53, %v5389_v53  ;;  %v1246_v11 = vsel %vm1244_vm4, %v1245_v42, %v1243_v36  ;;  %v1259_v36 = vand.u32 2147483648, %v5349_v40 }
 0x197   : > { %v1135_v18 = vadd.f32 %v1119_v27, %v1103_v52  ;;  %4519 = vmatprep.mubr.msk.f32.mxu1 %vm476_vm0, %v1246_v11  ;;  %4695 = vrsqrt.f32 %v5385_v46  ;;  %vm1277_vm10 = vcmp.eq.f32.partialorder %v5385_v46, inf  ;;  %vm1279_vm13 = vcmp.eq.f32.partialorder %v5385_v46, 0.0 }
 0x198   : > { %v1134_v10 = vadd.f32 %v1118_v63, %v1102_v60  ;;  %4520 = vmatmul.mubr.msk.f32.gmra.mrb[24].mxu1 %vm476_vm0, %v1253_v14  ;;  %2141 = vrot.lane.b32.xlu1 %v5378_v38, %s4822_s29  ;;  %v5403_v26 = vpop.f32.mrb[30].mxu0  ;;  %4697 = vrsqrt.f32 %v1180_v57  ;;  %v1266_v14 = vand.u32 2147483648, %v5339_v24  ;;  %vm1270_vm11 = vcmp.eq.f32.partialorder %v1180_v57, inf }
 0x199   : > { %7526 = vst [vmem:[#allocation16_spill] sm:$0xff] %v5403_v26  ;;  %v4692_v29 = vpop.eup %4691  ;;  %v1151_v37 = vmul.f32 %v5403_v26, %v5403_v26  ;;  %2139 = vrot.lane.b32.xlu0 %v5389_v53, %s4822_s29  ;;  %v5409_v11 = vpop.f32.mrb[31].mxu0  ;;  %vm1272_vm12 = vcmp.eq.f32.partialorder %v1180_v57, 0.0  ;;  %vm2976_vm4 = vcmask 785920   ;;  %vm3121_vm5 = vcmask 1048320  }
 0x19a   : > { %7527 = vst [vmem:[#allocation17_spill] sm:$0xff] %v5409_v11  ;;  %v4694_v13 = vpop.eup %4693  ;;  %v1150_v52 = vmul.f32 %v5409_v11, %v5409_v11  ;;  %v1262_v60 = vmul.f32 %v4692_v29, %v5339_v24 }
 0x19b   : > { %v1167_v42 = vadd.f32 %v1151_v37, %v1135_v18  ;;  %v1255_v35 = vmul.f32 %v4694_v13, %v5349_v40 }
 0x19c   : > { %v1166_v27 = vadd.f32 %v1150_v52, %v1134_v10  ;;  %2237 = vrot.lane.b32.xlu1 %v5403_v26, %s4822_s29  ;;  %v1264_v22 = vsel %vm1263_vm6, %v5339_v24, %v1262_v60 }
 0x19d   : > { %v1183_v63 = vadd.f32 1e-08, %v1167_v42  ;;  %2235 = vrot.lane.b32.xlu0 %v5409_v11, %s4822_s29  ;;  %v1257_v18 = vsel %vm1256_vm7, %v5349_v40, %v1255_v35  ;;  %v1267_v37 = vsel %vm1265_vm9, %v1266_v14, %v1264_v22  ;;  %v5431_v40 = vpop.permute.xlu1 %2033  ;;  %v1273_v35 = vand.u32 2147483648, %v1180_v57 }
 0x19e   : > { %v1182_v10 = vadd.f32 1e-08, %v1166_v27  ;;  %v1260_v29 = vsel %vm1258_vm8, %v1259_v36, %v1257_v18  ;;  %v5434_v27 = vpop.permute.xlu0 %2031  ;;  %v1280_v22 = vand.u32 2147483648, %v5385_v46  ;;  %v2080_v53 = vmul.f32 %v5006_v54, %v5431_v40 }
 0x19f   : > { %4522 = vmatprep.mubr.msk.f32.mxu1 %vm476_vm0, %v1260_v29  ;;  %4699 = vrsqrt.f32 %v1183_v63  ;;  %vm1291_vm14 = vcmp.eq.f32.partialorder %v1183_v63, inf  ;;  %vm1293_vm2 = vcmp.eq.f32.partialorder %v1183_v63, 0.0 }
 0x1a0   : > { %4523 = vmatmul.mubr.msk.f32.gmra.mrb[26].mxu1 %vm476_vm0, %v1267_v37  ;;  %4701 = vrsqrt.f32 %v1182_v10  ;;  %vm1284_vm15 = vcmp.eq.f32.partialorder %v1182_v10, inf  ;;  %vm1286_vm1 = vcmp.eq.f32.partialorder %v1182_v10, 0.0 }
 0x1a1   : > { %v4696_v13 = vpop.eup %4695 }
 0x1a2   : > { %v4698_v52 = vpop.eup %4697  ;;  %v1276_v60 = vmul.f32 %v4696_v13, %v5385_v46  ;;  %v5440_v13 = vpop.permute.xlu1 %2037 }
 0x1a3   : > { %v1269_v42 = vmul.f32 %v4698_v52, %v1180_v57  ;;  %v2082_v40 = vmul.f32 %v5014_v56, %v5440_v13 }
 0x1a4   : > { %v1278_v24 = vsel %vm1277_vm10, %v5385_v46, %v1276_v60  ;;  %v5442_v60 = vpop.permute.xlu0 %2035  ;;  %v1287_v46 = vand.u32 2147483648, %v1182_v10 }
 0x1a5   : > { %v1271_v36 = vsel %vm1270_vm11, %v1180_v57, %v1269_v42  ;;  %v1281_v14 = vsel %vm1279_vm13, %v1280_v22, %v1278_v24 }
 0x1a6   : > { %v1274_v18 = vsel %vm1272_vm12, %v1273_v35, %v1271_v36  ;;  %v1294_v35 = vand.u32 2147483648, %v1183_v63  ;;  %v5451_v36 = vld [vmem:[%s5448_s15] sm:$0xff] }
 0x1a7   : > { %4525 = vmatprep.mubr.msk.f32.mxu1 %vm476_vm0, %v1274_v18  ;;  %7528 = vst [vmem:[#allocation18_spill] sm:$0xff] %v5451_v36  ;;  %v5454_v18 = vpop.permute.xlu1 %2041 }
 0x1a8   : > { %4526 = vmatmul.mubr.msk.f32.gmra.mrb[28].mxu1 %vm476_vm0, %v1281_v14  ;;  %v5457_v14 = vpop.permute.xlu0 %2039 }
 0x1a9   : > { %v4700_v29 = vpop.eup %4699 }
 0x1aa   : > { %v4702_v37 = vpop.eup %4701  ;;  %v1290_v52 = vmul.f32 %v4700_v29, %v1183_v63 }
 0x1ab   : > { %v1283_v11 = vmul.f32 %v4702_v37, %v1182_v10  ;;  %v5474_v29 = vpop.permute.xlu1 %2045  ;;  %v5477_v37 = vld [vmem:[%s5448_s15 + $0x20] sm:$0xff] }
 0x1ac   : > { %v1292_v57 = vsel %vm1291_vm14, %v1183_v63, %v1290_v52  ;;  %v5465_v63 = vld [vmem:[%s5448_s15 + $0x10] sm:$0xff]  ;;  %7532 = vst [vmem:[#allocation22_spill] sm:$0xff] %v5477_v37  ;;  %v5479_v52 = vpop.permute.xlu0 %2043 }
 0x1ad   : > { %v1285_v42 = vsel %vm1284_vm15, %v1182_v10, %v1283_v11  ;;  %v1295_v22 = vsel %vm1293_vm2, %v1294_v35, %v1292_v57  ;;  %v5462_v11 = vld [vmem:[%s5448_s15 + $0x8] sm:$0xff]  ;;  %7530 = vst [vmem:[#allocation20_spill] sm:$0xff] %v5465_v63  ;;  %v5472_v10 = vld [vmem:[%s5448_s15 + $0x18] sm:$0xff]  ;;  %v5489_v57 = vld [vmem:[%s5448_s15 + $0x30] sm:$0xff] }
 0x1ae   : > { %v1288_v24 = vsel %vm1286_vm1, %v1287_v46, %v1285_v42  ;;  %7529 = vst [vmem:[#allocation19_spill] sm:$0xff] %v5462_v11  ;;  %7531 = vst [vmem:[#allocation21_spill] sm:$0xff] %v5472_v10  ;;  %v5486_v46 = vld [vmem:[%s5448_s15 + $0x28] sm:$0xff] }
 0x1af   : > { %4528 = vmatprep.mubr.msk.f32.mxu1 %vm476_vm0, %v1288_v24  ;;  %7533 = vst [vmem:[#allocation23_spill] sm:$0xff] %v5486_v46  ;;  %7534 = vst [vmem:[#allocation24_spill] sm:$0xff] %v5489_v57  ;;  %v5491_v42 = vpop.permute.xlu1 %2049  ;;  %v5500_v24 = vld [vmem:[%s5448_s15 + $0x38] sm:$0xff] }
 0x1b0   : > { %4529 = vmatmul.mubr.msk.f32.gmra.mrb[30].mxu1 %vm476_vm0, %v1295_v22  ;;  %v5495_v35 = vpop.permute.xlu0 %2047  ;;  %7535 = vst [vmem:[#allocation25_spill] sm:$0xff] %v5500_v24  ;;  %v5503_v22 = vld [vmem:[%s5448_s15 + $0x40] sm:$0xff] }
 0x1b1   : > { %4539 = vmatprep.mubr.msk.f32.mxu1 %vm476_vm0, %v5451_v36  ;;  %7536 = vst [vmem:[#allocation26_spill] sm:$0xff] %v5503_v22 }
 0x1b4   : > { %4540 = vmatmul.mubr.msk.f32.vlgmr.msra.gmra.mrb[16].mxu1 %vm476_vm0, %v5462_v11  ;;  %v5538_v11 = vld [vmem:[%s5448_s15 + $0x68] sm:$0xff] }
 0x1b5   : > { %4542 = vmatprep.mubr.msk.f32.mxu1 %vm476_vm0, %v5465_v63  ;;  %v5515_v63 = vld [vmem:[%s5448_s15 + $0x50] sm:$0xff]  ;;  %7542 = vst [vmem:[#allocation32_spill] sm:$0xff] %v5538_v11 }
 0x1b6   : > { %7538 = vst [vmem:[#allocation28_spill] sm:$0xff] %v5515_v63 }
 0x1b8   : > { %4543 = vmatmul.mubr.msk.f32.gmra.mrb[18].mxu1 %vm476_vm0, %v5472_v10  ;;  %v5524_v10 = vld [vmem:[%s5448_s15 + $0x58] sm:$0xff] }
 0x1b9   : > { %4545 = vmatprep.mubr.msk.f32.mxu1 %vm476_vm0, %v5477_v37  ;;  %v5510_v37 = vld [vmem:[%s5448_s15 + $0x48] sm:$0xff]  ;;  %7539 = vst [vmem:[#allocation29_spill] sm:$0xff] %v5524_v10 }
 0x1ba   : > { %7537 = vst [vmem:[#allocation27_spill] sm:$0xff] %v5510_v37 }
 0x1bc   : > { %4546 = vmatmul.mubr.msk.f32.gmra.mrb[20].mxu1 %vm476_vm0, %v5486_v46  ;;  %v5512_v46 = vpop.permute.xlu1 %2053 }
 0x1bd   : > { %4548 = vmatprep.mubr.msk.f32.mxu1 %vm476_vm0, %v5489_v57  ;;  %v5517_v57 = vpop.permute.xlu0 %2051 }
 0x1c0   : > { %4549 = vmatmul.mubr.msk.f32.gmra.mrb[22].mxu1 %vm476_vm0, %v5500_v24  ;;  %v5527_v24 = vld [vmem:[%s5448_s15 + $0x60] sm:$0xff] }
 0x1c1   : > { %4551 = vmatprep.mubr.msk.f32.mxu1 %vm476_vm0, %v5503_v22  ;;  %7540 = vst [vmem:[#allocation30_spill] sm:$0xff] %v5527_v24  ;;  %v5529_v22 = vpop.permute.xlu1 %2057  ;;  %v5533_v36 = vpop.permute.xlu0 %2055 }
 0x1c2   : > { %7541 = vst [vmem:[#allocation31_spill] sm:$0xff] %v5533_v36 }
 0x1c4   : > { %4552 = vmatmul.mubr.msk.f32.gmra.mrb[24].mxu1 %vm476_vm0, %v5510_v37  ;;  %v5541_v37 = vld [vmem:[%s5448_s15 + $0x70] sm:$0xff] }
 0x1c5   : > { %4554 = vmatprep.mubr.msk.f32.mxu1 %vm476_vm0, %v5515_v63  ;;  %7543 = vst [vmem:[#allocation33_spill] sm:$0xff] %v5541_v37  ;;  %v5548_v63 = vld [vmem:[%s5448_s15 + $0x78] sm:$0xff]  ;;  %v5550_v26 = vpop.permute.xlu1 %2061 }
 0x1c6   : > { %7544 = vst [vmem:[#allocation34_spill] sm:$0xff] %v5548_v63  ;;  %7545 = vst [vmem:[#allocation35_spill] sm:$0xff] %v5550_v26 }
 0x1c8   : > { %4555 = vmatmul.mubr.msk.f32.gmra.mrb[26].mxu1 %vm476_vm0, %v5524_v10  ;;  %v5552_v10 = vpop.permute.xlu0 %2059 }
 0x1c9   : > { %4557 = vmatprep.mubr.msk.f32.mxu1 %vm476_vm0, %v5527_v24  ;;  %7546 = vst [vmem:[#allocation36_spill] sm:$0xff] %v5552_v10 }
 0x1cc   : > { %4558 = vmatmul.mubr.msk.f32.gmra.mrb[28].mxu1 %vm476_vm0, %v5538_v11  ;;  %v2079_v11 = vmul.f32 %v5434_v27, %v5010_v55 }
 0x1cd   : > { %4560 = vmatprep.mubr.msk.f32.mxu1 %vm476_vm0, %v5541_v37 }
 0x1d0   : > { %4561 = vmatmul.mubr.msk.f32.gmra.mrb[30].mxu1 %vm476_vm0, %v5548_v63 }
 0x1d2   : > { %v2114_v24 = vpop.permute.xlu1 %2113 }
 0x1d3   : > { %v2160_v38 = vmul.f32 %v5093_v16, %v2114_v24  ;;  %v2112_v50 = vpop.permute.xlu0 %2111 }
 0x1d4   : > { %v2159_v37 = vmul.f32 %v2112_v50, %v5103_v21  ;;  %v2081_v50 = vmul.f32 %v5442_v60, %v5024_v59 }
 0x1d5   : > { %v2176_v31 = vadd.f32 %v2160_v38, %v2080_v53 }
 0x1d6   : > { %v2175_v33 = vadd.f32 %v2159_v37, %v2079_v11  ;;  %v2210_v26 = vpop.permute.xlu1 %2209 }
 0x1d7   : > { %v2256_v10 = vmul.f32 %v5091_v15, %v2210_v26  ;;  %v2208_v36 = vpop.permute.xlu0 %2207 }
 0x1d8   : > { %v2255_v63 = vmul.f32 %v2208_v36, %v5095_v17 }
 0x1d9   : > { %v2272_v9 = vadd.f32 %v2256_v10, %v2176_v31 }
 0x1da   : > { %v2271_v12 = vadd.f32 %v2255_v63, %v2175_v33  ;;  %v2118_v8 = vpop.permute.xlu1 %2117 }
 0x1db   : > { %v2162_v24 = vmul.f32 %v5115_v28, %v2118_v8  ;;  %v2116_v16 = vpop.permute.xlu0 %2115  ;;  %2321 = vrot.lane.b32.xlu1 %v2272_v9, %s4821_s28  ;;  %v2084_v9 = vmul.f32 %v5028_v61, %v5454_v18 }
 0x1dc   : > { %v2161_v38 = vmul.f32 %v2116_v16, %v5123_v32  ;;  %2319 = vrot.lane.b32.xlu0 %v2271_v12, %s4821_s28  ;;  %v2083_v16 = vmul.f32 %v5457_v14, %v5038_v0 }
 0x1dd   : > { %v2178_v53 = vadd.f32 %v2162_v24, %v2082_v40 }
 0x1de   : > { %v2177_v26 = vadd.f32 %v2161_v38, %v2081_v50  ;;  %v2214_v31 = vpop.permute.xlu1 %2213 }
 0x1df   : > { %v2258_v33 = vmul.f32 %v5135_v39, %v2214_v31  ;;  %v2212_v27 = vpop.permute.xlu0 %2211  ;;  %v2086_v31 = vmul.f32 %v5042_v2, %v5474_v29 }
 0x1e0   : > { %v2257_v13 = vmul.f32 %v2212_v27, %v5142_v41  ;;  %v2085_v27 = vmul.f32 %v5479_v52, %v5046_v3 }
 0x1e1   : > { %v2274_v36 = vadd.f32 %v2258_v33, %v2178_v53 }
 0x1e2   : > { %v2273_v8 = vadd.f32 %v2257_v13, %v2177_v26  ;;  %v2122_v11 = vpop.permute.xlu1 %2121 }
 0x1e3   : > { %v2164_v60 = vmul.f32 %v5146_v45, %v2122_v11  ;;  %v2120_v63 = vpop.permute.xlu0 %2119  ;;  %2325 = vrot.lane.b32.xlu1 %v2274_v36, %s4821_s28 }
 0x1e4   : > { %v2163_v12 = vmul.f32 %v2120_v63, %v5156_v49  ;;  %2323 = vrot.lane.b32.xlu0 %v2273_v8, %s4821_s28 }
 0x1e5   : > { %v2180_v10 = vadd.f32 %v2164_v60, %v2084_v9 }
 0x1e6   : > { %v2179_v37 = vadd.f32 %v2163_v12, %v2083_v16  ;;  %v2218_v40 = vpop.permute.xlu1 %2217 }
 0x1e7   : > { %v2260_v24 = vmul.f32 %v5169_v58, %v2218_v40  ;;  %v2216_v50 = vpop.permute.xlu0 %2215  ;;  %v2087_v40 = vmul.f32 %v5495_v35, %v5054_v5 }
 0x1e8   : > { %v2259_v18 = vmul.f32 %v2216_v50, %v5176_v62 }
 0x1e9   : > { %v2276_v38 = vadd.f32 %v2260_v24, %v2180_v10  ;;  %v2088_v10 = vmul.f32 %v5050_v4, %v5491_v42 }
 0x1ea   : > { %v2275_v53 = vadd.f32 %v2259_v18, %v2179_v37  ;;  %v2126_v26 = vpop.permute.xlu1 %2125 }
 0x1eb   : > { %v2166_v14 = vmul.f32 %v5186_v23, %v2126_v26  ;;  %v2124_v33 = vpop.permute.xlu0 %2123  ;;  %2329 = vrot.lane.b32.xlu1 %v2276_v38, %s4821_s28 }
 0x1ec   : > { %v2165_v13 = vmul.f32 %v2124_v33, %v5200_v30  ;;  %2327 = vrot.lane.b32.xlu0 %v2275_v53, %s4821_s28 }
 0x1ed   : > { %v2182_v36 = vadd.f32 %v2166_v14, %v2086_v31 }
 0x1ee   : > { %v2181_v8 = vadd.f32 %v2165_v13, %v2085_v27  ;;  %v2222_v11 = vpop.permute.xlu1 %2221  ;;  %v2090_v27 = vmul.f32 %v5058_v6, %v5512_v46 }
 0x1ef   : > { %v2262_v9 = vmul.f32 %v5214_v48, %v2222_v11  ;;  %v2220_v60 = vpop.permute.xlu0 %2219 }
 0x1f0   : > { %v2261_v29 = vmul.f32 %v2220_v60, %v5222_v34 }
 0x1f1   : > { %v2278_v63 = vadd.f32 %v2262_v9, %v2182_v36  ;;  %v2089_v36 = vmul.f32 %v5517_v57, %v5062_v7 }
 0x1f2   : > { %v2277_v16 = vadd.f32 %v2261_v29, %v2181_v8  ;;  %v2130_v12 = vpop.permute.xlu1 %2129 }
 0x1f3   : > { %v2168_v52 = vmul.f32 %v5236_v19, %v2130_v12  ;;  %v2128_v37 = vpop.permute.xlu0 %2127  ;;  %2333 = vrot.lane.b32.xlu1 %v2278_v63, %s4821_s28 }
 0x1f4   : > { %v2167_v24 = vmul.f32 %v2128_v37, %v5247_v25  ;;  %2331 = vrot.lane.b32.xlu0 %v2277_v16, %s4821_s28 }
 0x1f5   : > { %v2184_v50 = vadd.f32 %v2168_v52, %v2088_v10  ;;  %v7547_v52 = vld [vmem:[#allocation2_spill] sm:$0xff] }
 0x1f6   : > { %v2183_v18 = vadd.f32 %v2167_v24, %v2087_v40  ;;  %v2226_v38 = vpop.permute.xlu1 %2225  ;;  %v2092_v37 = vmul.f32 %v7547_v52, %v5529_v22  ;;  %v7548_v40 = vld [vmem:[#allocation10_spill] sm:$0xff] }
 0x1f7   : > { %v2264_v53 = vmul.f32 %v5263_v51, %v2226_v38  ;;  %v2224_v26 = vpop.permute.xlu0 %2223 }
 0x1f8   : > { %v2263_v42 = vmul.f32 %v2224_v26, %v5270_v43 }
 0x1f9   : > { %v2280_v31 = vadd.f32 %v2264_v53, %v2184_v50  ;;  %v7549_v50 = vld [vmem:[#allocation3_spill] sm:$0xff] }
 0x1fa   : > { %v2279_v14 = vadd.f32 %v2263_v42, %v2183_v18  ;;  %v2134_v33 = vpop.permute.xlu1 %2133  ;;  %v7550_v18 = vld [vmem:[#allocation31_spill] sm:$0xff] }
 0x1fb   : > { %v2170_v35 = vmul.f32 %v5282_v1, %v2134_v33  ;;  %v2132_v13 = vpop.permute.xlu0 %2131  ;;  %2337 = vrot.lane.b32.xlu1 %v2280_v31, %s4821_s28  ;;  %v2091_v38 = vmul.f32 %v7550_v18, %v7549_v50  ;;  %v7551_v53 = vld [vmem:[#allocation11_spill] sm:$0xff]  ;;  %v7552_v33 = vld [vmem:[#allocation12_spill] sm:$0xff] }
 0x1fc   : > { %v2169_v8 = vmul.f32 %v2132_v13, %v5293_v20  ;;  %2335 = vrot.lane.b32.xlu0 %v2279_v14, %s4821_s28  ;;  %v7553_v13 = vld [vmem:[#allocation13_spill] sm:$0xff] }
 0x1fd   : > { %v2186_v11 = vadd.f32 %v2170_v35, %v2090_v27 }
 0x1fe   : > { %v2185_v9 = vadd.f32 %v2169_v8, %v2089_v36  ;;  %v2230_v60 = vpop.permute.xlu1 %2229 }
 0x1ff   : > { %v2266_v29 = vmul.f32 %v5313_v47, %v2230_v60  ;;  %v2228_v63 = vpop.permute.xlu0 %2227  ;;  %v7555_v60 = vld [vmem:[#allocation4_spill] sm:$0xff] }
 0x200   : > { %v2265_v46 = vmul.f32 %v2228_v63, %v5320_v44  ;;  %v7556_v63 = vld [vmem:[#allocation14_spill] sm:$0xff] }
 0x201   : > { %v2282_v16 = vadd.f32 %v2266_v29, %v2186_v11 }
 0x202   : > { %v2281_v12 = vadd.f32 %v2265_v46, %v2185_v9  ;;  %v2138_v10 = vpop.permute.xlu1 %2137  ;;  %v7554_v9 = vld [vmem:[#allocation35_spill] sm:$0xff] }
 0x203   : > { %v2172_v57 = vmul.f32 %v7548_v40, %v2138_v10  ;;  %v2136_v24 = vpop.permute.xlu0 %2135  ;;  %2341 = vrot.lane.b32.xlu1 %v2282_v16, %s4821_s28  ;;  %v2094_v29 = vmul.f32 %v7555_v60, %v7554_v9  ;;  %v7558_v10 = vld [vmem:[#allocation36_spill] sm:$0xff] }
 0x204   : > { %v2171_v26 = vmul.f32 %v2136_v24, %v7551_v53  ;;  %2339 = vrot.lane.b32.xlu0 %v2281_v12, %s4821_s28  ;;  %v7557_v12 = vld [vmem:[#allocation5_spill] sm:$0xff] }
 0x205   : > { %v2188_v42 = vadd.f32 %v2172_v57, %v2092_v37  ;;  %v2093_v37 = vmul.f32 %v7558_v10, %v7557_v12  ;;  %v7559_v57 = vld [vmem:[#allocation15_spill] sm:$0xff]  ;;  %v5651_v10 = vld [vmem:[%s7449_s6] ss:$0 sm:$0xff] }
 0x206   : > { %v2187_v31 = vadd.f32 %v2171_v26, %v2091_v38  ;;  %v2234_v14 = vpop.permute.xlu1 %2233 }
 0x207   : > { %v2268_v27 = vmul.f32 %v7552_v33, %v2234_v14  ;;  %v2232_v35 = vpop.permute.xlu0 %2231 }
 0x208   : > { %v2267_v22 = vmul.f32 %v2232_v35, %v7553_v13 }
 0x209   : > { %v2284_v36 = vadd.f32 %v2268_v27, %v2188_v42  ;;  %v7560_v42 = vld [vmem:[#allocation16_spill] sm:$0xff]  ;;  %v7561_v27 = vld [vmem:[#allocation17_spill] sm:$0xff] }
 0x20a   : > { %v2283_v8 = vadd.f32 %v2267_v22, %v2187_v31  ;;  %v2142_v11 = vpop.permute.xlu1 %2141 }
 0x20b   : > { %v2174_v46 = vmul.f32 %v7556_v63, %v2142_v11  ;;  %v2140_v16 = vpop.permute.xlu0 %2139  ;;  %2345 = vrot.lane.b32.xlu1 %v2284_v36, %s4821_s28  ;;  %v439_v36 = vld [vmem:[%s7450_s7] sm:$0xff] }
 0x20c   : > { %v2173_v24 = vmul.f32 %v2140_v16, %v7559_v57  ;;  %2343 = vrot.lane.b32.xlu0 %v2283_v8, %s4821_s28  ;;  %v440_v8 = vld [vmem:[%s7450_s7 + $0x8] sm:$0xff] }
 0x20d   : > { %v2190_v18 = vadd.f32 %v2174_v46, %v2094_v29  ;;  %v4635_v9 = vpack.c.bf16 %v440_v8, %v439_v36  ;;  %v441_v29 = vld [vmem:[%s7450_s7 + $0x10] sm:$0xff]  ;;  %v442_v46 = vld [vmem:[%s7450_s7 + $0x18] sm:$0xff] }
 0x20e   : > { %v2189_v38 = vadd.f32 %v2173_v24, %v2093_v37  ;;  %v2238_v26 = vpop.permute.xlu1 %2237  ;;  %v4639_v16 = vpack.c.bf16 %v442_v46, %v441_v29 }
 0x20f   : > { %v2270_v31 = vmul.f32 %v7560_v42, %v2238_v26  ;;  %v2236_v14 = vpop.permute.xlu0 %2235  ;;  %4636 = vmatprep.subr.bf16.mxu0 %v4635_v9 }
 0x210   : > { %v2269_v35 = vmul.f32 %v2236_v14, %v7561_v27  ;;  %4638 = vmatpush3.bf16.msra.mxu0 %v4635_v9 }
 0x211   : > { %v2286_v22 = vadd.f32 %v2270_v31, %v2190_v18  ;;  %4640 = vmatprep.subr.bf16.mxu0 %v4639_v16 }
 0x212   : > { %v2285_v11 = vadd.f32 %v2269_v35, %v2189_v38 }
 0x213   : > { %2349 = vrot.lane.b32.xlu1 %v2286_v22, %s4821_s28 }
 0x214   : > { %2347 = vrot.lane.b32.xlu0 %v2285_v11, %s4821_s28  ;;  %4642 = vmatpush3.bf16.msra.mxu0 %v4639_v16 }
 0x287   : > { %v4541_v37 = vpop.f32.mrb[16].mxu1 }
 0x288   : > { %v5654_v24 = vadd.f32 %v4541_v37, %v5651_v10  ;;  %v1603_v18 = vpop.f32.mrb[17].mxu1 }
 0x289   : > { %v5657_v38 = vadd.f32 %v5651_v10, %v1603_v18 }
 0x28a   : > { %v4248_v26 = vmul.f32 -1.442695, %v5654_v24 }
 0x28b   : > { %v4247_v31 = vmul.f32 -1.442695, %v5657_v38  ;;  %v4544_v14 = vpop.f32.mrb[18].mxu1 }
 0x28c   : > { %4703 = vpow2.f32 %v4248_v26  ;;  %v5662_v35 = vadd.f32 %v4544_v14, %v5651_v10  ;;  %v1613_v22 = vpop.f32.mrb[19].mxu1 }
 0x28d   : > { %4705 = vpow2.f32 %v4247_v31  ;;  %v5665_v11 = vadd.f32 %v5651_v10, %v1613_v22 }
 0x28e   : > { %v4250_v36 = vmul.f32 -1.442695, %v5662_v35 }
 0x28f   : > { %v4249_v8 = vmul.f32 -1.442695, %v5665_v11  ;;  %v4547_v9 = vpop.f32.mrb[20].mxu1 }
 0x290   : > { %4707 = vpow2.f32 %v4250_v36  ;;  %v5670_v29 = vadd.f32 %v4547_v9, %v5651_v10  ;;  %v1623_v46 = vpop.f32.mrb[21].mxu1 }
 0x291   : > { %4709 = vpow2.f32 %v4249_v8  ;;  %v5673_v16 = vadd.f32 %v5651_v10, %v1623_v46 }
 0x292   : > { %v4252_v37 = vmul.f32 -1.442695, %v5670_v29 }
 0x293   : > { %v4251_v18 = vmul.f32 -1.442695, %v5673_v16  ;;  %v4550_v26 = vpop.f32.mrb[22].mxu1 }
 0x294   : > { %4711 = vpow2.f32 %v4252_v37  ;;  %v5678_v31 = vadd.f32 %v4550_v26, %v5651_v10  ;;  %v1633_v14 = vpop.f32.mrb[23].mxu1 }
 0x295   : > { %4713 = vpow2.f32 %v4251_v18  ;;  %v5681_v22 = vadd.f32 %v5651_v10, %v1633_v14 }
 0x296   : > { %v4704_v36 = vpop.eup %4703  ;;  %v4254_v8 = vmul.f32 -1.442695, %v5678_v31 }
 0x297   : > { %v4706_v9 = vpop.eup %4705  ;;  %v1753_v46 = vadd.f32 1.0, %v4704_v36  ;;  %v4253_v57 = vmul.f32 -1.442695, %v5681_v22  ;;  %v4553_v63 = vpop.f32.mrb[24].mxu1 }
 0x298   : > { %v1752_v27 = vadd.f32 1.0, %v4706_v9  ;;  %4715 = vpow2.f32 %v4254_v8  ;;  %v5686_v37 = vadd.f32 %v4553_v63, %v5651_v10  ;;  %v1643_v26 = vpop.f32.mrb[25].mxu1 }
 0x299   : > { %4717 = vrcp.f32 %v1753_v46  ;;  %v5689_v18 = vadd.f32 %v5651_v10, %v1643_v26 }
 0x29a   : > { %v4708_v14 = vpop.eup %4707  ;;  %4719 = vrcp.f32 %v1752_v27  ;;  %v4256_v42 = vmul.f32 -1.442695, %v5686_v37 }
 0x29b   : > { %v4710_v12 = vpop.eup %4709  ;;  %v1755_v60 = vadd.f32 1.0, %v4708_v14  ;;  %4721 = vpow2.f32 %v4253_v57  ;;  %v4255_v36 = vmul.f32 -1.442695, %v5689_v18  ;;  %v4556_v53 = vpop.f32.mrb[26].mxu1 }
 0x29c   : > { %v1754_v9 = vadd.f32 1.0, %v4710_v12  ;;  %4723 = vpow2.f32 %v4256_v42  ;;  %v5694_v63 = vadd.f32 %v4556_v53, %v5651_v10  ;;  %v1653_v8 = vpop.f32.mrb[27].mxu1 }
 0x29d   : > { %4725 = vrcp.f32 %v1755_v60  ;;  %v5697_v46 = vadd.f32 %v5651_v10, %v1653_v8 }
 0x29e   : > { %v4712_v26 = vpop.eup %4711  ;;  %4727 = vrcp.f32 %v1754_v9  ;;  %v4258_v27 = vmul.f32 -1.442695, %v5694_v63 }
 0x29f   : > { %v4714_v40 = vpop.eup %4713  ;;  %v1757_v14 = vadd.f32 1.0, %v4712_v26  ;;  %4729 = vpow2.f32 %v4255_v36  ;;  %v4257_v57 = vmul.f32 -1.442695, %v5697_v46  ;;  %v4559_v13 = vpop.f32.mrb[28].mxu1 }
 0x2a0   : > { %v1756_v12 = vadd.f32 1.0, %v4714_v40  ;;  %4731 = vpow2.f32 %v4258_v27  ;;  %v5702_v53 = vadd.f32 %v4559_v13, %v5651_v10  ;;  %v1663_v42 = vpop.f32.mrb[29].mxu1 }
 0x2a1   : > { %4733 = vrcp.f32 %v1757_v14  ;;  %v5705_v60 = vadd.f32 %v5651_v10, %v1663_v42 }
 0x2a2   : > { %v4716_v8 = vpop.eup %4715  ;;  %4735 = vrcp.f32 %v1756_v12  ;;  %v4260_v9 = vmul.f32 -1.442695, %v5702_v53 }
 0x2a3   : > { %v4718_v33 = vpop.eup %4717  ;;  %v1759_v26 = vadd.f32 1.0, %v4716_v8  ;;  %4737 = vpow2.f32 %v4257_v57  ;;  %v4259_v36 = vmul.f32 -1.442695, %v5705_v60  ;;  %v4562_v50 = vpop.f32.mrb[30].mxu1 }
 0x2a4   : > { %v4720_v40 = vpop.eup %4719  ;;  %4739 = vpow2.f32 %v4260_v9  ;;  %v5710_v13 = vadd.f32 %v4562_v50, %v5651_v10  ;;  %v1673_v27 = vpop.f32.mrb[31].mxu1  ;;  %v1801_v20 = vmul.f32 %v4718_v33, %v5654_v24 }
 0x2a5   : > { %v4722_v14 = vpop.eup %4721  ;;  %v1800_v42 = vmul.f32 %v4720_v40, %v5657_v38  ;;  %v5714_v52 = vadd.f32 %v5651_v10, %v1673_v27  ;;  %4741 = vpow2.f32 %v4259_v36 }
 0x2a6   : > { %v4724_v12 = vpop.eup %4723  ;;  %v1758_v8 = vadd.f32 1.0, %v4722_v14  ;;  %v4262_v57 = vmul.f32 -1.442695, %v5710_v13  ;;  %4743 = vrcp.f32 %v1759_v26 }
 0x2a7   : > { %v4726_v1 = vpop.eup %4725  ;;  %v1761_v9 = vadd.f32 1.0, %v4724_v12  ;;  %v4261_v50 = vmul.f32 -1.442695, %v5714_v52  ;;  %4571 = vmatprep.mubr.msk.f32.mxu0 %vm476_vm0, %v1800_v42 }
 0x2a8   : > { %v4728_v44 = vpop.eup %4727  ;;  %4745 = vrcp.f32 %v1758_v8  ;;  %4572 = vmatmul.mubr.msk.f32.vlgmr.msra.gmra.mrb[32].mxu0 %vm476_vm0, %v1801_v20  ;;  %v1803_v24 = vmul.f32 %v4726_v1, %v5662_v35 }
 0x2a9   : > { %v4730_v10 = vpop.eup %4729  ;;  %v1802_v38 = vmul.f32 %v4728_v44, %v5665_v11  ;;  %4747 = vrcp.f32 %v1761_v9 }
 0x2aa   : > { %v4732_v33 = vpop.eup %4731  ;;  %v1760_v36 = vadd.f32 1.0, %v4730_v10  ;;  %4749 = vpow2.f32 %v4262_v57 }
 0x2ab   : > { %v4734_v40 = vpop.eup %4733  ;;  %v1763_v26 = vadd.f32 1.0, %v4732_v33  ;;  %4751 = vpow2.f32 %v4261_v50  ;;  %4574 = vmatprep.mubr.msk.f32.mxu0 %vm476_vm0, %v1802_v38 }
 0x2ac   : > { %v4736_v27 = vpop.eup %4735  ;;  %4753 = vrcp.f32 %v1760_v36  ;;  %4575 = vmatmul.mubr.msk.f32.gmra.mrb[34].mxu0 %vm476_vm0, %v1803_v24  ;;  %v1805_v44 = vmul.f32 %v4734_v40, %v5670_v29 }
 0x2ad   : > { %v4738_v14 = vpop.eup %4737  ;;  %v1804_v20 = vmul.f32 %v4736_v27, %v5673_v16  ;;  %4755 = vrcp.f32 %v1763_v26 }
 0x2ae   : > { %v4740_v42 = vpop.eup %4739  ;;  %v1762_v11 = vadd.f32 1.0, %v4738_v14 }
 0x2af   : > { %v1765_v1 = vadd.f32 1.0, %v4740_v42  ;;  %4577 = vmatprep.mubr.msk.f32.mxu0 %vm476_vm0, %v1804_v20  ;;  %v4742_v35 = vpop.eup %4741 }
 0x2b0   : > { %4757 = vrcp.f32 %v1762_v11  ;;  %4578 = vmatmul.mubr.msk.f32.gmra.mrb[36].mxu0 %vm476_vm0, %v1805_v44  ;;  %v4744_v12 = vpop.eup %4743  ;;  %v1764_v8 = vadd.f32 1.0, %v4742_v35  ;;  %v2322_v35 = vpop.permute.xlu1 %2321 }
 0x2b1   : > { %4759 = vrcp.f32 %v1765_v1  ;;  %v1807_v29 = vmul.f32 %v4744_v12, %v5678_v31 }
 0x2b2   : > { %v4746_v57 = vpop.eup %4745  ;;  %4761 = vrcp.f32 %v1764_v8 }
 0x2b3   : > { %v4748_v9 = vpop.eup %4747  ;;  %v1806_v50 = vmul.f32 %v4746_v57, %v5681_v22  ;;  %v7562_v57 = vld [vmem:[#allocation19_spill] sm:$0xff] }
 0x2b4   : > { %v4750_v16 = vpop.eup %4749  ;;  %v1809_v40 = vmul.f32 %v4748_v9, %v5686_v37 }
 0x2b5   : > { %v4752_v10 = vpop.eup %4751  ;;  %v1767_v38 = vadd.f32 1.0, %v4750_v16  ;;  %4580 = vmatprep.mubr.msk.f32.mxu0 %vm476_vm0, %v1806_v50 }
 0x2b6   : > { %v4754_v33 = vpop.eup %4753  ;;  %v1766_v24 = vadd.f32 1.0, %v4752_v10  ;;  %4581 = vmatmul.mubr.msk.f32.gmra.mrb[38].mxu0 %vm476_vm0, %v1807_v29 }
 0x2b7   : > { %v1808_v36 = vmul.f32 %v4754_v33, %v5689_v18  ;;  %4763 = vrcp.f32 %v1767_v38  ;;  %v4756_v26 = vpop.eup %4755  ;;  %v7563_v38 = vld [vmem:[#allocation18_spill] sm:$0xff] }
 0x2b8   : > { %4765 = vrcp.f32 %v1766_v24  ;;  %v1811_v14 = vmul.f32 %v4756_v26, %v5694_v63 }
 0x2b9   : > { %4583 = vmatprep.mubr.msk.f32.mxu0 %vm476_vm0, %v1808_v36 }
 0x2ba   : > { %v4758_v22 = vpop.eup %4757  ;;  %4584 = vmatmul.mubr.msk.f32.gmra.mrb[40].mxu0 %vm476_vm0, %v1809_v40  ;;  %v7564_v40 = vld [vmem:[#allocation6_spill] sm:$0xff] }
 0x2bb   : > { %v1810_v31 = vmul.f32 %v4758_v22, %v5697_v46  ;;  %v4760_v27 = vpop.eup %4759 }
 0x2bc   : > { %v4762_v20 = vpop.eup %4761  ;;  %v1813_v37 = vmul.f32 %v4760_v27, %v5702_v53 }
 0x2bd   : > { %4586 = vmatprep.mubr.msk.f32.mxu0 %vm476_vm0, %v1810_v31  ;;  %v1812_v18 = vmul.f32 %v4762_v20, %v5705_v60  ;;  %v5752_v60 = vld [vmem:[%s7451_s8] ss:$0 sm:$0xff] }
 0x2be   : > { %4587 = vmatmul.mubr.msk.f32.gmra.mrb[42].mxu0 %vm476_vm0, %v1811_v14  ;;  %v7565_v14 = vld [vmem:[#allocation21_spill] sm:$0xff] }
 0x2bf   : > { %4589 = vmatprep.mubr.msk.f32.mxu0 %vm476_vm0, %v1812_v18  ;;  %v7566_v18 = vld [vmem:[#allocation20_spill] sm:$0xff] }
 0x2c1   : > { %v4764_v42 = vpop.eup %4763 }
 0x2c2   : > { %v4766_v44 = vpop.eup %4765  ;;  %4590 = vmatmul.mubr.msk.f32.gmra.mrb[44].mxu0 %vm476_vm0, %v1813_v37  ;;  %v1815_v63 = vmul.f32 %v4764_v42, %v5710_v13 }
 0x2c3   : > { %v1814_v46 = vmul.f32 %v4766_v44, %v5714_v52  ;;  %v2320_v52 = vpop.permute.xlu0 %2319 }
 0x2c5   : > { %4592 = vmatprep.mubr.msk.f32.mxu0 %vm476_vm0, %v1814_v46 }
 0x2c6   : > { %4593 = vmatmul.mubr.msk.f32.gmra.mrb[46].mxu0 %vm476_vm0, %v1815_v63 }
 0x37b   : > { %v4573_v53 = vpop.f32.mrb[32].mxu0 }
 0x37c   : > { %v1942_v11 = vadd.f32 %v4573_v53, %v5752_v60  ;;  %v1936_v1 = vpop.f32.mrb[33].mxu0 }
 0x37d   : > { %v1937_v12 = vadd.f32 %v5752_v60, %v1936_v1 }
 0x37e   : > { %v2368_v13 = vmul.f32 %v2322_v35, %v1942_v11  ;;  %v2593_v8 = vmul.f32 %v5006_v54, %v1942_v11  ;;  %v5764_v9 = vadd.f32 %v1942_v11, %v7562_v57  ;;  %v3571_v50 = vmul.f32 %v5091_v15, %v1942_v11  ;;  %v7569_v57 = vld [vmem:[#allocation25_spill] sm:$0xff] }
 0x37f   : > { %v4576_v16 = vpop.f32.mrb[34].mxu0  ;;  %v2367_v29 = vmul.f32 %v2320_v52, %v1937_v12  ;;  %v2592_v10 = vmul.f32 %v1937_v12, %v5010_v55  ;;  %v5769_v33 = vadd.f32 %v1937_v12, %v7563_v38  ;;  %v3570_v24 = vmul.f32 %v1937_v12, %v5095_v17 }
 0x380   : > { %v5773_v36 = vadd.f32 %v4576_v16, %v5752_v60  ;;  %2401 = vrot.lane.b32.xlu1 %v2368_v13, %s4821_s28  ;;  %v1946_v54 = vpop.f32.mrb[35].mxu0  ;;  %v3026_v26 = vmul.f32 %v7564_v40, %v1942_v11  ;;  %v3025_v22 = vmul.f32 %v1937_v12, %v5103_v21  ;;  %2464 = vst.msk [vmem:[%s5760_s17 + $0x8] sm:$0xff] %vm476_vm0, %v5764_v9  ;;  %v7570_v16 = vld [vmem:[#allocation24_spill] sm:$0xff]  ;;  %v3555_v40 = vld [vmem:[%s5893_s22 + $0x18] sm:$0xff] }
 0x381   : > { %v5782_v55 = vadd.f32 %v5752_v60, %v1946_v54  ;;  %2399 = vrot.lane.b32.xlu0 %v2367_v29, %s4821_s28  ;;  %2463 = vst.msk [vmem:[%s5760_s17] sm:$0xff] %vm476_vm0, %v5769_v33 }
 0x382   : > { %v5790_v15 = vmul.f32 %v5014_v56, %v5773_v36  ;;  %v5802_v20 = vadd.f32 %v5773_v36, %v7565_v14  ;;  %v5810_v37 = vmul.f32 %v5135_v39, %v5773_v36  ;;  %v5822_v44 = vmul.f32 %v5115_v28, %v5773_v36 }
 0x383   : > { %v4579_v17 = vpop.f32.mrb[36].mxu0  ;;  %v5794_v21 = vmul.f32 %v5782_v55, %v5024_v59  ;;  %v5806_v56 = vadd.f32 %v5782_v55, %v7566_v18  ;;  %v5818_v42 = vmul.f32 %v5782_v55, %v5142_v41  ;;  %v5826_v46 = vmul.f32 %v5782_v55, %v5123_v32  ;;  %v7567_v32 = vld [vmem:[#allocation23_spill] sm:$0xff]  ;;  %v7568_v41 = vld [vmem:[#allocation22_spill] sm:$0xff] }
 0x384   : > { %v5797_v31 = vadd.f32 %v4579_v17, %v5752_v60  ;;  %2626 = vrot.lane.b32.xlu1 %v2593_v8, %s4822_s29  ;;  %v1956_v27 = vpop.f32.mrb[37].mxu0  ;;  %2466 = vst.msk [vmem:[%s5760_s17 + $0x18] sm:$0xff] %vm476_vm0, %v5802_v20  ;;  %v3554_v17 = vld [vmem:[%s5893_s22 + $0x8] sm:$0xff]  ;;  %v3683_v18 = vmul.f32 %v3555_v40, %v5764_v9 }
 0x385   : > { %v5813_v59 = vadd.f32 %v5752_v60, %v1956_v27  ;;  %2624 = vrot.lane.b32.xlu0 %v2592_v10, %s4822_s29  ;;  %2465 = vst.msk [vmem:[%s5760_s17 + $0x10] sm:$0xff] %vm476_vm0, %v5806_v56 }
 0x386   : > { %v5830_v39 = vmul.f32 %v5028_v61, %v5797_v31  ;;  %v5846_v61 = vadd.f32 %v5797_v31, %v7567_v32  ;;  %v5865_v1 = vmul.f32 %v5146_v45, %v5797_v31  ;;  %v5887_v45 = vld [vmem:[%s4908_s27] sm:$0xff]  ;;  %v3682_v32 = vmul.f32 %v3554_v17, %v5769_v33 }
 0x387   : > { %v5840_v28 = vmul.f32 %v5813_v59, %v5038_v0  ;;  %v5850_v63 = vadd.f32 %v5813_v59, %v7568_v41  ;;  %v5857_v0 = vmul.f32 %v5169_v58, %v5797_v31  ;;  %v5861_v11 = vmul.f32 %v5813_v59, %v5176_v62  ;;  %v5884_v62 = vld [vmem:[%s4908_s27 + $0x8] sm:$0xff] }
 0x388   : > { %3156 = vrot.lane.b32.xlu1 %v5764_v9, %s4821_s28  ;;  %v5869_v35 = vmul.f32 %v5813_v59, %v5156_v49  ;;  %2468 = vst.msk [vmem:[%s5760_s17 + $0x28] sm:$0xff] %vm476_vm0, %v5846_v61  ;;  %v3042_v38 = vadd.f32 %v3026_v26, %v5884_v62  ;;  %v7571_v41 = vld [vmem:[#allocation27_spill] sm:$0xff] }
 0x389   : > { %v4582_v53 = vpop.f32.mrb[38].mxu0  ;;  %3154 = vrot.lane.b32.xlu0 %v5769_v33, %s4821_s28  ;;  %2467 = vst.msk [vmem:[%s5760_s17 + $0x20] sm:$0xff] %vm476_vm0, %v5850_v63 }
 0x38a   : > { %v5872_v12 = vadd.f32 %v4582_v53, %v5752_v60  ;;  %v1966_v52 = vpop.f32.mrb[39].mxu0 }
 0x38b   : > { %v5881_v58 = vadd.f32 %v5752_v60, %v1966_v52  ;;  %v7572_v52 = vld [vmem:[#allocation26_spill] sm:$0xff] }
 0x38c   : > { %3604 = vrot.lane.b32.xlu1 %v3571_v50, %s4823_s18  ;;  %v5897_v49 = vmul.f32 %v5042_v2, %v5872_v12  ;;  %v5906_v50 = vadd.f32 %v5872_v12, %v7569_v57  ;;  %v5932_v14 = vmul.f32 %v5186_v23, %v5872_v12 }
 0x38d   : > { %v4585_v13 = vpop.f32.mrb[40].mxu0  ;;  %3602 = vrot.lane.b32.xlu0 %v3570_v24, %s4823_s18  ;;  %v5902_v8 = vmul.f32 %v5881_v58, %v5046_v3  ;;  %v5910_v29 = vadd.f32 %v5881_v58, %v7570_v16  ;;  %v3041_v24 = vadd.f32 %v3025_v22, %v5887_v45  ;;  %v5919_v3 = vmul.f32 %v5214_v48, %v5872_v12 }
 0x38e   : > { %v5913_v2 = vadd.f32 %v4585_v13, %v5752_v60  ;;  %v1976_v10 = vpop.f32.mrb[41].mxu0  ;;  %v5928_v27 = vmul.f32 %v5881_v58, %v5222_v34  ;;  %v5936_v26 = vmul.f32 %v5881_v58, %v5200_v30  ;;  %2470 = vst.msk [vmem:[%s5760_s17 + $0x38] sm:$0xff] %vm476_vm0, %v5906_v50 }
 0x38f   : > { %v5922_v54 = vadd.f32 %v5752_v60, %v1976_v10  ;;  %2469 = vst.msk [vmem:[%s5760_s17 + $0x30] sm:$0xff] %vm476_vm0, %v5910_v29 }
 0x390   : > { %3075 = vrot.lane.b32.xlu1 %v3042_v38, %s4821_s28  ;;  %v5947_v48 = vmul.f32 %v5050_v4, %v5913_v2  ;;  %v5961_v4 = vadd.f32 %v5913_v2, %v7571_v41  ;;  %v5972_v13 = vmul.f32 %v5263_v51, %v5913_v2  ;;  %v5981_v16 = vmul.f32 %v5236_v19, %v5913_v2  ;;  %v2326_v51 = vpop.permute.xlu1 %2325 }
 0x391   : > { %v4588_v34 = vpop.f32.mrb[42].mxu0  ;;  %3073 = vrot.lane.b32.xlu0 %v3041_v24, %s4821_s28  ;;  %v5952_v23 = vmul.f32 %v5922_v54, %v5054_v5  ;;  %v5968_v5 = vadd.f32 %v5922_v54, %v7572_v52  ;;  %v5976_v57 = vmul.f32 %v5922_v54, %v5270_v43  ;;  %v5985_v10 = vmul.f32 %v5922_v54, %v5247_v25  ;;  %v2324_v43 = vpop.permute.xlu0 %2323 }
 0x392   : > { %v5955_v30 = vadd.f32 %v4588_v34, %v5752_v60  ;;  %v1986_v22 = vpop.f32.mrb[43].mxu0  ;;  %2472 = vst.msk [vmem:[%s5760_s17 + $0x48] sm:$0xff] %vm476_vm0, %v5961_v4  ;;  %v2370_v19 = vmul.f32 %v2326_v51, %v5773_v36  ;;  %v2369_v17 = vmul.f32 %v2324_v43, %v5782_v55  ;;  %v6004_v34 = vld [vmem:[%s5893_s22 + $0x10] sm:$0xff]  ;;  %v7576_v36 = vld [vmem:[#allocation29_spill] sm:$0xff]  ;;  %v7579_v43 = vld [vmem:[#allocation7_spill] sm:$0xff] }
 0x393   : > { %v5964_v53 = vadd.f32 %v5752_v60, %v1986_v22  ;;  %2471 = vst.msk [vmem:[%s5760_s17 + $0x40] sm:$0xff] %vm476_vm0, %v5968_v5  ;;  %7573 = vst [vmem:[#allocation31_spill] sm:$0xff] %v6004_v34  ;;  %v7577_v55 = vld [vmem:[#allocation28_spill] sm:$0xff]  ;;  %v7578_v51 = vld [vmem:[#allocation9_spill] sm:$0xff] }
 0x394   : > { %3716 = vrot.lane.b32.xlu1 %v3683_v18, %s4821_s28  ;;  %v5997_v40 = vmul.f32 %v5058_v6, %v5955_v30  ;;  %v6015_v6 = vld [vmem:[%s5893_s22] sm:$0xff]  ;;  %v6027_v52 = vmul.f32 %v5313_v47, %v5955_v30 }
 0x395   : > { %v4591_v38 = vpop.f32.mrb[44].mxu0  ;;  %3714 = vrot.lane.b32.xlu0 %v3682_v32, %s4821_s28  ;;  %v6008_v22 = vmul.f32 %v5964_v53, %v5062_v7  ;;  %7575 = vst [vmem:[#allocation36_spill] sm:$0xff] %v6015_v6  ;;  %v6019_v32 = vadd.f32 %v5955_v30, %v7576_v36  ;;  %v6023_v41 = vadd.f32 %v5964_v53, %v7577_v55  ;;  %v7580_v55 = vld [vmem:[#allocation8_spill] sm:$0xff] }
 0x396   : > { %v1996_v24 = vpop.f32.mrb[45].mxu0  ;;  %v6000_v25 = vadd.f32 %v4591_v38, %v5752_v60  ;;  %v6032_v38 = vmul.f32 %v5964_v53, %v7578_v51  ;;  %v2705_v36 = vmul.f32 %v6004_v34, %v5764_v9  ;;  %v2704_v47 = vmul.f32 %v6015_v6, %v5769_v33  ;;  %v7582_v9 = vld [vmem:[#allocation2_spill] sm:$0xff]  ;;  %v7586_v33 = vld [vmem:[#allocation32_spill] sm:$0xff] }
 0x397   : > { %7574 = vst [vmem:[#allocation35_spill] sm:$0xff] %v6008_v22  ;;  %v6011_v18 = vadd.f32 %v5752_v60, %v1996_v24  ;;  %v6036_v24 = vmul.f32 %v7579_v43, %v5955_v30  ;;  %v6042_v22 = vmul.f32 %v5964_v53, %v7580_v55  ;;  %2473 = vst.msk [vmem:[%s5760_s17 + $0x50] sm:$0xff] %vm476_vm0, %v6023_v41  ;;  %v7584_v43 = vld [vmem:[#allocation3_spill] sm:$0xff]  ;;  %v7587_v6 = vld [vmem:[#allocation30_spill] sm:$0xff] }
 0x398   : > { %2405 = vrot.lane.b32.xlu1 %v2370_v19, %s4821_s28  ;;  %2474 = vst.msk [vmem:[%s5760_s17 + $0x58] sm:$0xff] %vm476_vm0, %v6019_v32  ;;  %v6059_v51 = vmul.f32 %v7582_v9, %v6000_v25  ;;  %v7588_v9 = vld [vmem:[#allocation12_spill] sm:$0xff] }
 0x399   : > { %v4594_v7 = vpop.f32.mrb[46].mxu0  ;;  %2403 = vrot.lane.b32.xlu0 %v2369_v17, %s4821_s28  ;;  %7581 = vst [vmem:[#allocation19_spill] sm:$0xff] %v6042_v22  ;;  %v6063_v55 = vmul.f32 %v6011_v18, %v7584_v43  ;;  %v2721_v43 = vadd.f32 %v5884_v62, %v2705_v36  ;;  %v7595_v36 = vld [vmem:[#allocation4_spill] sm:$0xff] }
 0x39a   : > { %v2006_v19 = vpop.f32.mrb[47].mxu0  ;;  %v6053_v17 = vadd.f32 %v4594_v7, %v5752_v60  ;;  %7583 = vst [vmem:[#allocation18_spill] sm:$0xff] %v6059_v51  ;;  %v6072_v7 = vadd.f32 %v6000_v25, %v7586_v33  ;;  %v6080_v51 = vmul.f32 %v7588_v9, %v6000_v25  ;;  %v7593_v33 = vld [vmem:[#allocation11_spill] sm:$0xff]  ;;  %v7597_v9 = vld [vmem:[#allocation5_spill] sm:$0xff] }
 0x39b   : > { %7585 = vst [vmem:[#allocation6_spill] sm:$0xff] %v6063_v55  ;;  %v6066_v34 = vadd.f32 %v5752_v60, %v2006_v19  ;;  %v7589_v55 = vld [vmem:[#allocation13_spill] sm:$0xff]  ;;  %v6093_v22 = vmul.f32 %v6011_v18, %v7593_v33 }
 0x39c   : > { %2630 = vrot.lane.b32.xlu1 %v5790_v15, %s4822_s29  ;;  %v6076_v15 = vadd.f32 %v6011_v18, %v7587_v6  ;;  %v6085_v60 = vmul.f32 %v6011_v18, %v7589_v55  ;;  %v2720_v6 = vadd.f32 %v5887_v45, %v2704_v47  ;;  %2476 = vst.msk [vmem:[%s5760_s17 + $0x68] sm:$0xff] %vm476_vm0, %v6072_v7  ;;  %v7599_v47 = vld [vmem:[#allocation34_spill] sm:$0xff] }
 0x39d   : > { %2628 = vrot.lane.b32.xlu0 %v5794_v21, %s4822_s29  ;;  %v7591_v21 = vld [vmem:[#allocation10_spill] sm:$0xff]  ;;  %7594 = vst [vmem:[#allocation23_spill] sm:$0xff] %v6093_v22  ;;  %v6105_v55 = vmul.f32 %v7595_v36, %v6053_v17  ;;  %v6114_v33 = vadd.f32 %v6053_v17, %v7599_v47  ;;  %v7600_v22 = vld [vmem:[#allocation33_spill] sm:$0xff]  ;;  %v7607_v47 = vld [vmem:[#allocation15_spill] sm:$0xff] }
 0x39e   : > { %7590 = vst [vmem:[#allocation21_spill] sm:$0xff] %v6085_v60  ;;  %v6089_v19 = vmul.f32 %v7591_v21, %v6000_v25  ;;  %2475 = vst.msk [vmem:[%s5760_s17 + $0x60] sm:$0xff] %vm476_vm0, %v6076_v15  ;;  %v6110_v21 = vmul.f32 %v6066_v34, %v7597_v9  ;;  %v7603_v36 = vld [vmem:[#allocation17_spill] sm:$0xff]  ;;  %v7605_v9 = vld [vmem:[#allocation14_spill] sm:$0xff] }
 0x39f   : > { %7596 = vst [vmem:[#allocation22_spill] sm:$0xff] %v6105_v55  ;;  %v6134_v55 = vmul.f32 %v6066_v34, %v7607_v47  ;;  %2478 = vst.msk [vmem:[%s5760_s17 + $0x78] sm:$0xff] %vm476_vm0, %v6114_v33  ;;  %v3557_v47 = vld [vmem:[%s5893_s22 + $0x38] sm:$0xff] }
 0x3a0   : > { %7592 = vst [vmem:[#allocation20_spill] sm:$0xff] %v6089_v19  ;;  %2754 = vrot.lane.b32.xlu1 %v2721_v43, %s4823_s18  ;;  %7598 = vst [vmem:[#allocation25_spill] sm:$0xff] %v6110_v21  ;;  %v6118_v19 = vadd.f32 %v6066_v34, %v7600_v22  ;;  %v7601_v43 = vld [vmem:[#allocation16_spill] sm:$0xff]  ;;  %v6130_v21 = vmul.f32 %v7605_v9, %v6053_v17  ;;  %v6147_v22 = vld [vmem:[%s4908_s27 + $0x18] sm:$0xff] }
 0x3a1   : > { %2752 = vrot.lane.b32.xlu0 %v2720_v6, %s4823_s18  ;;  %v6122_v60 = vmul.f32 %v7601_v43, %v6053_v17  ;;  %v6126_v6 = vmul.f32 %v6066_v34, %v7603_v36  ;;  %7608 = vst [vmem:[#allocation29_spill] sm:$0xff] %v6134_v55  ;;  %v6152_v43 = vld [vmem:[%s4908_s27 + $0x10] sm:$0xff]  ;;  %v3044_v36 = vadd.f32 %v5822_v44, %v6147_v22  ;;  %v3556_v55 = vld [vmem:[%s5893_s22 + $0x28] sm:$0xff]  ;;  %v2328_v44 = vpop.permute.xlu0 %2327 }
 0x3a2   : > { %7606 = vst [vmem:[#allocation26_spill] sm:$0xff] %v6130_v21  ;;  %2477 = vst.msk [vmem:[%s5760_s17 + $0x70] sm:$0xff] %vm476_vm0, %v6118_v19  ;;  %v3043_v9 = vadd.f32 %v5826_v46, %v6152_v43  ;;  %v3684_v21 = vmul.f32 %v3556_v55, %v5806_v56  ;;  %v2371_v46 = vmul.f32 %v2328_v44, %v5813_v59  ;;  %v6223_v44 = vld [vmem:[%s5893_s22 + $0x40] sm:$0xff] }
 0x3a3   : > { %7602 = vst [vmem:[#allocation24_spill] sm:$0xff] %v6122_v60  ;;  %7604 = vst [vmem:[#allocation27_spill] sm:$0xff] %v6126_v6  ;;  %v6171_v60 = vld [vmem:[%s5893_s22 + $0x30] sm:$0xff] }
 0x3a4   : > { %3160 = vrot.lane.b32.xlu1 %v5802_v20, %s4821_s28  ;;  %v2707_v55 = vmul.f32 %v6171_v60, %v5802_v20 }
 0x3a5   : > { %3158 = vrot.lane.b32.xlu0 %v5806_v56, %s4821_s28 }
 0x3a8   : > { %3608 = vrot.lane.b32.xlu1 %v5810_v37, %s4823_s18  ;;  %v3685_v37 = vmul.f32 %v3557_v47, %v5802_v20  ;;  %v6195_v20 = vld [vmem:[%s4908_s27 + $0x28] sm:$0xff] }
 0x3a9   : > { %3606 = vrot.lane.b32.xlu0 %v5818_v42, %s4823_s18  ;;  %v2330_v42 = vpop.permute.xlu1 %2329 }
 0x3aa   : > { %v2372_v6 = vmul.f32 %v2330_v42, %v5797_v31  ;;  %v2723_v31 = vadd.f32 %v6147_v22, %v2707_v55  ;;  %v6219_v42 = vld [vmem:[%s5893_s22 + $0x50] sm:$0xff]  ;;  %v2708_v55 = vmul.f32 %v6223_v44, %v5850_v63 }
 0x3ac   : > { %3079 = vrot.lane.b32.xlu1 %v3044_v36, %s4821_s28  ;;  %v6175_v36 = vld [vmem:[%s5893_s22 + $0x20] sm:$0xff] }
 0x3ad   : > { %3077 = vrot.lane.b32.xlu0 %v3043_v9, %s4821_s28  ;;  %v3558_v9 = vld [vmem:[%s5893_s22 + $0x48] sm:$0xff] }
 0x3ae   : > { %v3686_v47 = vmul.f32 %v3558_v9, %v5850_v63 }
 0x3b0   : > { %3720 = vrot.lane.b32.xlu1 %v3685_v37, %s4821_s28 }
 0x3b1   : > { %3718 = vrot.lane.b32.xlu0 %v3684_v21, %s4821_s28  ;;  %v2706_v21 = vmul.f32 %v6175_v36, %v5806_v56  ;;  %v6200_v56 = vld [vmem:[%s4908_s27 + $0x20] sm:$0xff] }
 0x3b3   : > { %v2722_v59 = vadd.f32 %v6152_v43, %v2706_v21 }
 0x3b4   : > { %2409 = vrot.lane.b32.xlu1 %v2372_v6, %s4821_s28  ;;  %v3559_v6 = vld [vmem:[%s5893_s22 + $0x58] sm:$0xff] }
 0x3b5   : > { %2407 = vrot.lane.b32.xlu0 %v2371_v46, %s4821_s28  ;;  %v2709_v46 = vmul.f32 %v6219_v42, %v5846_v61 }
 0x3b8   : > { %2634 = vrot.lane.b32.xlu1 %v5830_v39, %s4822_s29  ;;  %v3046_v39 = vadd.f32 %v5865_v1, %v6195_v20  ;;  %v2332_v1 = vpop.permute.xlu0 %2331 }
 0x3b9   : > { %2632 = vrot.lane.b32.xlu0 %v5840_v28, %s4822_s29  ;;  %v3045_v28 = vadd.f32 %v5869_v35, %v6200_v56  ;;  %v2373_v35 = vmul.f32 %v2332_v1, %v5881_v58  ;;  %v2724_v58 = vadd.f32 %v6200_v56, %v2708_v55 }
 0x3bc   : > { %2758 = vrot.lane.b32.xlu1 %v2723_v31, %s4823_s18  ;;  %v2336_v21 = vpop.permute.xlu0 %2335 }
 0x3bd   : > { %2756 = vrot.lane.b32.xlu0 %v2722_v59, %s4823_s18  ;;  %v3561_v59 = vld [vmem:[%s5893_s22 + $0x78] sm:$0xff] }
 0x3c0   : > { %3164 = vrot.lane.b32.xlu1 %v5846_v61, %s4821_s28 }
 0x3c1   : > { %3162 = vrot.lane.b32.xlu0 %v5850_v63, %s4821_s28  ;;  %v6248_v63 = vld [vmem:[%s4908_s27 + $0x30] sm:$0xff] }
 0x3c2   : > { %v3047_v31 = vadd.f32 %v5936_v26, %v6248_v63 }
 0x3c4   : > { %3612 = vrot.lane.b32.xlu1 %v5857_v0, %s4823_s18  ;;  %v3687_v0 = vmul.f32 %v3559_v6, %v5846_v61  ;;  %v6243_v61 = vld [vmem:[%s4908_s27 + $0x38] sm:$0xff] }
 0x3c5   : > { %3610 = vrot.lane.b32.xlu0 %v5861_v11, %s4823_s18  ;;  %v2334_v11 = vpop.permute.xlu1 %2333 }
 0x3c6   : > { %v2374_v37 = vmul.f32 %v2334_v11, %v5872_v12  ;;  %v2725_v12 = vadd.f32 %v6195_v20, %v2709_v46  ;;  %v6275_v11 = vld [vmem:[%s5893_s22 + $0x60] sm:$0xff] }
 0x3c8   : > { %3083 = vrot.lane.b32.xlu1 %v3046_v39, %s4821_s28  ;;  %v3560_v39 = vld [vmem:[%s5893_s22 + $0x68] sm:$0xff] }
 0x3c9   : > { %3081 = vrot.lane.b32.xlu0 %v3045_v28, %s4821_s28  ;;  %v3689_v28 = vmul.f32 %v3561_v59, %v5906_v50  ;;  %v3688_v6 = vmul.f32 %v3560_v39, %v5910_v29 }
 0x3cc   : > { %3724 = vrot.lane.b32.xlu1 %v3687_v0, %s4821_s28  ;;  %v2375_v0 = vmul.f32 %v2336_v21, %v5922_v54  ;;  %v6324_v21 = vld [vmem:[%s4908_s27 + $0x40] sm:$0xff] }
 0x3cd   : > { %3722 = vrot.lane.b32.xlu0 %v3686_v47, %s4821_s28  ;;  %v6271_v47 = vld [vmem:[%s5893_s22 + $0x70] sm:$0xff] }
 0x3d0   : > { %2413 = vrot.lane.b32.xlu1 %v2374_v37, %s4821_s28  ;;  %v2711_v37 = vmul.f32 %v6271_v47, %v5906_v50 }
 0x3d1   : > { %2411 = vrot.lane.b32.xlu0 %v2373_v35, %s4821_s28 }
 0x3d2   : > { %v2727_v46 = vadd.f32 %v6243_v61, %v2711_v37 }
 0x3d4   : > { %2638 = vrot.lane.b32.xlu1 %v5897_v49, %s4822_s29  ;;  %v2338_v49 = vpop.permute.xlu1 %2337 }
 0x3d5   : > { %2636 = vrot.lane.b32.xlu0 %v5902_v8, %s4822_s29  ;;  %v3048_v8 = vadd.f32 %v5932_v14, %v6243_v61  ;;  %v2376_v26 = vmul.f32 %v2338_v49, %v5913_v2  ;;  %v2710_v2 = vmul.f32 %v6275_v11, %v5910_v29 }
 0x3d8   : > { %2762 = vrot.lane.b32.xlu1 %v2725_v12, %s4823_s18 }
 0x3d9   : > { %2760 = vrot.lane.b32.xlu0 %v2724_v58, %s4823_s18 }
 0x3dc   : > { %3168 = vrot.lane.b32.xlu1 %v5906_v50, %s4821_s28  ;;  %v2726_v50 = vadd.f32 %v6248_v63, %v2710_v2 }
 0x3dd   : > { %3166 = vrot.lane.b32.xlu0 %v5910_v29, %s4821_s28 }
 0x3e0   : > { %3616 = vrot.lane.b32.xlu1 %v5919_v3, %s4823_s18  ;;  %v2342_v3 = vpop.permute.xlu1 %2341 }
 0x3e1   : > { %3614 = vrot.lane.b32.xlu0 %v5928_v27, %s4823_s18  ;;  %v2340_v27 = vpop.permute.xlu0 %2339  ;;  %v2378_v37 = vmul.f32 %v2342_v3, %v5955_v30  ;;  %v7615_v3 = vld [vmem:[#allocation35_spill] sm:$0xff] }
 0x3e4   : > { %3087 = vrot.lane.b32.xlu1 %v3048_v8, %s4821_s28  ;;  %v6264_v14 = vpop.permute.xlu1 %2345  ;;  %v6319_v8 = vld [vmem:[%s4908_s27 + $0x48] sm:$0xff] }
 0x3e5   : > { %3085 = vrot.lane.b32.xlu0 %v3047_v31, %s4821_s28  ;;  %v6267_v9 = vpop.permute.xlu0 %2343  ;;  %v3050_v59 = vadd.f32 %v5981_v16, %v6319_v8 }
 0x3e8   : > { %3728 = vrot.lane.b32.xlu1 %v3689_v28, %s4821_s28  ;;  %v6278_v1 = vpop.permute.xlu1 %2349  ;;  %v3049_v28 = vadd.f32 %v5985_v10, %v6324_v21 }
 0x3e9   : > { %3726 = vrot.lane.b32.xlu0 %v3688_v6, %s4821_s28  ;;  %v6282_v35 = vpop.permute.xlu0 %2347  ;;  %v6337_v6 = vld [vmem:[%s5893_s22 + $0x98] sm:$0xff] }
 0x3ea   : > { %7611 = vst [vmem:[#allocation7_spill] sm:$0xff] %v6337_v6  ;;  %v3691_v16 = vmul.f32 %v6337_v6, %v5961_v4  ;;  %v7649_v6 = vld [vmem:[#allocation36_spill] sm:$0xff] }
 0x3ec   : > { %2417 = vrot.lane.b32.xlu1 %v2376_v26, %s4821_s28 }
 0x3ed   : > { %2415 = vrot.lane.b32.xlu0 %v2375_v0, %s4821_s28 }
 0x3f0   : > { %2642 = vrot.lane.b32.xlu1 %v5947_v48, %s4822_s29 }
 0x3f1   : > { %2640 = vrot.lane.b32.xlu0 %v5952_v23, %s4822_s29 }
 0x3f2   : > { %v6291_v54 = vpop.permute.xlu1 %2401 }
 0x3f3   : > { %v6294_v55 = vpop.permute.xlu0 %2399 }
 0x3f4   : > { %2766 = vrot.lane.b32.xlu1 %v2727_v46, %s4823_s18  ;;  %v2377_v46 = vmul.f32 %v2340_v27, %v5964_v53 }
 0x3f5   : > { %2764 = vrot.lane.b32.xlu0 %v2726_v50, %s4823_s18  ;;  %v6361_v50 = vld [vmem:[%s5893_s22 + $0x90] sm:$0xff] }
 0x3f6   : > { %v2627_v29 = vpop.permute.xlu1 %2626 }
 0x3f7   : > { %v2673_v48 = vadd.f32 %v5884_v62, %v2627_v29  ;;  %v2625_v23 = vpop.permute.xlu0 %2624  ;;  %v6365_v29 = vld [vmem:[%s5893_s22 + $0x80] sm:$0xff] }
 0x3f8   : > { %v2672_v12 = vadd.f32 %v5887_v45, %v2625_v23  ;;  %3172 = vrot.lane.b32.xlu1 %v5961_v4, %s4821_s28  ;;  %v2713_v23 = vmul.f32 %v6361_v50, %v5961_v4  ;;  %v2712_v53 = vmul.f32 %v6365_v29, %v5968_v5 }
 0x3f9   : > { %2689 = vst.msk [vmem:[%s6302_s30 + $0x18] sm:$0xff] %vm476_vm0, %v2673_v48  ;;  %3170 = vrot.lane.b32.xlu0 %v5968_v5, %s4821_s28 }
 0x3fa   : > { %2688 = vst.msk [vmem:[%s6302_s30] sm:$0xff] %vm476_vm0, %v2672_v12  ;;  %v6314_v58 = vpop.permute.xlu1 %3156  ;;  %v2729_v12 = vadd.f32 %v6319_v8, %v2713_v23  ;;  %v2728_v4 = vadd.f32 %v6324_v21, %v2712_v53  ;;  %v6408_v23 = vld [vmem:[%s4908_s27 + $0x50] sm:$0xff] }
 0x3fb   : > { %v6316_v49 = vpop.permute.xlu0 %3154 }
 0x3fc   : > { %3620 = vrot.lane.b32.xlu1 %v5972_v13, %s4823_s18  ;;  %v6341_v13 = vld [vmem:[%s5893_s22 + $0x88] sm:$0xff] }
 0x3fd   : > { %3618 = vrot.lane.b32.xlu0 %v5976_v57, %s4823_s18  ;;  %7612 = vst [vmem:[#allocation8_spill] sm:$0xff] %v6341_v13  ;;  %v3690_v0 = vmul.f32 %v6341_v13, %v5968_v5  ;;  %v6603_v13 = vld [vmem:[%s5893_s22 + $0xe0] sm:$0xff] }
 0x3fe   : > { %v6328_v31 = vpop.permute.xlu1 %3604 }
 0x3ff   : > { %7609 = vst [vmem:[#allocation28_spill] sm:$0xff] %v6328_v31  ;;  %v6332_v39 = vpop.permute.xlu0 %3602 }
 0x400   : > { %7610 = vst [vmem:[#allocation9_spill] sm:$0xff] %v6332_v39  ;;  %3091 = vrot.lane.b32.xlu1 %v3050_v59, %s4821_s28 }
 0x401   : > { %3089 = vrot.lane.b32.xlu0 %v3049_v28, %s4821_s28 }
 0x402   : > { %v6344_v57 = vpop.permute.xlu1 %3075 }
 0x403   : > { %7613 = vst [vmem:[#allocation2_spill] sm:$0xff] %v6344_v57  ;;  %v6348_v26 = vpop.permute.xlu0 %3073 }
 0x404   : > { %7614 = vst [vmem:[#allocation3_spill] sm:$0xff] %v6348_v26  ;;  %3732 = vrot.lane.b32.xlu1 %v3691_v16, %s4821_s28 }
 0x405   : > { %3730 = vrot.lane.b32.xlu0 %v3690_v0, %s4821_s28 }
 0x406   : > { %v6354_v10 = vpop.permute.xlu1 %3716 }
 0x407   : > { %v6357_v2 = vpop.permute.xlu0 %3714 }
 0x408   : > { %2421 = vrot.lane.b32.xlu1 %v2378_v37, %s4821_s28 }
 0x409   : > { %2419 = vrot.lane.b32.xlu0 %v2377_v46, %s4821_s28  ;;  %v6403_v46 = vld [vmem:[%s4908_s27 + $0x58] sm:$0xff] }
 0x40a   : > { %v6368_v48 = vpop.permute.xlu1 %2405 }
 0x40b   : > { %v6372_v30 = vpop.permute.xlu0 %2403 }
 0x40c   : > { %2646 = vrot.lane.b32.xlu1 %v5997_v40, %s4822_s29 }
 0x40d   : > { %2644 = vrot.lane.b32.xlu0 %v7615_v3, %s4822_s29  ;;  %v3052_v3 = vadd.f32 %v6036_v24, %v6403_v46 }
 0x40e   : > { %v2631_v27 = vpop.permute.xlu1 %2630 }
 0x40f   : > { %v2675_v59 = vadd.f32 %v6147_v22, %v2631_v27  ;;  %v2629_v28 = vpop.permute.xlu0 %2628 }
 0x410   : > { %v2674_v16 = vadd.f32 %v6152_v43, %v2629_v28  ;;  %2770 = vrot.lane.b32.xlu1 %v2729_v12, %s4823_s18  ;;  %v7618_v12 = vld [vmem:[#allocation19_spill] sm:$0xff]  ;;  %v6421_v28 = vld [vmem:[%s5893_s22 + $0xb8] sm:$0xff] }
 0x411   : > { %2691 = vst.msk [vmem:[%s6302_s30 + $0x48] sm:$0xff] %vm476_vm0, %v2675_v59  ;;  %2768 = vrot.lane.b32.xlu0 %v2728_v4, %s4823_s18  ;;  %v3051_v59 = vadd.f32 %v7618_v12, %v6408_v23  ;;  %7619 = vst [vmem:[#allocation12_spill] sm:$0xff] %v6421_v28  ;;  %v3693_v24 = vmul.f32 %v6421_v28, %v6019_v32  ;;  %v2379_v12 = vmul.f32 %v6267_v9, %v6011_v18  ;;  %v7623_v9 = vld [vmem:[#allocation18_spill] sm:$0xff]  ;;  %v6596_v28 = vld [vmem:[%s5893_s22 + $0xf0] sm:$0xff] }
 0x412   : > { %2690 = vst.msk [vmem:[%s6302_s30 + $0x30] sm:$0xff] %vm476_vm0, %v2674_v16  ;;  %v2755_v5 = vpop.permute.xlu1 %2754  ;;  %7643 = vst [vmem:[#allocation19_spill] sm:$0xff] %v6596_v28 }
 0x413   : > { %2801 = vst.msk [vmem:[%s6302_s30 + $0x18] sm:$0xff] %vm2543_vm3, %v2755_v5  ;;  %v2753_v40 = vpop.permute.xlu0 %2752 }
 0x414   : > { %2800 = vst.msk [vmem:[%s6302_s30] sm:$0xff] %vm2543_vm3, %v2753_v40  ;;  %3176 = vrot.lane.b32.xlu1 %v6019_v32, %s4821_s28  ;;  %v2380_v40 = vmul.f32 %v6264_v14, %v6000_v25 }
 0x415   : > { %3174 = vrot.lane.b32.xlu0 %v6023_v41, %s4821_s28 }
 0x416   : > { %v6398_v0 = vpop.permute.xlu1 %3160 }
 0x417   : > { %v6400_v37 = vpop.permute.xlu0 %3158 }
 0x418   : > { %3624 = vrot.lane.b32.xlu1 %v6027_v52, %s4823_s18  ;;  %v6425_v52 = vld [vmem:[%s5893_s22 + $0xa8] sm:$0xff] }
 0x419   : > { %3622 = vrot.lane.b32.xlu0 %v6032_v38, %s4823_s18  ;;  %7620 = vst [vmem:[#allocation13_spill] sm:$0xff] %v6425_v52  ;;  %v3692_v16 = vmul.f32 %v6425_v52, %v6023_v41  ;;  %v6593_v52 = vld [vmem:[%s5893_s22 + $0xf8] sm:$0xff] }
 0x41a   : > { %v6412_v53 = vpop.permute.xlu1 %3608  ;;  %7642 = vst [vmem:[#allocation35_spill] sm:$0xff] %v6593_v52 }
 0x41b   : > { %7616 = vst [vmem:[#allocation32_spill] sm:$0xff] %v6412_v53  ;;  %v6416_v27 = vpop.permute.xlu0 %3606  ;;  %v6533_v53 = vld [vmem:[%s5893_s22 + $0xd0] sm:$0xff] }
 0x41c   : > { %7617 = vst [vmem:[#allocation30_spill] sm:$0xff] %v6416_v27  ;;  %3095 = vrot.lane.b32.xlu1 %v3052_v3, %s4821_s28  ;;  %v6507_v27 = vld [vmem:[%s5893_s22 + $0xd8] sm:$0xff] }
 0x41d   : > { %3093 = vrot.lane.b32.xlu0 %v3051_v59, %s4821_s28  ;;  %v6447_v59 = vld [vmem:[%s5893_s22 + $0xb0] sm:$0xff]  ;;  %7630 = vst [vmem:[#allocation34_spill] sm:$0xff] %v6507_v27 }
 0x41e   : > { %v6428_v38 = vpop.permute.xlu1 %3079  ;;  %v2715_v25 = vmul.f32 %v6447_v59, %v6019_v32 }
 0x41f   : > { %7621 = vst [vmem:[#allocation10_spill] sm:$0xff] %v6428_v38  ;;  %v6432_v4 = vpop.permute.xlu0 %3077 }
 0x420   : > { %7622 = vst [vmem:[#allocation11_spill] sm:$0xff] %v6432_v4  ;;  %3736 = vrot.lane.b32.xlu1 %v3693_v24, %s4821_s28  ;;  %v6451_v4 = vld [vmem:[%s5893_s22 + $0xa0] sm:$0xff] }
 0x421   : > { %3734 = vrot.lane.b32.xlu0 %v3692_v16, %s4821_s28  ;;  %v2714_v18 = vmul.f32 %v6451_v4, %v6023_v41  ;;  %v7624_v16 = vld [vmem:[#allocation6_spill] sm:$0xff] }
 0x422   : > { %v6438_v5 = vpop.permute.xlu1 %3720  ;;  %7645 = vst [vmem:[#allocation6_spill] sm:$0xff] %v6603_v13 }
 0x423   : > { %v6442_v3 = vpop.permute.xlu0 %3718  ;;  %v2730_v26 = vadd.f32 %v6408_v23, %v2714_v18 }
 0x424   : > { %2425 = vrot.lane.b32.xlu1 %v2380_v40, %s4821_s28 }
 0x425   : > { %2423 = vrot.lane.b32.xlu0 %v2379_v12, %s4821_s28  ;;  %v2731_v12 = vadd.f32 %v6403_v46, %v2715_v25 }
 0x426   : > { %v6454_v24 = vpop.permute.xlu1 %2409 }
 0x427   : > { %v6458_v14 = vpop.permute.xlu0 %2407 }
 0x428   : > { %2650 = vrot.lane.b32.xlu1 %v7623_v9, %s4822_s29  ;;  %v7625_v9 = vld [vmem:[#allocation21_spill] sm:$0xff] }
 0x429   : > { %2648 = vrot.lane.b32.xlu0 %v7624_v16, %s4822_s29 }
 0x42a   : > { %v2635_v40 = vpop.permute.xlu1 %2634 }
 0x42b   : > { %v2677_v38 = vadd.f32 %v6195_v20, %v2635_v40  ;;  %v2633_v32 = vpop.permute.xlu0 %2632  ;;  %v7627_v40 = vld [vmem:[#allocation20_spill] sm:$0xff] }
 0x42c   : > { %v2676_v57 = vadd.f32 %v6200_v56, %v2633_v32  ;;  %2774 = vrot.lane.b32.xlu1 %v2731_v12, %s4823_s18 }
 0x42d   : > { %2693 = vst.msk [vmem:[%s6302_s30 + $0x78] sm:$0xff] %vm476_vm0, %v2677_v38  ;;  %2772 = vrot.lane.b32.xlu0 %v2730_v26, %s4823_s18  ;;  %v6489_v26 = vld [vmem:[%s4908_s27 + $0x68] sm:$0xff] }
 0x42e   : > { %2692 = vst.msk [vmem:[%s6302_s30 + $0x60] sm:$0xff] %vm476_vm0, %v2676_v57  ;;  %v2759_v41 = vpop.permute.xlu1 %2758  ;;  %v6494_v57 = vld [vmem:[%s4908_s27 + $0x60] sm:$0xff]  ;;  %v3054_v12 = vadd.f32 %v7627_v40, %v6489_v26  ;;  %v3695_v40 = vmul.f32 %v6507_v27, %v6072_v7 }
 0x42f   : > { %2803 = vst.msk [vmem:[%s6302_s30 + $0x48] sm:$0xff] %vm2543_vm3, %v2759_v41  ;;  %v2757_v25 = vpop.permute.xlu0 %2756  ;;  %v7629_v41 = vld [vmem:[#allocation23_spill] sm:$0xff] }
 0x430   : > { %2802 = vst.msk [vmem:[%s6302_s30 + $0x30] sm:$0xff] %vm2543_vm3, %v2757_v25  ;;  %3180 = vrot.lane.b32.xlu1 %v6072_v7, %s4821_s28  ;;  %v3053_v25 = vadd.f32 %v7629_v41, %v6494_v57 }
 0x431   : > { %3178 = vrot.lane.b32.xlu0 %v6076_v15, %s4821_s28 }
 0x432   : > { %v6484_v18 = vpop.permute.xlu1 %3164 }
 0x433   : > { %v6486_v38 = vpop.permute.xlu0 %3162 }
 0x434   : > { %3628 = vrot.lane.b32.xlu1 %v6080_v51, %s4823_s18  ;;  %v6511_v51 = vld [vmem:[%s5893_s22 + $0xc8] sm:$0xff] }
 0x435   : > { %3626 = vrot.lane.b32.xlu0 %v7625_v9, %s4823_s18  ;;  %7631 = vst [vmem:[#allocation33_spill] sm:$0xff] %v6511_v51 }
 0x436   : > { %v6498_v16 = vpop.permute.xlu1 %3612 }
 0x437   : > { %7626 = vst [vmem:[#allocation4_spill] sm:$0xff] %v6498_v16  ;;  %v6502_v32 = vpop.permute.xlu0 %3610 }
 0x438   : > { %7628 = vst [vmem:[#allocation5_spill] sm:$0xff] %v6502_v32  ;;  %3099 = vrot.lane.b32.xlu1 %v3054_v12, %s4821_s28  ;;  %v3694_v32 = vmul.f32 %v6511_v51, %v6076_v15  ;;  %v2382_v12 = vmul.f32 %v6278_v1, %v6053_v17  ;;  %v2717_v17 = vmul.f32 %v6533_v53, %v6072_v7 }
 0x439   : > { %3097 = vrot.lane.b32.xlu0 %v3053_v25, %s4821_s28 }
 0x43a   : > { %v6514_v9 = vpop.permute.xlu1 %3083 }
 0x43b   : > { %7632 = vst [vmem:[#allocation16_spill] sm:$0xff] %v6514_v9  ;;  %v6518_v16 = vpop.permute.xlu0 %3081  ;;  %v2381_v9 = vmul.f32 %v6282_v35, %v6066_v34  ;;  %v7634_v35 = vld [vmem:[#allocation22_spill] sm:$0xff] }
 0x43c   : > { %7633 = vst [vmem:[#allocation17_spill] sm:$0xff] %v6518_v16  ;;  %3740 = vrot.lane.b32.xlu1 %v3695_v40, %s4821_s28  ;;  %v6537_v16 = vld [vmem:[%s5893_s22 + $0xc0] sm:$0xff]  ;;  %v7635_v40 = vld [vmem:[#allocation25_spill] sm:$0xff] }
 0x43d   : > { %3738 = vrot.lane.b32.xlu0 %v3694_v32, %s4821_s28  ;;  %v2716_v34 = vmul.f32 %v6537_v16, %v6076_v15 }
 0x43e   : > { %v6524_v41 = vpop.permute.xlu1 %3724 }
 0x43f   : > { %v6528_v25 = vpop.permute.xlu0 %3722  ;;  %v2732_v31 = vadd.f32 %v6494_v57, %v2716_v34  ;;  %v7636_v34 = vld [vmem:[#allocation24_spill] sm:$0xff] }
 0x440   : > { %2429 = vrot.lane.b32.xlu1 %v2382_v12, %s4821_s28  ;;  %v2733_v12 = vadd.f32 %v6489_v26, %v2717_v17 }
 0x441   : > { %2427 = vrot.lane.b32.xlu0 %v2381_v9, %s4821_s28 }
 0x442   : > { %v6540_v32 = vpop.permute.xlu1 %2413 }
 0x443   : > { %v6544_v1 = vpop.permute.xlu0 %2411 }
 0x444   : > { %2654 = vrot.lane.b32.xlu1 %v7634_v35, %s4822_s29  ;;  %v6580_v35 = vld [vmem:[%s4908_s27 + $0x70] sm:$0xff] }
 0x445   : > { %2652 = vrot.lane.b32.xlu0 %v7635_v40, %s4822_s29  ;;  %v7637_v40 = vld [vmem:[#allocation27_spill] sm:$0xff] }
 0x446   : > { %v2639_v9 = vpop.permute.xlu1 %2638 }
 0x447   : > { %v2679_v39 = vadd.f32 %v6243_v61, %v2639_v9  ;;  %v2637_v7 = vpop.permute.xlu0 %2636 }
 0x448   : > { %v2678_v51 = vadd.f32 %v6248_v63, %v2637_v7  ;;  %2778 = vrot.lane.b32.xlu1 %v2733_v12, %s4823_s18  ;;  %v7639_v12 = vld [vmem:[#allocation26_spill] sm:$0xff] }
 0x449   : > { %2695 = vst.msk [vmem:[%s6302_s30 + $0xa8] sm:$0xff] %vm476_vm0, %v2679_v39  ;;  %2776 = vrot.lane.b32.xlu0 %v2732_v31, %s4823_s18 }
 0x44a   : > { %2694 = vst.msk [vmem:[%s6302_s30 + $0x90] sm:$0xff] %vm476_vm0, %v2678_v51  ;;  %v2763_v15 = vpop.permute.xlu1 %2762  ;;  %v6575_v51 = vld [vmem:[%s4908_s27 + $0x78] sm:$0xff] }
 0x44b   : > { %2805 = vst.msk [vmem:[%s6302_s30 + $0x78] sm:$0xff] %vm2543_vm3, %v2763_v15  ;;  %v2761_v17 = vpop.permute.xlu0 %2760  ;;  %v3056_v7 = vadd.f32 %v7639_v12, %v6575_v51  ;;  %v3697_v12 = vmul.f32 %v6593_v52, %v6114_v33 }
 0x44c   : > { %2804 = vst.msk [vmem:[%s6302_s30 + $0x60] sm:$0xff] %vm2543_vm3, %v2761_v17  ;;  %3184 = vrot.lane.b32.xlu1 %v6114_v33, %s4821_s28  ;;  %v7641_v17 = vld [vmem:[#allocation29_spill] sm:$0xff] }
 0x44d   : > { %3182 = vrot.lane.b32.xlu0 %v6118_v19, %s4821_s28  ;;  %v3055_v27 = vadd.f32 %v7641_v17, %v6580_v35  ;;  %v2719_v17 = vmul.f32 %v6596_v28, %v6114_v33 }
 0x44e   : > { %v6570_v39 = vpop.permute.xlu1 %3168 }
 0x44f   : > { %v6572_v31 = vpop.permute.xlu0 %3166 }
 0x450   : > { %3632 = vrot.lane.b32.xlu1 %v7636_v34, %s4823_s18  ;;  %v6600_v34 = vld [vmem:[%s5893_s22 + $0xe8] sm:$0xff] }
 0x451   : > { %3630 = vrot.lane.b32.xlu0 %v7637_v40, %s4823_s18  ;;  %7644 = vst [vmem:[#allocation18_spill] sm:$0xff] %v6600_v34 }
 0x452   : > { %v6584_v9 = vpop.permute.xlu1 %3616 }
 0x453   : > { %7638 = vst [vmem:[#allocation14_spill] sm:$0xff] %v6584_v9  ;;  %v6588_v15 = vpop.permute.xlu0 %3614  ;;  %v2718_v9 = vmul.f32 %v6603_v13, %v6118_v19 }
 0x454   : > { %7640 = vst [vmem:[#allocation15_spill] sm:$0xff] %v6588_v15  ;;  %3103 = vrot.lane.b32.xlu1 %v3056_v7, %s4821_s28  ;;  %v3696_v7 = vmul.f32 %v6600_v34, %v6118_v19 }
 0x455   : > { %3101 = vrot.lane.b32.xlu0 %v3055_v27, %s4821_s28  ;;  %v2734_v33 = vadd.f32 %v6580_v35, %v2718_v9  ;;  %v7648_v9 = vld [vmem:[#allocation31_spill] sm:$0xff] }
 0x456   : > { %v6606_v40 = vpop.permute.xlu1 %3087 }
 0x457   : > { %7646 = vst [vmem:[#allocation21_spill] sm:$0xff] %v6606_v40  ;;  %v6612_v15 = vpop.permute.xlu0 %3085  ;;  %v2735_v40 = vadd.f32 %v6575_v51, %v2719_v17 }
 0x458   : > { %7647 = vst [vmem:[#allocation20_spill] sm:$0xff] %v6612_v15  ;;  %3744 = vrot.lane.b32.xlu1 %v3697_v12, %s4821_s28  ;;  %v4767_v15 = vld [vmem:[%s5448_s15 + $0x8] sm:$0xff] }
 0x459   : > { %3742 = vrot.lane.b32.xlu0 %v3696_v7, %s4821_s28  ;;  %v2448_v19 = vadd.f32 %v4767_v15, %v6291_v54  ;;  %v4768_v7 = vld [vmem:[%s5448_s15] sm:$0xff]  ;;  %v3202_v54 = vmul.f32 %v6316_v49, %v7649_v6  ;;  %v3763_v49 = vadd.f32 %v6354_v10, %v5884_v62 }
 0x45a   : > { %v6620_v27 = vpop.permute.xlu1 %3728  ;;  %v2447_v34 = vadd.f32 %v4768_v7, %v6294_v55  ;;  %v4769_v7 = vld [vmem:[%s5448_s15 + $0x18] sm:$0xff] }
 0x45b   : > { %v6623_v52 = vpop.permute.xlu0 %3726 }
 0x45c   : > { %2782 = vrot.lane.b32.xlu1 %v2735_v40, %s4823_s18  ;;  %v3203_v40 = vmul.f32 %v6314_v58, %v7648_v9  ;;  %v2450_v9 = vadd.f32 %v4769_v7, %v6368_v48 }
 0x45d   : > { %2780 = vrot.lane.b32.xlu0 %v2734_v33, %s4823_s18 }
 0x45e   : > { %v6630_v12 = vpop.permute.xlu1 %2417 }
 0x45f   : > { %v6634_v17 = vpop.permute.xlu0 %2415 }
 0x460   : > { %2497 = vrot.lane.b32.xlu1 %v2448_v19, %s4823_s18 }
 0x461   : > { %2495 = vrot.lane.b32.xlu0 %v2447_v34, %s4823_s18 }
 0x462   : > { %v2643_v33 = vpop.permute.xlu1 %2642 }
 0x463   : > { %v2681_v15 = vadd.f32 %v6319_v8, %v2643_v33  ;;  %v2641_v13 = vpop.permute.xlu0 %2640 }
 0x464   : > { %v2680_v28 = vadd.f32 %v6324_v21, %v2641_v13  ;;  %3236 = vrot.lane.b32.xlu1 %v3203_v40, %s4822_s29  ;;  %v3762_v13 = vadd.f32 %v6357_v2, %v5887_v45  ;;  %v3205_v45 = vmul.f32 %v6398_v0, %v6171_v60  ;;  %v3204_v2 = vmul.f32 %v6400_v37, %v6175_v36 }
 0x465   : > { %2697 = vst.msk [vmem:[%s6302_s30 + $0xd8] sm:$0xff] %vm476_vm0, %v2681_v15  ;;  %3234 = vrot.lane.b32.xlu0 %v3202_v54, %s4822_s29  ;;  %v3765_v0 = vadd.f32 %v6438_v5, %v6147_v22  ;;  %v3764_v54 = vadd.f32 %v6442_v3, %v6152_v43  ;;  %v3207_v3 = vmul.f32 %v6484_v18, %v6219_v42 }
 0x466   : > { %2696 = vst.msk [vmem:[%s6302_s30 + $0xc0] sm:$0xff] %vm476_vm0, %v2680_v28  ;;  %v2767_v55 = vpop.permute.xlu1 %2766 }
 0x467   : > { %2807 = vst.msk [vmem:[%s6302_s30 + $0xa8] sm:$0xff] %vm2543_vm3, %v2767_v55  ;;  %v2765_v58 = vpop.permute.xlu0 %2764  ;;  %v4771_v55 = vld [vmem:[%s5448_s15 + $0x28] sm:$0xff] }
 0x468   : > { %2806 = vst.msk [vmem:[%s6302_s30 + $0x90] sm:$0xff] %vm2543_vm3, %v2765_v58  ;;  %3380 = vrot.lane.b32.xlu1 %v2448_v19, %s4822_s29  ;;  %v2452_v58 = vadd.f32 %v4771_v55, %v6454_v24 }
 0x469   : > { %3378 = vrot.lane.b32.xlu0 %v2447_v34, %s4822_s29  ;;  %v4770_v34 = vld [vmem:[%s5448_s15 + $0x10] sm:$0xff] }
 0x46a   : > { %v6658_v6 = vpop.permute.xlu1 %3172  ;;  %v2449_v40 = vadd.f32 %v4770_v34, %v6372_v30 }
 0x46b   : > { %v6662_v28 = vpop.permute.xlu0 %3170 }
 0x46c   : > { %3796 = vrot.lane.b32.xlu1 %v3763_v49, %s4823_s18 }
 0x46d   : > { %3794 = vrot.lane.b32.xlu0 %v3762_v13, %s4823_s18  ;;  %v4772_v13 = vld [vmem:[%s5448_s15 + $0x20] sm:$0xff] }
 0x46e   : > { %v6668_v19 = vpop.permute.xlu1 %3620  ;;  %v2451_v22 = vadd.f32 %v4772_v13, %v6458_v14  ;;  %v3206_v14 = vmul.f32 %v6486_v38, %v6223_v44  ;;  %v3767_v38 = vadd.f32 %v6524_v41, %v6195_v20 }
 0x46f   : > { %v6672_v62 = vpop.permute.xlu0 %3618 }
 0x470   : > { %2501 = vrot.lane.b32.xlu1 %v2450_v9, %s4823_s18 }
 0x471   : > { %2499 = vrot.lane.b32.xlu0 %v2449_v40, %s4823_s18 }
 0x472   : > { %v6678_v10 = vpop.permute.xlu1 %3091 }
 0x473   : > { %v6682_v48 = vpop.permute.xlu0 %3089 }
 0x474   : > { %3240 = vrot.lane.b32.xlu1 %v3205_v45, %s4822_s29  ;;  %v3766_v45 = vadd.f32 %v6528_v25, %v6200_v56  ;;  %v3209_v56 = vmul.f32 %v6570_v39, %v6271_v47  ;;  %v3208_v25 = vmul.f32 %v6572_v31, %v6275_v11  ;;  %v3769_v39 = vadd.f32 %v6620_v27, %v6243_v61  ;;  %v4776_v27 = vld [vmem:[%s5448_s15 + $0x40] sm:$0xff] }
 0x475   : > { %3238 = vrot.lane.b32.xlu0 %v3204_v2, %s4822_s29 }
 0x476   : > { %v6686_v30 = vpop.permute.xlu1 %3732 }
 0x477   : > { %v6688_v33 = vpop.permute.xlu0 %3730 }
 0x478   : > { %3384 = vrot.lane.b32.xlu1 %v2450_v9, %s4822_s29 }
 0x479   : > { %3382 = vrot.lane.b32.xlu0 %v2449_v40, %s4822_s29 }
 0x47a   : > { %v6694_v37 = vpop.permute.xlu1 %2421 }
 0x47b   : > { %v6698_v15 = vpop.permute.xlu0 %2419 }
 0x47c   : > { %3800 = vrot.lane.b32.xlu1 %v3765_v0, %s4823_s18  ;;  %v4773_v0 = vld [vmem:[%s5448_s15 + $0x38] sm:$0xff] }
 0x47d   : > { %3798 = vrot.lane.b32.xlu0 %v3764_v54, %s4823_s18  ;;  %v2454_v54 = vadd.f32 %v4773_v0, %v6540_v32 }
 0x47e   : > { %v2647_v49 = vpop.permute.xlu1 %2646 }
 0x47f   : > { %v2683_v5 = vadd.f32 %v6403_v46, %v2647_v49  ;;  %v2645_v7 = vpop.permute.xlu0 %2644 }
 0x480   : > { %v2682_v43 = vadd.f32 %v6408_v23, %v2645_v7  ;;  %2505 = vrot.lane.b32.xlu1 %v2452_v58, %s4823_s18 }
 0x481   : > { %2699 = vst.msk [vmem:[%s6302_s30 + $0x108] sm:$0xff] %vm476_vm0, %v2683_v5  ;;  %2503 = vrot.lane.b32.xlu0 %v2451_v22, %s4823_s18 }
 0x482   : > { %2698 = vst.msk [vmem:[%s6302_s30 + $0xf0] sm:$0xff] %vm476_vm0, %v2682_v43  ;;  %v2771_v24 = vpop.permute.xlu1 %2770 }
 0x483   : > { %2809 = vst.msk [vmem:[%s6302_s30 + $0xd8] sm:$0xff] %vm2543_vm3, %v2771_v24  ;;  %v2769_v9 = vpop.permute.xlu0 %2768 }
 0x484   : > { %2808 = vst.msk [vmem:[%s6302_s30 + $0xc0] sm:$0xff] %vm2543_vm3, %v2769_v9  ;;  %3244 = vrot.lane.b32.xlu1 %v3207_v3, %s4822_s29  ;;  %v4775_v3 = vld [vmem:[%s5448_s15 + $0x48] sm:$0xff]  ;;  %v3210_v9 = vmul.f32 %v6662_v28, %v6365_v29  ;;  %v3770_v28 = vadd.f32 %v6688_v33, %v6324_v21 }
 0x485   : > { %3242 = vrot.lane.b32.xlu0 %v3206_v14, %s4822_s29  ;;  %v2456_v24 = vadd.f32 %v4775_v3, %v6630_v12  ;;  %v3211_v14 = vmul.f32 %v6658_v6, %v6361_v50  ;;  %v3771_v6 = vadd.f32 %v6686_v30, %v6319_v8 }
 0x486   : > { %v6724_v34 = vpop.permute.xlu1 %3176 }
 0x487   : > { %v6726_v18 = vpop.permute.xlu0 %3174  ;;  %v3213_v33 = vmul.f32 %v6724_v34, %v6447_v59 }
 0x488   : > { %3388 = vrot.lane.b32.xlu1 %v2452_v58, %s4822_s29  ;;  %v4774_v58 = vld [vmem:[%s5448_s15 + $0x30] sm:$0xff] }
 0x489   : > { %3386 = vrot.lane.b32.xlu0 %v2451_v22, %s4822_s29  ;;  %v2453_v49 = vadd.f32 %v4774_v58, %v6544_v1  ;;  %v3768_v22 = vadd.f32 %v6623_v52, %v6248_v63  ;;  %v2455_v63 = vadd.f32 %v4776_v27, %v6634_v17  ;;  %v4777_v58 = vld [vmem:[%s5448_s15 + $0x58] sm:$0xff] }
 0x48a   : > { %v6732_v40 = vpop.permute.xlu1 %3624 }
 0x48b   : > { %v6736_v2 = vpop.permute.xlu0 %3622 }
 0x48c   : > { %3804 = vrot.lane.b32.xlu1 %v3767_v38, %s4823_s18 }
 0x48d   : > { %3802 = vrot.lane.b32.xlu0 %v3766_v45, %s4823_s18 }
 0x48e   : > { %v6742_v55 = vpop.permute.xlu1 %3095 }
 0x48f   : > { %v6746_v20 = vpop.permute.xlu0 %3093 }
 0x490   : > { %2509 = vrot.lane.b32.xlu1 %v2454_v54, %s4823_s18 }
 0x491   : > { %2507 = vrot.lane.b32.xlu0 %v2453_v49, %s4823_s18 }
 0x492   : > { %v6752_v41 = vpop.permute.xlu1 %3736 }
 0x493   : > { %v6756_v32 = vpop.permute.xlu0 %3734  ;;  %v3773_v34 = vadd.f32 %v6752_v41, %v6403_v46  ;;  %v4780_v41 = vld [vmem:[%s5448_s15 + $0x60] sm:$0xff] }
 0x494   : > { %3248 = vrot.lane.b32.xlu1 %v3209_v56, %s4822_s29  ;;  %v3772_v3 = vadd.f32 %v6756_v32, %v6408_v23 }
 0x495   : > { %3246 = vrot.lane.b32.xlu0 %v3208_v25, %s4822_s29  ;;  %v4778_v25 = vld [vmem:[%s5448_s15 + $0x50] sm:$0xff] }
 0x496   : > { %v6760_v1 = vpop.permute.xlu1 %2425 }
 0x497   : > { %v6762_v13 = vpop.permute.xlu0 %2423 }
 0x498   : > { %3392 = vrot.lane.b32.xlu1 %v2454_v54, %s4822_s29 }
 0x499   : > { %3390 = vrot.lane.b32.xlu0 %v2453_v49, %s4822_s29  ;;  %v2458_v49 = vadd.f32 %v4777_v58, %v6694_v37 }
 0x49a   : > { %v2651_v31 = vpop.permute.xlu1 %2650 }
 0x49b   : > { %v2685_v5 = vadd.f32 %v6489_v26, %v2651_v31  ;;  %v2649_v7 = vpop.permute.xlu0 %2648 }
 0x49c   : > { %v2684_v43 = vadd.f32 %v6494_v57, %v2649_v7  ;;  %3808 = vrot.lane.b32.xlu1 %v3769_v39, %s4823_s18  ;;  %v2457_v39 = vadd.f32 %v4778_v25, %v6698_v15  ;;  %v4781_v25 = vld [vmem:[%s5448_s15 + $0x78] sm:$0xff] }
 0x49d   : > { %2701 = vst.msk [vmem:[%s6302_s30 + $0x138] sm:$0xff] %vm476_vm0, %v2685_v5  ;;  %3806 = vrot.lane.b32.xlu0 %v3768_v22, %s4823_s18  ;;  %v3212_v22 = vmul.f32 %v6726_v18, %v6451_v4 }
 0x49e   : > { %2700 = vst.msk [vmem:[%s6302_s30 + $0x120] sm:$0xff] %vm476_vm0, %v2684_v43  ;;  %v2775_v61 = vpop.permute.xlu1 %2774 }
 0x49f   : > { %2811 = vst.msk [vmem:[%s6302_s30 + $0x108] sm:$0xff] %vm2543_vm3, %v2775_v61  ;;  %v2773_v52 = vpop.permute.xlu0 %2772  ;;  %v4779_v61 = vld [vmem:[%s5448_s15 + $0x68] sm:$0xff] }
 0x4a0   : > { %2810 = vst.msk [vmem:[%s6302_s30 + $0xf0] sm:$0xff] %vm2543_vm3, %v2773_v52  ;;  %2513 = vrot.lane.b32.xlu1 %v2456_v24, %s4823_s18  ;;  %v2460_v27 = vadd.f32 %v4779_v61, %v6760_v1  ;;  %v2459_v52 = vadd.f32 %v4780_v41, %v6762_v13 }
 0x4a1   : > { %2511 = vrot.lane.b32.xlu0 %v2455_v63, %s4823_s18 }
 0x4a2   : > { %v3181_v12 = vpop.permute.xlu1 %3180 }
 0x4a3   : > { %v3179_v38 = vpop.permute.xlu0 %3178  ;;  %v3215_v32 = vmul.f32 %v3181_v12, %v6533_v53 }
 0x4a4   : > { %3252 = vrot.lane.b32.xlu1 %v3211_v14, %s4822_s29 }
 0x4a5   : > { %3250 = vrot.lane.b32.xlu0 %v3210_v9, %s4822_s29 }
 0x4a6   : > { %v6794_v17 = vpop.permute.xlu1 %3628 }
 0x4a7   : > { %v6796_v45 = vpop.permute.xlu0 %3626 }
 0x4a8   : > { %3396 = vrot.lane.b32.xlu1 %v2456_v24, %s4822_s29 }
 0x4a9   : > { %3394 = vrot.lane.b32.xlu0 %v2455_v63, %s4822_s29 }
 0x4aa   : > { %v6802_v0 = vpop.permute.xlu1 %3099 }
 0x4ab   : > { %v6806_v54 = vpop.permute.xlu0 %3097 }
 0x4ac   : > { %7650 = vst [vmem:[#allocation23_spill] sm:$0xff] %v6806_v54  ;;  %3812 = vrot.lane.b32.xlu1 %v3771_v6, %s4823_s18  ;;  %v3214_v6 = vmul.f32 %v3179_v38, %v6537_v16 }
 0x4ad   : > { %3810 = vrot.lane.b32.xlu0 %v3770_v28, %s4823_s18 }
 0x4ae   : > { %v3741_v56 = vpop.permute.xlu1 %3740 }
 0x4af   : > { %v3739_v30 = vpop.permute.xlu0 %3738  ;;  %v3775_v12 = vadd.f32 %v3741_v56, %v6489_v26  ;;  %v7653_v56 = vld [vmem:[#allocation19_spill] sm:$0xff] }
 0x4b0   : > { %2517 = vrot.lane.b32.xlu1 %v2458_v49, %s4823_s18  ;;  %v3774_v58 = vadd.f32 %v3739_v30, %v6494_v57 }
 0x4b1   : > { %2515 = vrot.lane.b32.xlu0 %v2457_v39, %s4823_s18 }
 0x4b2   : > { %v2430_v31 = vpop.permute.xlu1 %2429 }
 0x4b3   : > { %v2428_v37 = vpop.permute.xlu0 %2427 }
 0x4b4   : > { %3256 = vrot.lane.b32.xlu1 %v3213_v33, %s4822_s29 }
 0x4b5   : > { %3254 = vrot.lane.b32.xlu0 %v3212_v22, %s4822_s29  ;;  %v4782_v22 = vld [vmem:[%s5448_s15 + $0x70] sm:$0xff] }
 0x4b6   : > { %v2655_v15 = vpop.permute.xlu1 %2654 }
 0x4b7   : > { %v2687_v5 = vadd.f32 %v6575_v51, %v2655_v15  ;;  %v2653_v7 = vpop.permute.xlu0 %2652  ;;  %v2461_v15 = vadd.f32 %v4782_v22, %v2428_v37 }
 0x4b8   : > { %v2686_v43 = vadd.f32 %v6580_v35, %v2653_v7  ;;  %3400 = vrot.lane.b32.xlu1 %v2458_v49, %s4822_s29 }
 0x4b9   : > { %2703 = vst.msk [vmem:[%s6302_s30 + $0x168] sm:$0xff] %vm476_vm0, %v2687_v5  ;;  %3398 = vrot.lane.b32.xlu0 %v2457_v39, %s4822_s29  ;;  %v2462_v39 = vadd.f32 %v4781_v25, %v2430_v31 }
 0x4ba   : > { %2702 = vst.msk [vmem:[%s6302_s30 + $0x150] sm:$0xff] %vm476_vm0, %v2686_v43  ;;  %v2779_v18 = vpop.permute.xlu1 %2778  ;;  %v7654_v43 = vld [vmem:[#allocation6_spill] sm:$0xff] }
 0x4bb   : > { %2813 = vst.msk [vmem:[%s6302_s30 + $0x138] sm:$0xff] %vm2543_vm3, %v2779_v18  ;;  %v2777_v24 = vpop.permute.xlu0 %2776 }
 0x4bc   : > { %2812 = vst.msk [vmem:[%s6302_s30 + $0x120] sm:$0xff] %vm2543_vm3, %v2777_v24  ;;  %3816 = vrot.lane.b32.xlu1 %v3773_v34, %s4823_s18 }
 0x4bd   : > { %3814 = vrot.lane.b32.xlu0 %v3772_v3, %s4823_s18 }
 0x4be   : > { %v3185_v63 = vpop.permute.xlu1 %3184 }
 0x4bf   : > { %v3183_v14 = vpop.permute.xlu0 %3182  ;;  %v3217_v30 = vmul.f32 %v3185_v63, %v7653_v56  ;;  %v4783_v63 = vld [vmem:[%s5893_s22 + $0x10] sm:$0xff] }
 0x4c0   : > { %2521 = vrot.lane.b32.xlu1 %v2460_v27, %s4823_s18  ;;  %v3216_v34 = vmul.f32 %v3183_v14, %v7654_v43  ;;  %v4784_v14 = vld [vmem:[%s5893_s22] sm:$0xff] }
 0x4c1   : > { %2519 = vrot.lane.b32.xlu0 %v2459_v52, %s4823_s18 }
 0x4c2   : > { %v6847_v9 = vpop.permute.xlu1 %3632 }
 0x4c3   : > { %v6850_v28 = vpop.permute.xlu0 %3630 }
 0x4c4   : > { %3260 = vrot.lane.b32.xlu1 %v3215_v32, %s4822_s29 }
 0x4c5   : > { %3258 = vrot.lane.b32.xlu0 %v3214_v6, %s4822_s29 }
 0x4c6   : > { %v6854_v1 = vpop.permute.xlu1 %3103 }
 0x4c7   : > { %7651 = vst [vmem:[#allocation22_spill] sm:$0xff] %v6854_v1  ;;  %v6856_v13 = vpop.permute.xlu0 %3101  ;;  %v4804_v1 = vld [vmem:[%s5893_s22 + $0x68] sm:$0xff] }
 0x4c8   : > { %7652 = vst [vmem:[#allocation25_spill] sm:$0xff] %v6856_v13  ;;  %3404 = vrot.lane.b32.xlu1 %v2460_v27, %s4822_s29 }
 0x4c9   : > { %3402 = vrot.lane.b32.xlu0 %v2459_v52, %s4822_s29 }
 0x4ca   : > { %v3745_v38 = vpop.permute.xlu1 %3744 }
 0x4cb   : > { %v3743_v49 = vpop.permute.xlu0 %3742  ;;  %v3777_v3 = vadd.f32 %v3745_v38, %v6575_v51 }
 0x4cc   : > { %3820 = vrot.lane.b32.xlu1 %v3775_v12, %s4823_s18  ;;  %v3776_v61 = vadd.f32 %v3743_v49, %v6580_v35  ;;  %v6895_v12 = vld [vmem:[%s4908_s27 + $0x8] sm:$0xff]  ;;  %v6899_v49 = vld [vmem:[%s4908_s27] sm:$0xff] }
 0x4cd   : > { %3818 = vrot.lane.b32.xlu0 %v3774_v58, %s4823_s18 }
 0x4ce   : > { %v2783_v33 = vpop.permute.xlu1 %2782 }
 0x4cf   : > { %2815 = vst.msk [vmem:[%s6302_s30 + $0x168] sm:$0xff] %vm2543_vm3, %v2783_v33  ;;  %v2781_v5 = vpop.permute.xlu0 %2780 }
 0x4d0   : > { %2814 = vst.msk [vmem:[%s6302_s30 + $0x150] sm:$0xff] %vm2543_vm3, %v2781_v5  ;;  %2525 = vrot.lane.b32.xlu1 %v2462_v39, %s4823_s18 }
 0x4d1   : > { %2523 = vrot.lane.b32.xlu0 %v2461_v15, %s4823_s18 }
 0x4d2   : > { %v2498_v7 = vpop.permute.xlu1 %2497 }
 0x4d3   : > { %2545 = vst.msk [vmem:[%s5760_s17 + $0x8] sm:$0xff] %vm2543_vm3, %v2498_v7  ;;  %v2496_v31 = vpop.permute.xlu0 %2495  ;;  %v2817_v41 = vmul.f32 %v4783_v63, %v2498_v7 }
 0x4d4   : > { %2544 = vst.msk [vmem:[%s5760_s17] sm:$0xff] %vm2543_vm3, %v2496_v31  ;;  %3264 = vrot.lane.b32.xlu1 %v3217_v30, %s4822_s29  ;;  %v2816_v32 = vmul.f32 %v4784_v14, %v2496_v31  ;;  %v4787_v30 = vld [vmem:[%s5893_s22 + $0x18] sm:$0xff] }
 0x4d5   : > { %3262 = vrot.lane.b32.xlu0 %v3216_v34, %s4822_s29  ;;  %v3859_v34 = vmul.f32 %v4787_v30, %v2498_v7  ;;  %v6923_v7 = vld [vmem:[%s4908_s27 + $0x18] sm:$0xff] }
 0x4d6   : > { %v3237_v37 = vpop.permute.xlu1 %3236 }
 0x4d7   : > { %v3235_v18 = vpop.permute.xlu0 %3234  ;;  %v3283_v38 = vadd.f32 %v6895_v12, %v3237_v37 }
 0x4d8   : > { %3408 = vrot.lane.b32.xlu1 %v2462_v39, %s4822_s29  ;;  %v3282_v25 = vadd.f32 %v6899_v49, %v3235_v18  ;;  %v4788_v18 = vld [vmem:[%s5893_s22 + $0x8] sm:$0xff] }
 0x4d9   : > { %3406 = vrot.lane.b32.xlu0 %v2461_v15, %s4822_s29 }
 0x4da   : > { %v3381_v24 = vpop.permute.xlu1 %3380 }
 0x4db   : > { %v3379_v27 = vpop.permute.xlu0 %3378  ;;  %v3427_v33 = vmul.f32 %v4783_v63, %v3381_v24 }
 0x4dc   : > { %3824 = vrot.lane.b32.xlu1 %v3777_v3, %s4823_s18  ;;  %v3426_v15 = vmul.f32 %v4784_v14, %v3379_v27  ;;  %v3858_v3 = vmul.f32 %v4788_v18, %v2496_v31 }
 0x4dd   : > { %3822 = vrot.lane.b32.xlu0 %v3776_v61, %s4823_s18 }
 0x4de   : > { %v6887_v52 = vpop.permute.xlu1 %3796 }
 0x4df   : > { %v6890_v6 = vpop.permute.xlu0 %3794 }
 0x4e0   : > { %2850 = vrot.lane.b32.xlu1 %v2817_v41, %s4822_s29 }
 0x4e1   : > { %2848 = vrot.lane.b32.xlu0 %v2816_v32, %s4822_s29  ;;  %v6927_v32 = vld [vmem:[%s4908_s27 + $0x10] sm:$0xff] }
 0x4e2   : > { %v2502_v58 = vpop.permute.xlu1 %2501 }
 0x4e3   : > { %2547 = vst.msk [vmem:[%s5760_s17 + $0x18] sm:$0xff] %vm2543_vm3, %v2502_v58  ;;  %v2500_v39 = vpop.permute.xlu0 %2499  ;;  %v2819_v24 = vmul.f32 %v6171_v60, %v2502_v58 }
 0x4e4   : > { %2546 = vst.msk [vmem:[%s5760_s17 + $0x10] sm:$0xff] %vm2543_vm3, %v2500_v39  ;;  %3316 = vrot.lane.b32.xlu1 %v3283_v38, %s4822_s29  ;;  %v2818_v63 = vmul.f32 %v6175_v36, %v2500_v39  ;;  %v4791_v38 = vld [vmem:[%s5893_s22 + $0x30] sm:$0xff] }
 0x4e5   : > { %3314 = vrot.lane.b32.xlu0 %v3282_v25, %s4822_s29 }
 0x4e6   : > { %v3241_v22 = vpop.permute.xlu1 %3240 }
 0x4e7   : > { %v3239_v5 = vpop.permute.xlu0 %3238  ;;  %v3285_v31 = vadd.f32 %v6923_v7, %v3241_v22  ;;  %v4792_v22 = vld [vmem:[%s5893_s22 + $0x20] sm:$0xff] }
 0x4e8   : > { %3460 = vrot.lane.b32.xlu1 %v3427_v33, %s4821_s28  ;;  %v3284_v60 = vadd.f32 %v6927_v32, %v3239_v5  ;;  %v4793_v5 = vld [vmem:[%s5893_s22 + $0x38] sm:$0xff] }
 0x4e9   : > { %3458 = vrot.lane.b32.xlu0 %v3426_v15, %s4821_s28 }
 0x4ea   : > { %v3385_v37 = vpop.permute.xlu1 %3384 }
 0x4eb   : > { %v3383_v61 = vpop.permute.xlu0 %3382  ;;  %v3429_v25 = vmul.f32 %v4791_v38, %v3385_v37 }
 0x4ec   : > { %3892 = vrot.lane.b32.xlu1 %v3859_v34, %s4823_s18  ;;  %v3428_v15 = vmul.f32 %v4792_v22, %v3383_v61  ;;  %v3861_v34 = vmul.f32 %v4793_v5, %v2502_v58  ;;  %v6953_v58 = vld [vmem:[%s4908_s27 + $0x28] sm:$0xff]  ;;  %v4797_v22 = vld [vmem:[%s5893_s22 + $0x50] sm:$0xff] }
 0x4ed   : > { %3890 = vrot.lane.b32.xlu0 %v3858_v3, %s4823_s18  ;;  %v4794_v3 = vld [vmem:[%s5893_s22 + $0x28] sm:$0xff] }
 0x4ee   : > { %v6915_v27 = vpop.permute.xlu1 %3800 }
 0x4ef   : > { %v6918_v41 = vpop.permute.xlu0 %3798 }
 0x4f0   : > { %2854 = vrot.lane.b32.xlu1 %v2819_v24, %s4822_s29  ;;  %v3860_v24 = vmul.f32 %v4794_v3, %v2500_v39 }
 0x4f1   : > { %2852 = vrot.lane.b32.xlu0 %v2818_v63, %s4822_s29 }
 0x4f2   : > { %v2506_v14 = vpop.permute.xlu1 %2505 }
 0x4f3   : > { %2549 = vst.msk [vmem:[%s5760_s17 + $0x28] sm:$0xff] %vm2543_vm3, %v2506_v14  ;;  %v2504_v36 = vpop.permute.xlu0 %2503  ;;  %v2821_v37 = vmul.f32 %v6219_v42, %v2506_v14 }
 0x4f4   : > { %2548 = vst.msk [vmem:[%s5760_s17 + $0x20] sm:$0xff] %vm2543_vm3, %v2504_v36  ;;  %3320 = vrot.lane.b32.xlu1 %v3285_v31, %s4822_s29  ;;  %v2820_v31 = vmul.f32 %v6223_v44, %v2504_v36 }
 0x4f5   : > { %3318 = vrot.lane.b32.xlu0 %v3284_v60, %s4822_s29 }
 0x4f6   : > { %v3245_v33 = vpop.permute.xlu1 %3244 }
 0x4f7   : > { %v3243_v30 = vpop.permute.xlu0 %3242  ;;  %v3287_v39 = vadd.f32 %v6953_v58, %v3245_v33  ;;  %v4798_v33 = vld [vmem:[%s5893_s22 + $0x40] sm:$0xff] }
 0x4f8   : > { %3464 = vrot.lane.b32.xlu1 %v3429_v25, %s4821_s28  ;;  %v6957_v25 = vld [vmem:[%s4908_s27 + $0x20] sm:$0xff] }
 0x4f9   : > { %3462 = vrot.lane.b32.xlu0 %v3428_v15, %s4821_s28  ;;  %v3286_v42 = vadd.f32 %v6957_v25, %v3243_v30  ;;  %v4799_v30 = vld [vmem:[%s5893_s22 + $0x58] sm:$0xff] }
 0x4fa   : > { %v3389_v18 = vpop.permute.xlu1 %3388 }
 0x4fb   : > { %v3387_v63 = vpop.permute.xlu0 %3386  ;;  %v3431_v15 = vmul.f32 %v4797_v22, %v3389_v18 }
 0x4fc   : > { %3896 = vrot.lane.b32.xlu1 %v3861_v34, %s4823_s18  ;;  %v3430_v34 = vmul.f32 %v4798_v33, %v3387_v63  ;;  %v6987_v33 = vld [vmem:[%s4908_s27 + $0x30] sm:$0xff] }
 0x4fd   : > { %3894 = vrot.lane.b32.xlu0 %v3860_v24, %s4823_s18  ;;  %v3863_v24 = vmul.f32 %v4799_v30, %v2506_v14  ;;  %v6983_v14 = vld [vmem:[%s4908_s27 + $0x38] sm:$0xff] }
 0x4fe   : > { %v6945_v61 = vpop.permute.xlu1 %3804 }
 0x4ff   : > { %v6948_v60 = vpop.permute.xlu0 %3802 }
 0x500   : > { %2858 = vrot.lane.b32.xlu1 %v2821_v37, %s4822_s29 }
 0x501   : > { %2856 = vrot.lane.b32.xlu0 %v2820_v31, %s4822_s29  ;;  %v4800_v31 = vld [vmem:[%s5893_s22 + $0x48] sm:$0xff] }
 0x502   : > { %v2510_v38 = vpop.permute.xlu1 %2509 }
 0x503   : > { %2551 = vst.msk [vmem:[%s5760_s17 + $0x38] sm:$0xff] %vm2543_vm3, %v2510_v38  ;;  %v2508_v44 = vpop.permute.xlu0 %2507  ;;  %v2823_v18 = vmul.f32 %v6271_v47, %v2510_v38 }
 0x504   : > { %2550 = vst.msk [vmem:[%s5760_s17 + $0x30] sm:$0xff] %vm2543_vm3, %v2508_v44  ;;  %3324 = vrot.lane.b32.xlu1 %v3287_v39, %s4822_s29  ;;  %v3862_v39 = vmul.f32 %v4800_v31, %v2504_v36  ;;  %v3864_v54 = vmul.f32 %v4804_v1, %v2508_v44 }
 0x505   : > { %3322 = vrot.lane.b32.xlu0 %v3286_v42, %s4822_s29  ;;  %v2822_v42 = vmul.f32 %v6275_v11, %v2508_v44 }
 0x506   : > { %v3249_v5 = vpop.permute.xlu1 %3248 }
 0x507   : > { %v3247_v3 = vpop.permute.xlu0 %3246  ;;  %v3289_v36 = vadd.f32 %v6983_v14, %v3249_v5 }
 0x508   : > { %3468 = vrot.lane.b32.xlu1 %v3431_v15, %s4821_s28 }
 0x509   : > { %3466 = vrot.lane.b32.xlu0 %v3430_v34, %s4821_s28  ;;  %v3288_v34 = vadd.f32 %v6987_v33, %v3247_v3  ;;  %v4803_v3 = vld [vmem:[%s5893_s22 + $0x78] sm:$0xff] }
 0x50a   : > { %v3393_v37 = vpop.permute.xlu1 %3392 }
 0x50b   : > { %v3391_v13 = vpop.permute.xlu0 %3390 }
 0x50c   : > { %3900 = vrot.lane.b32.xlu1 %v3863_v24, %s4823_s18  ;;  %v3433_v24 = vmul.f32 %v3393_v37, %v6271_v47  ;;  %v3432_v5 = vmul.f32 %v3391_v13, %v6275_v11 }
 0x50d   : > { %3898 = vrot.lane.b32.xlu0 %v3862_v39, %s4823_s18 }
 0x50e   : > { %v6975_v63 = vpop.permute.xlu1 %3808 }
 0x50f   : > { %v6978_v22 = vpop.permute.xlu0 %3806 }
 0x510   : > { %2862 = vrot.lane.b32.xlu1 %v2823_v18, %s4822_s29  ;;  %v3865_v18 = vmul.f32 %v4803_v3, %v2510_v38 }
 0x511   : > { %2860 = vrot.lane.b32.xlu0 %v2822_v42, %s4822_s29 }
 0x512   : > { %v2514_v15 = vpop.permute.xlu1 %2513 }
 0x513   : > { %2553 = vst.msk [vmem:[%s5760_s17 + $0x48] sm:$0xff] %vm2543_vm3, %v2514_v15  ;;  %v2512_v30 = vpop.permute.xlu0 %2511  ;;  %v2825_v47 = vmul.f32 %v6361_v50, %v2514_v15 }
 0x514   : > { %2552 = vst.msk [vmem:[%s5760_s17 + $0x40] sm:$0xff] %vm2543_vm3, %v2512_v30  ;;  %3328 = vrot.lane.b32.xlu1 %v3289_v36, %s4822_s29  ;;  %v2824_v13 = vmul.f32 %v6365_v29, %v2512_v30 }
 0x515   : > { %3326 = vrot.lane.b32.xlu0 %v3288_v34, %s4822_s29 }
 0x516   : > { %v3253_v31 = vpop.permute.xlu1 %3252 }
 0x517   : > { %v3251_v39 = vpop.permute.xlu0 %3250  ;;  %v3291_v38 = vadd.f32 %v3253_v31, %v6319_v8  ;;  %v7655_v8 = vld [vmem:[#allocation7_spill] sm:$0xff] }
 0x518   : > { %3472 = vrot.lane.b32.xlu1 %v3433_v24, %s4821_s28  ;;  %v3290_v44 = vadd.f32 %v3251_v39, %v6324_v21  ;;  %v3867_v21 = vmul.f32 %v7655_v8, %v2514_v15  ;;  %v7656_v39 = vld [vmem:[#allocation8_spill] sm:$0xff] }
 0x519   : > { %3470 = vrot.lane.b32.xlu0 %v3432_v5, %s4821_s28 }
 0x51a   : > { %v3397_v42 = vpop.permute.xlu1 %3396 }
 0x51b   : > { %v3395_v36 = vpop.permute.xlu0 %3394  ;;  %v3435_v34 = vmul.f32 %v3397_v42, %v6361_v50 }
 0x51c   : > { %3904 = vrot.lane.b32.xlu1 %v3865_v18, %s4823_s18  ;;  %v3434_v5 = vmul.f32 %v3395_v36, %v6365_v29  ;;  %v3866_v18 = vmul.f32 %v7656_v39, %v2512_v30 }
 0x51d   : > { %3902 = vrot.lane.b32.xlu0 %v3864_v54, %s4823_s18 }
 0x51e   : > { %v7005_v11 = vpop.permute.xlu1 %3812 }
 0x51f   : > { %v7008_v37 = vpop.permute.xlu0 %3810 }
 0x520   : > { %2866 = vrot.lane.b32.xlu1 %v2825_v47, %s4822_s29 }
 0x521   : > { %2864 = vrot.lane.b32.xlu0 %v2824_v13, %s4822_s29 }
 0x522   : > { %v2518_v1 = vpop.permute.xlu1 %2517 }
 0x523   : > { %2555 = vst.msk [vmem:[%s5760_s17 + $0x58] sm:$0xff] %vm2543_vm3, %v2518_v1  ;;  %v2516_v54 = vpop.permute.xlu0 %2515  ;;  %v2827_v50 = vmul.f32 %v6447_v59, %v2518_v1 }
 0x524   : > { %2554 = vst.msk [vmem:[%s5760_s17 + $0x50] sm:$0xff] %vm2543_vm3, %v2516_v54  ;;  %3332 = vrot.lane.b32.xlu1 %v3291_v38, %s4822_s29  ;;  %v2826_v42 = vmul.f32 %v6451_v4, %v2516_v54 }
 0x525   : > { %3330 = vrot.lane.b32.xlu0 %v3290_v44, %s4822_s29 }
 0x526   : > { %v3257_v24 = vpop.permute.xlu1 %3256 }
 0x527   : > { %v3255_v3 = vpop.permute.xlu0 %3254  ;;  %v3293_v15 = vadd.f32 %v3257_v24, %v6403_v46  ;;  %v7657_v46 = vld [vmem:[#allocation12_spill] sm:$0xff] }
 0x528   : > { %3476 = vrot.lane.b32.xlu1 %v3435_v34, %s4821_s28  ;;  %v3292_v13 = vadd.f32 %v3255_v3, %v6408_v23  ;;  %v3869_v23 = vmul.f32 %v7657_v46, %v2518_v1  ;;  %v7658_v3 = vld [vmem:[#allocation13_spill] sm:$0xff] }
 0x529   : > { %3474 = vrot.lane.b32.xlu0 %v3434_v5, %s4821_s28 }
 0x52a   : > { %v3401_v31 = vpop.permute.xlu1 %3400 }
 0x52b   : > { %v3399_v47 = vpop.permute.xlu0 %3398  ;;  %v3437_v44 = vmul.f32 %v3401_v31, %v6447_v59 }
 0x52c   : > { %3908 = vrot.lane.b32.xlu1 %v3867_v21, %s4823_s18  ;;  %v3436_v5 = vmul.f32 %v3399_v47, %v6451_v4  ;;  %v3868_v21 = vmul.f32 %v7658_v3, %v2516_v54 }
 0x52d   : > { %3906 = vrot.lane.b32.xlu0 %v3866_v18, %s4823_s18 }
 0x52e   : > { %v7029_v29 = vpop.permute.xlu1 %3816 }
 0x52f   : > { %v7032_v36 = vpop.permute.xlu0 %3814 }
 0x530   : > { %2870 = vrot.lane.b32.xlu1 %v2827_v50, %s4822_s29 }
 0x531   : > { %2868 = vrot.lane.b32.xlu0 %v2826_v42, %s4822_s29 }
 0x532   : > { %v2522_v30 = vpop.permute.xlu1 %2521 }
 0x533   : > { %2557 = vst.msk [vmem:[%s5760_s17 + $0x68] sm:$0xff] %vm2543_vm3, %v2522_v30  ;;  %v2520_v38 = vpop.permute.xlu0 %2519  ;;  %v2829_v59 = vmul.f32 %v6533_v53, %v2522_v30 }
 0x534   : > { %2556 = vst.msk [vmem:[%s5760_s17 + $0x60] sm:$0xff] %vm2543_vm3, %v2520_v38  ;;  %3336 = vrot.lane.b32.xlu1 %v3293_v15, %s4822_s29  ;;  %v2828_v31 = vmul.f32 %v6537_v16, %v2520_v38 }
 0x535   : > { %3334 = vrot.lane.b32.xlu0 %v3292_v13, %s4822_s29 }
 0x536   : > { %v3261_v34 = vpop.permute.xlu1 %3260 }
 0x537   : > { %v3259_v8 = vpop.permute.xlu0 %3258  ;;  %v3295_v1 = vadd.f32 %v3261_v34, %v6489_v26  ;;  %v7659_v26 = vld [vmem:[#allocation34_spill] sm:$0xff] }
 0x538   : > { %3480 = vrot.lane.b32.xlu1 %v3437_v44, %s4821_s28  ;;  %v3294_v47 = vadd.f32 %v3259_v8, %v6494_v57  ;;  %v3871_v57 = vmul.f32 %v7659_v26, %v2522_v30 }
 0x539   : > { %3478 = vrot.lane.b32.xlu0 %v3436_v5, %s4821_s28  ;;  %v7660_v5 = vld [vmem:[#allocation33_spill] sm:$0xff] }
 0x53a   : > { %v3405_v24 = vpop.permute.xlu1 %3404  ;;  %v3870_v8 = vmul.f32 %v7660_v5, %v2520_v38 }
 0x53b   : > { %v3403_v39 = vpop.permute.xlu0 %3402  ;;  %v3439_v42 = vmul.f32 %v3405_v24, %v6533_v53 }
 0x53c   : > { %3912 = vrot.lane.b32.xlu1 %v3869_v23, %s4823_s18  ;;  %v3438_v13 = vmul.f32 %v3403_v39, %v6537_v16 }
 0x53d   : > { %3910 = vrot.lane.b32.xlu0 %v3868_v21, %s4823_s18 }
 0x53e   : > { %v7053_v4 = vpop.permute.xlu1 %3820 }
 0x53f   : > { %v7056_v18 = vpop.permute.xlu0 %3818 }
 0x540   : > { %2874 = vrot.lane.b32.xlu1 %v2829_v59, %s4822_s29 }
 0x541   : > { %2872 = vrot.lane.b32.xlu0 %v2828_v31, %s4822_s29 }
 0x542   : > { %v2526_v54 = vpop.permute.xlu1 %2525 }
 0x543   : > { %2559 = vst.msk [vmem:[%s5760_s17 + $0x78] sm:$0xff] %vm2543_vm3, %v2526_v54  ;;  %v2524_v50 = vpop.permute.xlu0 %2523  ;;  %v2831_v53 = vmul.f32 %v7653_v56, %v2526_v54 }
 0x544   : > { %2558 = vst.msk [vmem:[%s5760_s17 + $0x70] sm:$0xff] %vm2543_vm3, %v2524_v50  ;;  %3340 = vrot.lane.b32.xlu1 %v3295_v1, %s4822_s29  ;;  %v2830_v16 = vmul.f32 %v7654_v43, %v2524_v50 }
 0x545   : > { %3338 = vrot.lane.b32.xlu0 %v3294_v47, %s4822_s29 }
 0x546   : > { %v3265_v15 = vpop.permute.xlu1 %3264 }
 0x547   : > { %v3263_v44 = vpop.permute.xlu0 %3262  ;;  %v3297_v30 = vadd.f32 %v3265_v15, %v6575_v51  ;;  %v7661_v51 = vld [vmem:[#allocation35_spill] sm:$0xff] }
 0x548   : > { %3484 = vrot.lane.b32.xlu1 %v3439_v42, %s4821_s28  ;;  %v3296_v3 = vadd.f32 %v3263_v44, %v6580_v35  ;;  %v3873_v35 = vmul.f32 %v7661_v51, %v2526_v54  ;;  %v7662_v42 = vld [vmem:[#allocation18_spill] sm:$0xff] }
 0x549   : > { %3482 = vrot.lane.b32.xlu0 %v3438_v13, %s4821_s28  ;;  %v7663_v13 = vld [vmem:[#allocation28_spill] sm:$0xff] }
 0x54a   : > { %v3409_v34 = vpop.permute.xlu1 %3408  ;;  %v3651_v44 = vadd.f32 %v6895_v12, %v7663_v13 }
 0x54b   : > { %v3407_v46 = vpop.permute.xlu0 %3406  ;;  %v3441_v39 = vmul.f32 %v3409_v34, %v7653_v56  ;;  %v3872_v56 = vmul.f32 %v7662_v42, %v2524_v50 }
 0x54c   : > { %3916 = vrot.lane.b32.xlu1 %v3871_v57, %s4823_s18  ;;  %v3440_v31 = vmul.f32 %v3407_v46, %v7654_v43  ;;  %v7664_v57 = vld [vmem:[#allocation9_spill] sm:$0xff] }
 0x54d   : > { %3914 = vrot.lane.b32.xlu0 %v3870_v8, %s4823_s18  ;;  %v3650_v54 = vadd.f32 %v6899_v49, %v7664_v57  ;;  %v7667_v57 = vld [vmem:[#allocation4_spill] sm:$0xff] }
 0x54e   : > { %v7077_v23 = vpop.permute.xlu1 %3824 }
 0x54f   : > { %v7080_v24 = vpop.permute.xlu0 %3822 }
 0x550   : > { %2878 = vrot.lane.b32.xlu1 %v2831_v53, %s4822_s29 }
 0x551   : > { %2876 = vrot.lane.b32.xlu0 %v2830_v16, %s4822_s29 }
 0x552   : > { %v2851_v38 = vpop.permute.xlu1 %2850 }
 0x553   : > { %v2849_v21 = vpop.permute.xlu0 %2848  ;;  %v2897_v50 = vadd.f32 %v6895_v12, %v2851_v38 }
 0x554   : > { %3344 = vrot.lane.b32.xlu1 %v3297_v30, %s4822_s29  ;;  %v2896_v5 = vadd.f32 %v6899_v49, %v2849_v21 }
 0x555   : > { %3342 = vrot.lane.b32.xlu0 %v3296_v3, %s4822_s29 }
 0x556   : > { %v3317_v59 = vpop.permute.xlu1 %3316 }
 0x557   : > { %3363 = vst.msk [vmem:[%s6302_s30 + $0x20] sm:$0xff] %vm476_vm0, %v3317_v59  ;;  %v3315_v1 = vpop.permute.xlu0 %3314 }
 0x558   : > { %3362 = vst.msk [vmem:[%s6302_s30 + $0x8] sm:$0xff] %vm476_vm0, %v3315_v1  ;;  %3488 = vrot.lane.b32.xlu1 %v3441_v39, %s4821_s28  ;;  %v7665_v39 = vld [vmem:[#allocation32_spill] sm:$0xff]  ;;  %v7666_v1 = vld [vmem:[#allocation30_spill] sm:$0xff] }
 0x559   : > { %3486 = vrot.lane.b32.xlu0 %v3440_v31, %s4821_s28  ;;  %v3653_v59 = vadd.f32 %v6923_v7, %v7665_v39  ;;  %v3652_v51 = vadd.f32 %v6927_v32, %v7666_v1  ;;  %v7670_v39 = vld [vmem:[#allocation15_spill] sm:$0xff] }
 0x55a   : > { %v3461_v47 = vpop.permute.xlu1 %3460 }
 0x55b   : > { %v3507_v43 = vadd.f32 %v6895_v12, %v3461_v47  ;;  %v3459_v15 = vpop.permute.xlu0 %3458 }
 0x55c   : > { %v3506_v26 = vadd.f32 %v6899_v49, %v3459_v15  ;;  %3920 = vrot.lane.b32.xlu1 %v3873_v35, %s4823_s18 }
 0x55d   : > { %3523 = vst.msk [vmem:[%s6302_s30 + $0x20] sm:$0xff] %vm2543_vm3, %v3507_v43  ;;  %3918 = vrot.lane.b32.xlu0 %v3872_v56, %s4823_s18 }
 0x55e   : > { %3667 = vst.msk [vmem:[%s6302_s30 + $0x20] sm:$0xff] %vm2976_vm4, %v3651_v44  ;;  %v3893_v34 = vpop.permute.xlu1 %3892 }
 0x55f   : > { %3522 = vst.msk [vmem:[%s6302_s30 + $0x8] sm:$0xff] %vm2543_vm3, %v3506_v26  ;;  %v3891_v8 = vpop.permute.xlu0 %3890  ;;  %v3939_v46 = vadd.f32 %v6895_v12, %v3893_v34  ;;  %v7668_v34 = vld [vmem:[#allocation5_spill] sm:$0xff] }
 0x560   : > { %3843 = vst.msk [vmem:[%s6302_s30 + $0x20] sm:$0xff] %vm3121_vm5, %v6887_v52  ;;  %2930 = vrot.lane.b32.xlu1 %v2897_v50, %s4821_s28  ;;  %v3938_v16 = vadd.f32 %v6899_v49, %v3891_v8 }
 0x561   : > { %3666 = vst.msk [vmem:[%s6302_s30 + $0x8] sm:$0xff] %vm2976_vm4, %v3650_v54  ;;  %2928 = vrot.lane.b32.xlu0 %v2896_v5, %s4821_s28  ;;  %v3655_v54 = vadd.f32 %v6953_v58, %v7667_v57  ;;  %v3654_v5 = vadd.f32 %v6957_v25, %v7668_v34 }
 0x562   : > { %3842 = vst.msk [vmem:[%s6302_s30 + $0x8] sm:$0xff] %vm3121_vm5, %v6890_v6  ;;  %v2855_v53 = vpop.permute.xlu1 %2854 }
 0x563   : > { %v2853_v30 = vpop.permute.xlu0 %2852  ;;  %v2899_v52 = vadd.f32 %v6923_v7, %v2855_v53 }
 0x564   : > { %3972 = vrot.lane.b32.xlu1 %v3939_v46, %s4821_s28  ;;  %v2898_v38 = vadd.f32 %v6927_v32, %v2853_v30 }
 0x565   : > { %3970 = vrot.lane.b32.xlu0 %v3938_v16, %s4821_s28 }
 0x566   : > { %v3321_v6 = vpop.permute.xlu1 %3320 }
 0x567   : > { %3365 = vst.msk [vmem:[%s6302_s30 + $0x50] sm:$0xff] %vm476_vm0, %v3321_v6  ;;  %v3319_v12 = vpop.permute.xlu0 %3318 }
 0x568   : > { %3364 = vst.msk [vmem:[%s6302_s30 + $0x38] sm:$0xff] %vm476_vm0, %v3319_v12  ;;  %2934 = vrot.lane.b32.xlu1 %v2899_v52, %s4821_s28 }
 0x569   : > { %2932 = vrot.lane.b32.xlu0 %v2898_v38, %s4821_s28 }
 0x56a   : > { %v3465_v49 = vpop.permute.xlu1 %3464 }
 0x56b   : > { %v3509_v3 = vadd.f32 %v6923_v7, %v3465_v49  ;;  %v3463_v21 = vpop.permute.xlu0 %3462  ;;  %v7669_v49 = vld [vmem:[#allocation14_spill] sm:$0xff] }
 0x56c   : > { %v3508_v31 = vadd.f32 %v6927_v32, %v3463_v21 }
 0x56d   : > { %3525 = vst.msk [vmem:[%s6302_s30 + $0x50] sm:$0xff] %vm2543_vm3, %v3509_v3  ;;  %v3657_v3 = vadd.f32 %v6983_v14, %v7669_v49 }
 0x56e   : > { %3669 = vst.msk [vmem:[%s6302_s30 + $0x50] sm:$0xff] %vm2976_vm4, %v3653_v59  ;;  %v3897_v35 = vpop.permute.xlu1 %3896  ;;  %v3656_v59 = vadd.f32 %v6987_v33, %v7670_v39 }
 0x56f   : > { %3524 = vst.msk [vmem:[%s6302_s30 + $0x38] sm:$0xff] %vm2543_vm3, %v3508_v31  ;;  %v3941_v47 = vadd.f32 %v6923_v7, %v3897_v35  ;;  %v3895_v42 = vpop.permute.xlu0 %3894 }
 0x570   : > { %3845 = vst.msk [vmem:[%s6302_s30 + $0x50] sm:$0xff] %vm3121_vm5, %v6915_v27  ;;  %v3940_v56 = vadd.f32 %v6927_v32, %v3895_v42  ;;  %v4805_v42 = vld [vmem:[%s4908_s27 + $0x48] sm:$0xff] }
 0x571   : > { %3668 = vst.msk [vmem:[%s6302_s30 + $0x38] sm:$0xff] %vm2976_vm4, %v3652_v51  ;;  %3976 = vrot.lane.b32.xlu1 %v3941_v47, %s4821_s28 }
 0x572   : > { %3844 = vst.msk [vmem:[%s6302_s30 + $0x38] sm:$0xff] %vm3121_vm5, %v6918_v41  ;;  %v2859_v43 = vpop.permute.xlu1 %2858  ;;  %3974 = vrot.lane.b32.xlu0 %v3940_v56, %s4821_s28 }
 0x573   : > { %v2901_v15 = vadd.f32 %v6953_v58, %v2859_v43  ;;  %v2857_v27 = vpop.permute.xlu0 %2856  ;;  %v4806_v43 = vld [vmem:[%s4908_s27 + $0x40] sm:$0xff] }
 0x574   : > { %v2900_v13 = vadd.f32 %v6957_v25, %v2857_v27 }
 0x575   : > { %2938 = vrot.lane.b32.xlu1 %v2901_v15, %s4821_s28 }
 0x576   : > { %v3325_v7 = vpop.permute.xlu1 %3324  ;;  %2936 = vrot.lane.b32.xlu0 %v2900_v13, %s4821_s28 }
 0x577   : > { %3367 = vst.msk [vmem:[%s6302_s30 + $0x80] sm:$0xff] %vm476_vm0, %v3325_v7  ;;  %v3323_v41 = vpop.permute.xlu0 %3322  ;;  %v3659_v7 = vadd.f32 %v4805_v42, %v6668_v19 }
 0x578   : > { %3366 = vst.msk [vmem:[%s6302_s30 + $0x68] sm:$0xff] %vm476_vm0, %v3323_v41 }
 0x57a   : > { %v3469_v32 = vpop.permute.xlu1 %3468 }
 0x57b   : > { %v3511_v44 = vadd.f32 %v6953_v58, %v3469_v32  ;;  %v3467_v26 = vpop.permute.xlu0 %3466  ;;  %v3658_v32 = vadd.f32 %v4806_v43, %v6672_v62 }
 0x57c   : > { %v3510_v50 = vadd.f32 %v6957_v25, %v3467_v26 }
 0x57d   : > { %3527 = vst.msk [vmem:[%s6302_s30 + $0x80] sm:$0xff] %vm2543_vm3, %v3511_v44 }
 0x57e   : > { %3671 = vst.msk [vmem:[%s6302_s30 + $0x80] sm:$0xff] %vm2976_vm4, %v3655_v54  ;;  %v3901_v8 = vpop.permute.xlu1 %3900  ;;  %v4807_v54 = vld [vmem:[%s4908_s27 + $0x58] sm:$0xff] }
 0x57f   : > { %3526 = vst.msk [vmem:[%s6302_s30 + $0x68] sm:$0xff] %vm2543_vm3, %v3510_v50  ;;  %v3943_v46 = vadd.f32 %v6953_v58, %v3901_v8  ;;  %v3899_v53 = vpop.permute.xlu0 %3898 }
 0x580   : > { %3847 = vst.msk [vmem:[%s6302_s30 + $0x80] sm:$0xff] %vm3121_vm5, %v6945_v61  ;;  %v3942_v16 = vadd.f32 %v6957_v25, %v3899_v53 }
 0x581   : > { %3670 = vst.msk [vmem:[%s6302_s30 + $0x68] sm:$0xff] %vm2976_vm4, %v3654_v5  ;;  %3980 = vrot.lane.b32.xlu1 %v3943_v46, %s4821_s28 }
 0x582   : > { %3846 = vst.msk [vmem:[%s6302_s30 + $0x68] sm:$0xff] %vm3121_vm5, %v6948_v60  ;;  %v2863_v30 = vpop.permute.xlu1 %2862  ;;  %3978 = vrot.lane.b32.xlu0 %v3942_v16, %s4821_s28 }
 0x583   : > { %v2903_v52 = vadd.f32 %v6983_v14, %v2863_v30  ;;  %v2861_v61 = vpop.permute.xlu0 %2860  ;;  %v3661_v30 = vadd.f32 %v4807_v54, %v6732_v40 }
 0x584   : > { %v2902_v6 = vadd.f32 %v6987_v33, %v2861_v61 }
 0x585   : > { %2942 = vrot.lane.b32.xlu1 %v2903_v52, %s4821_s28 }
 0x586   : > { %v3329_v58 = vpop.permute.xlu1 %3328  ;;  %2940 = vrot.lane.b32.xlu0 %v2902_v6, %s4821_s28 }
 0x587   : > { %3369 = vst.msk [vmem:[%s6302_s30 + $0xb0] sm:$0xff] %vm476_vm0, %v3329_v58  ;;  %v3327_v60 = vpop.permute.xlu0 %3326 }
 0x588   : > { %3368 = vst.msk [vmem:[%s6302_s30 + $0x98] sm:$0xff] %vm476_vm0, %v3327_v60 }
 0x58a   : > { %v3473_v25 = vpop.permute.xlu1 %3472 }
 0x58b   : > { %v3513_v38 = vadd.f32 %v6983_v14, %v3473_v25  ;;  %v3471_v12 = vpop.permute.xlu0 %3470  ;;  %v4809_v25 = vld [vmem:[%s4908_s27 + $0x68] sm:$0xff] }
 0x58c   : > { %v3512_v21 = vadd.f32 %v6987_v33, %v3471_v12 }
 0x58d   : > { %3529 = vst.msk [vmem:[%s6302_s30 + $0xb0] sm:$0xff] %vm2543_vm3, %v3513_v38 }
 0x58e   : > { %3673 = vst.msk [vmem:[%s6302_s30 + $0xb0] sm:$0xff] %vm2976_vm4, %v3657_v3  ;;  %v3905_v31 = vpop.permute.xlu1 %3904 }
 0x58f   : > { %3528 = vst.msk [vmem:[%s6302_s30 + $0x98] sm:$0xff] %vm2543_vm3, %v3512_v21  ;;  %v3945_v1 = vadd.f32 %v6983_v14, %v3905_v31  ;;  %v3903_v51 = vpop.permute.xlu0 %3902  ;;  %v3663_v31 = vadd.f32 %v4809_v25, %v6794_v17 }
 0x590   : > { %3849 = vst.msk [vmem:[%s6302_s30 + $0xb0] sm:$0xff] %vm3121_vm5, %v6975_v63  ;;  %v3944_v35 = vadd.f32 %v6987_v33, %v3903_v51 }
 0x591   : > { %3672 = vst.msk [vmem:[%s6302_s30 + $0x98] sm:$0xff] %vm2976_vm4, %v3656_v59  ;;  %3984 = vrot.lane.b32.xlu1 %v3945_v1, %s4821_s28 }
 0x592   : > { %3848 = vst.msk [vmem:[%s6302_s30 + $0x98] sm:$0xff] %vm3121_vm5, %v6978_v22  ;;  %v2867_v47 = vpop.permute.xlu1 %2866  ;;  %3982 = vrot.lane.b32.xlu0 %v3944_v35, %s4821_s28 }
 0x593   : > { %v2905_v56 = vadd.f32 %v4805_v42, %v2867_v47  ;;  %v2865_v63 = vpop.permute.xlu0 %2864 }
 0x594   : > { %v2904_v14 = vadd.f32 %v4806_v43, %v2865_v63 }
 0x595   : > { %2946 = vrot.lane.b32.xlu1 %v2905_v56, %s4821_s28  ;;  %v4811_v56 = vld [vmem:[%s4908_s27 + $0x78] sm:$0xff] }
 0x596   : > { %v3333_v15 = vpop.permute.xlu1 %3332  ;;  %2944 = vrot.lane.b32.xlu0 %v2904_v14, %s4821_s28 }
 0x597   : > { %3371 = vst.msk [vmem:[%s6302_s30 + $0xe0] sm:$0xff] %vm476_vm0, %v3333_v15  ;;  %v3331_v22 = vpop.permute.xlu0 %3330 }
 0x598   : > { %3370 = vst.msk [vmem:[%s6302_s30 + $0xc8] sm:$0xff] %vm476_vm0, %v3331_v22 }
 0x59a   : > { %v3477_v33 = vpop.permute.xlu1 %3476 }
 0x59b   : > { %v3515_v27 = vadd.f32 %v4805_v42, %v3477_v33  ;;  %v3475_v13 = vpop.permute.xlu0 %3474 }
 0x59c   : > { %v3514_v41 = vadd.f32 %v4806_v43, %v3475_v13  ;;  %v3665_v13 = vadd.f32 %v4811_v56, %v6847_v9 }
 0x59d   : > { %3531 = vst.msk [vmem:[%s6302_s30 + $0xe0] sm:$0xff] %vm2543_vm3, %v3515_v27 }
 0x59e   : > { %3675 = vst.msk [vmem:[%s6302_s30 + $0xe0] sm:$0xff] %vm2976_vm4, %v3659_v7  ;;  %v3909_v44 = vpop.permute.xlu1 %3908 }
 0x59f   : > { %3530 = vst.msk [vmem:[%s6302_s30 + $0xc8] sm:$0xff] %vm2543_vm3, %v3514_v41  ;;  %v3947_v26 = vadd.f32 %v4805_v42, %v3909_v44  ;;  %v3907_v19 = vpop.permute.xlu0 %3906 }
 0x5a0   : > { %3851 = vst.msk [vmem:[%s6302_s30 + $0xe0] sm:$0xff] %vm3121_vm5, %v7005_v11  ;;  %v3946_v62 = vadd.f32 %v4806_v43, %v3907_v19  ;;  %v4808_v11 = vld [vmem:[%s4908_s27 + $0x50] sm:$0xff]  ;;  %v7671_v19 = vld [vmem:[#allocation2_spill] sm:$0xff] }
 0x5a1   : > { %3674 = vst.msk [vmem:[%s6302_s30 + $0xc8] sm:$0xff] %vm2976_vm4, %v3658_v32  ;;  %3988 = vrot.lane.b32.xlu1 %v3947_v26, %s4821_s28  ;;  %v3660_v61 = vadd.f32 %v4808_v11, %v6736_v2 }
 0x5a2   : > { %3850 = vst.msk [vmem:[%s6302_s30 + $0xc8] sm:$0xff] %vm3121_vm5, %v7008_v37  ;;  %v2871_v57 = vpop.permute.xlu1 %2870  ;;  %3986 = vrot.lane.b32.xlu0 %v3946_v62, %s4821_s28 }
 0x5a3   : > { %v2907_v50 = vadd.f32 %v4807_v54, %v2871_v57  ;;  %v2869_v34 = vpop.permute.xlu0 %2868 }
 0x5a4   : > { %v2906_v5 = vadd.f32 %v4808_v11, %v2869_v34  ;;  %v7673_v34 = vld [vmem:[#allocation10_spill] sm:$0xff] }
 0x5a5   : > { %2950 = vrot.lane.b32.xlu1 %v2907_v50, %s4821_s28 }
 0x5a6   : > { %v3337_v8 = vpop.permute.xlu1 %3336  ;;  %2948 = vrot.lane.b32.xlu0 %v2906_v5, %s4821_s28 }
 0x5a7   : > { %3373 = vst.msk [vmem:[%s6302_s30 + $0x110] sm:$0xff] %vm476_vm0, %v3337_v8  ;;  %v3335_v37 = vpop.permute.xlu0 %3334 }
 0x5a8   : > { %3372 = vst.msk [vmem:[%s6302_s30 + $0xf8] sm:$0xff] %vm476_vm0, %v3335_v37 }
 0x5aa   : > { %v3481_v46 = vpop.permute.xlu1 %3480 }
 0x5ab   : > { %v3517_v53 = vadd.f32 %v4807_v54, %v3481_v46  ;;  %v3479_v16 = vpop.permute.xlu0 %3478 }
 0x5ac   : > { %v3516_v52 = vadd.f32 %v4808_v11, %v3479_v16  ;;  %v7676_v16 = vld [vmem:[#allocation17_spill] sm:$0xff] }
 0x5ad   : > { %3533 = vst.msk [vmem:[%s6302_s30 + $0x110] sm:$0xff] %vm2543_vm3, %v3517_v53  ;;  %v7675_v53 = vld [vmem:[#allocation16_spill] sm:$0xff] }
 0x5ae   : > { %3677 = vst.msk [vmem:[%s6302_s30 + $0x110] sm:$0xff] %vm2976_vm4, %v3661_v30  ;;  %v3913_v6 = vpop.permute.xlu1 %3912 }
 0x5af   : > { %3532 = vst.msk [vmem:[%s6302_s30 + $0xf8] sm:$0xff] %vm2543_vm3, %v3516_v52  ;;  %v3949_v58 = vadd.f32 %v4807_v54, %v3913_v6  ;;  %v3911_v40 = vpop.permute.xlu0 %3910 }
 0x5b0   : > { %3853 = vst.msk [vmem:[%s6302_s30 + $0x110] sm:$0xff] %vm3121_vm5, %v7029_v29  ;;  %v3948_v2 = vadd.f32 %v4808_v11, %v3911_v40  ;;  %v4810_v29 = vld [vmem:[%s4908_s27 + $0x60] sm:$0xff]  ;;  %v7674_v11 = vld [vmem:[#allocation11_spill] sm:$0xff]  ;;  %v7678_v40 = vld [vmem:[#allocation20_spill] sm:$0xff] }
 0x5b1   : > { %3676 = vst.msk [vmem:[%s6302_s30 + $0xf8] sm:$0xff] %vm2976_vm4, %v3660_v61  ;;  %3992 = vrot.lane.b32.xlu1 %v3949_v58, %s4821_s28  ;;  %v3662_v51 = vadd.f32 %v4810_v29, %v6796_v45  ;;  %v7677_v58 = vld [vmem:[#allocation21_spill] sm:$0xff] }
 0x5b2   : > { %3852 = vst.msk [vmem:[%s6302_s30 + $0xf8] sm:$0xff] %vm3121_vm5, %v7032_v36  ;;  %v2875_v60 = vpop.permute.xlu1 %2874  ;;  %3990 = vrot.lane.b32.xlu0 %v3948_v2, %s4821_s28 }
 0x5b3   : > { %v2909_v38 = vadd.f32 %v4809_v25, %v2875_v60  ;;  %v2873_v12 = vpop.permute.xlu0 %2872 }
 0x5b4   : > { %v2908_v49 = vadd.f32 %v4810_v29, %v2873_v12 }
 0x5b5   : > { %2954 = vrot.lane.b32.xlu1 %v2909_v38, %s4821_s28 }
 0x5b6   : > { %v3341_v3 = vpop.permute.xlu1 %3340  ;;  %2952 = vrot.lane.b32.xlu0 %v2908_v49, %s4821_s28 }
 0x5b7   : > { %3375 = vst.msk [vmem:[%s6302_s30 + $0x140] sm:$0xff] %vm476_vm0, %v3341_v3  ;;  %v3339_v36 = vpop.permute.xlu0 %3338 }
 0x5b8   : > { %3374 = vst.msk [vmem:[%s6302_s30 + $0x128] sm:$0xff] %vm476_vm0, %v3339_v36 }
 0x5ba   : > { %v3485_v21 = vpop.permute.xlu1 %3484 }
 0x5bb   : > { %v3519_v39 = vadd.f32 %v4809_v25, %v3485_v21  ;;  %v3483_v59 = vpop.permute.xlu0 %3482 }
 0x5bc   : > { %v3518_v1 = vadd.f32 %v4810_v29, %v3483_v59 }
 0x5bd   : > { %3535 = vst.msk [vmem:[%s6302_s30 + $0x140] sm:$0xff] %vm2543_vm3, %v3519_v39 }
 0x5be   : > { %3679 = vst.msk [vmem:[%s6302_s30 + $0x140] sm:$0xff] %vm2976_vm4, %v3663_v31  ;;  %v3917_v35 = vpop.permute.xlu1 %3916 }
 0x5bf   : > { %3534 = vst.msk [vmem:[%s6302_s30 + $0x128] sm:$0xff] %vm2543_vm3, %v3518_v1  ;;  %v3951_v47 = vadd.f32 %v4809_v25, %v3917_v35  ;;  %v3915_v17 = vpop.permute.xlu0 %3914  ;;  %v7680_v1 = vld [vmem:[#allocation22_spill] sm:$0xff] }
 0x5c0   : > { %3855 = vst.msk [vmem:[%s6302_s30 + $0x140] sm:$0xff] %vm3121_vm5, %v7053_v4  ;;  %v3950_v45 = vadd.f32 %v4810_v29, %v3915_v17  ;;  %v4812_v4 = vld [vmem:[%s4908_s27 + $0x70] sm:$0xff] }
 0x5c1   : > { %3678 = vst.msk [vmem:[%s6302_s30 + $0x128] sm:$0xff] %vm2976_vm4, %v3662_v51  ;;  %3996 = vrot.lane.b32.xlu1 %v3951_v47, %s4821_s28  ;;  %v3664_v41 = vadd.f32 %v4812_v4, %v6850_v28 }
 0x5c2   : > { %3854 = vst.msk [vmem:[%s6302_s30 + $0x128] sm:$0xff] %vm3121_vm5, %v7056_v18  ;;  %v2879_v42 = vpop.permute.xlu1 %2878  ;;  %3994 = vrot.lane.b32.xlu0 %v3950_v45, %s4821_s28 }
 0x5c3   : > { %v2911_v63 = vadd.f32 %v4811_v56, %v2879_v42  ;;  %v2877_v43 = vpop.permute.xlu0 %2876 }
 0x5c4   : > { %v2910_v14 = vadd.f32 %v4812_v4, %v2877_v43 }
 0x5c5   : > { %2958 = vrot.lane.b32.xlu1 %v2911_v63, %s4821_s28 }
 0x5c6   : > { %v3345_v15 = vpop.permute.xlu1 %3344  ;;  %2956 = vrot.lane.b32.xlu0 %v2910_v14, %s4821_s28 }
 0x5c7   : > { %3377 = vst.msk [vmem:[%s6302_s30 + $0x170] sm:$0xff] %vm476_vm0, %v3345_v15  ;;  %v3343_v18 = vpop.permute.xlu0 %3342 }
 0x5c8   : > { %3376 = vst.msk [vmem:[%s6302_s30 + $0x158] sm:$0xff] %vm476_vm0, %v3343_v18 }
 0x5ca   : > { %v3489_v22 = vpop.permute.xlu1 %3488 }
 0x5cb   : > { %v3521_v33 = vadd.f32 %v4811_v56, %v3489_v22  ;;  %v3487_v27 = vpop.permute.xlu0 %3486 }
 0x5cc   : > { %v3520_v7 = vadd.f32 %v4812_v4, %v3487_v27 }
 0x5cd   : > { %3537 = vst.msk [vmem:[%s6302_s30 + $0x170] sm:$0xff] %vm2543_vm3, %v3521_v33 }
 0x5ce   : > { %3681 = vst.msk [vmem:[%s6302_s30 + $0x170] sm:$0xff] %vm2976_vm4, %v3665_v13  ;;  %v3921_v32 = vpop.permute.xlu1 %3920 }
 0x5cf   : > { %3536 = vst.msk [vmem:[%s6302_s30 + $0x158] sm:$0xff] %vm2543_vm3, %v3520_v7  ;;  %v3953_v9 = vadd.f32 %v4811_v56, %v3921_v32  ;;  %v3919_v44 = vpop.permute.xlu0 %3918 }
 0x5d0   : > { %3857 = vst.msk [vmem:[%s6302_s30 + $0x170] sm:$0xff] %vm3121_vm5, %v7077_v23  ;;  %v3952_v28 = vadd.f32 %v4812_v4, %v3919_v44 }
 0x5d1   : > { %3680 = vst.msk [vmem:[%s6302_s30 + $0x158] sm:$0xff] %vm2976_vm4, %v3664_v41  ;;  %4000 = vrot.lane.b32.xlu1 %v3953_v9, %s4821_s28 }
 0x5d2   : > { %3856 = vst.msk [vmem:[%s6302_s30 + $0x158] sm:$0xff] %vm3121_vm5, %v7080_v24  ;;  %v2931_v26 = vpop.permute.xlu1 %2930  ;;  %3998 = vrot.lane.b32.xlu0 %v3952_v28, %s4821_s28  ;;  %v7672_v24 = vld [vmem:[#allocation3_spill] sm:$0xff] }
 0x5d3   : > { %2978 = vst.msk [vmem:[%s6302_s30 + $0x18] sm:$0xff] %vm2976_vm4, %v2931_v26  ;;  %v2929_v23 = vpop.permute.xlu0 %2928 }
 0x5d4   : > { %3123 = vst.msk [vmem:[%s6302_s30 + $0x18] sm:$0xff] %vm3121_vm5, %v7671_v19 }
 0x5d5   : > { %2977 = vst.msk [vmem:[%s6302_s30] sm:$0xff] %vm2976_vm4, %v2929_v23 }
 0x5d6   : > { %3122 = vst.msk [vmem:[%s6302_s30] sm:$0xff] %vm3121_vm5, %v7672_v24  ;;  %v3973_v62 = vpop.permute.xlu1 %3972 }
 0x5d7   : > { %4019 = vst.msk [vmem:[%s6302_s30 + $0x28] sm:$0xff] %vm476_vm0, %v3973_v62  ;;  %v3971_v57 = vpop.permute.xlu0 %3970 }
 0x5d8   : > { %4018 = vst.msk [vmem:[%s6302_s30 + $0x10] sm:$0xff] %vm476_vm0, %v3971_v57 }
 0x5da   : > { %v2935_v54 = vpop.permute.xlu1 %2934 }
 0x5db   : > { %2980 = vst.msk [vmem:[%s6302_s30 + $0x48] sm:$0xff] %vm2976_vm4, %v2935_v54  ;;  %v2933_v50 = vpop.permute.xlu0 %2932 }
 0x5dc   : > { %3125 = vst.msk [vmem:[%s6302_s30 + $0x48] sm:$0xff] %vm3121_vm5, %v7673_v34 }
 0x5dd   : > { %2979 = vst.msk [vmem:[%s6302_s30 + $0x30] sm:$0xff] %vm2976_vm4, %v2933_v50 }
 0x5de   : > { %3124 = vst.msk [vmem:[%s6302_s30 + $0x30] sm:$0xff] %vm3121_vm5, %v7674_v11 }
 0x5e3   : > { %v3977_v5 = vpop.permute.xlu1 %3976 }
 0x5e4   : > { %4021 = vst.msk [vmem:[%s6302_s30 + $0x58] sm:$0xff] %vm476_vm0, %v3977_v5  ;;  %v3975_v8 = vpop.permute.xlu0 %3974 }
 0x5e5   : > { %4020 = vst.msk [vmem:[%s6302_s30 + $0x40] sm:$0xff] %vm476_vm0, %v3975_v8 }
 0x5e7   : > { %v2939_v37 = vpop.permute.xlu1 %2938 }
 0x5e8   : > { %2982 = vst.msk [vmem:[%s6302_s30 + $0x78] sm:$0xff] %vm2976_vm4, %v2939_v37  ;;  %v2937_v46 = vpop.permute.xlu0 %2936 }
 0x5e9   : > { %3127 = vst.msk [vmem:[%s6302_s30 + $0x78] sm:$0xff] %vm3121_vm5, %v7675_v53 }
 0x5ea   : > { %2981 = vst.msk [vmem:[%s6302_s30 + $0x60] sm:$0xff] %vm2976_vm4, %v2937_v46 }
 0x5eb   : > { %3126 = vst.msk [vmem:[%s6302_s30 + $0x60] sm:$0xff] %vm3121_vm5, %v7676_v16 }
 0x5f3   : > { %v3981_v30 = vpop.permute.xlu1 %3980 }
 0x5f4   : > { %4023 = vst.msk [vmem:[%s6302_s30 + $0x88] sm:$0xff] %vm476_vm0, %v3981_v30  ;;  %v3979_v52 = vpop.permute.xlu0 %3978 }
 0x5f5   : > { %4022 = vst.msk [vmem:[%s6302_s30 + $0x70] sm:$0xff] %vm476_vm0, %v3979_v52 }
 0x5f7   : > { %v2943_v61 = vpop.permute.xlu1 %2942 }
 0x5f8   : > { %2984 = vst.msk [vmem:[%s6302_s30 + $0xa8] sm:$0xff] %vm2976_vm4, %v2943_v61  ;;  %v2941_v6 = vpop.permute.xlu0 %2940 }
 0x5f9   : > { %3129 = vst.msk [vmem:[%s6302_s30 + $0xa8] sm:$0xff] %vm3121_vm5, %v7677_v58 }
 0x5fa   : > { %2983 = vst.msk [vmem:[%s6302_s30 + $0x90] sm:$0xff] %vm2976_vm4, %v2941_v6 }
 0x5fb   : > { %3128 = vst.msk [vmem:[%s6302_s30 + $0x90] sm:$0xff] %vm3121_vm5, %v7678_v40 }
 0x603   : > { %v3985_v2 = vpop.permute.xlu1 %3984 }
 0x604   : > { %4025 = vst.msk [vmem:[%s6302_s30 + $0xb8] sm:$0xff] %vm476_vm0, %v3985_v2  ;;  %v3983_v60 = vpop.permute.xlu0 %3982 }
 0x605   : > { %4024 = vst.msk [vmem:[%s6302_s30 + $0xa0] sm:$0xff] %vm476_vm0, %v3983_v60 }
 0x607   : > { %v2947_v25 = vpop.permute.xlu1 %2946 }
 0x608   : > { %2986 = vst.msk [vmem:[%s6302_s30 + $0xd8] sm:$0xff] %vm2976_vm4, %v2947_v25  ;;  %v2945_v38 = vpop.permute.xlu0 %2944 }
 0x609   : > { %3131 = vst.msk [vmem:[%s6302_s30 + $0xd8] sm:$0xff] %vm3121_vm5, %v6678_v10 }
 0x60a   : > { %2985 = vst.msk [vmem:[%s6302_s30 + $0xc0] sm:$0xff] %vm2976_vm4, %v2945_v38 }
 0x60b   : > { %3130 = vst.msk [vmem:[%s6302_s30 + $0xc0] sm:$0xff] %vm3121_vm5, %v6682_v48 }
 0x613   : > { %v3989_v12 = vpop.permute.xlu1 %3988 }
 0x614   : > { %4027 = vst.msk [vmem:[%s6302_s30 + $0xe8] sm:$0xff] %vm476_vm0, %v3989_v12  ;;  %v3987_v29 = vpop.permute.xlu0 %3986 }
 0x615   : > { %4026 = vst.msk [vmem:[%s6302_s30 + $0xd0] sm:$0xff] %vm476_vm0, %v3987_v29 }
 0x617   : > { %v2951_v49 = vpop.permute.xlu1 %2950 }
 0x618   : > { %2988 = vst.msk [vmem:[%s6302_s30 + $0x108] sm:$0xff] %vm2976_vm4, %v2951_v49  ;;  %v2949_v10 = vpop.permute.xlu0 %2948 }
 0x619   : > { %3133 = vst.msk [vmem:[%s6302_s30 + $0x108] sm:$0xff] %vm3121_vm5, %v6742_v55 }
 0x61a   : > { %2987 = vst.msk [vmem:[%s6302_s30 + $0xf0] sm:$0xff] %vm2976_vm4, %v2949_v10 }
 0x61b   : > { %3132 = vst.msk [vmem:[%s6302_s30 + $0xf0] sm:$0xff] %vm3121_vm5, %v6746_v20  ;;  %v7679_v20 = vld [vmem:[#allocation23_spill] sm:$0xff] }
 0x623   : > { %v3993_v48 = vpop.permute.xlu1 %3992 }
 0x624   : > { %4029 = vst.msk [vmem:[%s6302_s30 + $0x118] sm:$0xff] %vm476_vm0, %v3993_v48  ;;  %v3991_v3 = vpop.permute.xlu0 %3990 }
 0x625   : > { %4028 = vst.msk [vmem:[%s6302_s30 + $0x100] sm:$0xff] %vm476_vm0, %v3991_v3 }
 0x627   : > { %v2955_v36 = vpop.permute.xlu1 %2954 }
 0x628   : > { %2990 = vst.msk [vmem:[%s6302_s30 + $0x138] sm:$0xff] %vm2976_vm4, %v2955_v36  ;;  %v2953_v55 = vpop.permute.xlu0 %2952 }
 0x629   : > { %3135 = vst.msk [vmem:[%s6302_s30 + $0x138] sm:$0xff] %vm3121_vm5, %v6802_v0  ;;  %v7681_v0 = vld [vmem:[#allocation25_spill] sm:$0xff] }
 0x62a   : > { %2989 = vst.msk [vmem:[%s6302_s30 + $0x120] sm:$0xff] %vm2976_vm4, %v2953_v55 }
 0x62b   : > { %3134 = vst.msk [vmem:[%s6302_s30 + $0x120] sm:$0xff] %vm3121_vm5, %v7679_v20 }
 0x633   : > { %v3997_v21 = vpop.permute.xlu1 %3996 }
 0x634   : > { %4031 = vst.msk [vmem:[%s6302_s30 + $0x148] sm:$0xff] %vm476_vm0, %v3997_v21  ;;  %v3995_v39 = vpop.permute.xlu0 %3994 }
 0x635   : > { %4030 = vst.msk [vmem:[%s6302_s30 + $0x130] sm:$0xff] %vm476_vm0, %v3995_v39 }
 0x637   : > { %v2959_v59 = vpop.permute.xlu1 %2958 }
 0x638   : > { %2992 = vst.msk [vmem:[%s6302_s30 + $0x168] sm:$0xff] %vm2976_vm4, %v2959_v59  ;;  %v2957_v31 = vpop.permute.xlu0 %2956 }
 0x639   : > { %3137 = vst.msk [vmem:[%s6302_s30 + $0x168] sm:$0xff] %vm3121_vm5, %v7680_v1 }
 0x63a   : > { %2991 = vst.msk [vmem:[%s6302_s30 + $0x150] sm:$0xff] %vm2976_vm4, %v2957_v31 }
 0x63b   : > { %3136 = vst.msk [vmem:[%s6302_s30 + $0x150] sm:$0xff] %vm3121_vm5, %v7681_v0 }
 0x643   : > { %v4001_v51 = vpop.permute.xlu1 %4000 }
 0x644   : > { %4033 = vst.msk [vmem:[%s6302_s30 + $0x178] sm:$0xff] %vm476_vm0, %v4001_v51  ;;  %v3999_v35 = vpop.permute.xlu0 %3998 }
 0x645   : > { %4032 = vst.msk [vmem:[%s6302_s30 + $0x160] sm:$0xff] %vm476_vm0, %v3999_v35 }
 0x646 PF: > { %s21_s13 = sadd.s32 1, %s4819_s13  }
 0x647   : > { %p18_p4 = scmp.ge.s32.totalorder %s21_s13, 4  }
 0x649   :  { %20 = sbr.rel (!%p18_p4) target bundleno = 1 (0x1), region = 104 }

</bundles_post_ra>
